<compile_context>
chip_gen: v6e
topology: v6e:2x2x1
jax: 0.10.0
libtpu: 0.0.40
codegen_flags: <defaults>
</compile_context>

<pallas_src>
import math

import numpy as np
import jax
import jax.numpy as jnp
from jax.scipy.linalg import block_diag
from jax.experimental import pallas as pl
from jax.experimental.pallas import tpu as pltpu  # noqa: F401  (TPU backend)

# ----------------------------- model hyper-parameters -----------------------------
NUM_LAYERS = 2
ATOM_FEATURE_SIZE = 6
NUM_CHANNELS = 4
NUM_DEGREES = 4                      # default of TFN.__init__
EDGE_DIM = 4
NUM_NLAYERS = 1
NUM_CHANNELS_OUT = NUM_CHANNELS * NUM_DEGREES   # 16
OUT_DIM = 1
RADIAL_HIDDEN = 32                   # RadialFunc mid_dim

B = 2                                # graphs in the batch
N = 8                                # nodes per graph (complete graph, no self edges)
NN = N * N
F_EDGE = EDGE_DIM + 1                # concat([edge_feat, r])

_WIDTHS = [2 * d + 1 for d in range(NUM_DEGREES)]                       # [1,3,5,7]
MID_WIDTH = NUM_CHANNELS * sum(_WIDTHS)                                 # 64

R0_WIDTH = NUM_DEGREES * ATOM_FEATURE_SIZE * NUM_CHANNELS               # 96
R0_PAD = 128                                                            # lane-aligned pad
R1_WIDTH = NUM_DEGREES * NUM_CHANNELS * NUM_CHANNELS_OUT                # 256
RAD_HID_ALL = 2 * NUM_DEGREES * RADIAL_HIDDEN                           # 256 (both layers)


# ----------------------------- the single fused TFN kernel -----------------------------
def make_tfn_kernel(b, n):
    """Entire TFN forward. All operands live in VMEM; contractions over channels /
    spherical components / edges are matmuls against constant 0/1 structure matrices
    so they run on the MXU with lane-dense operands."""

    def kernel(h0_ref, feat_ref, yexp_ref, src_ref, agg_ref,
               htile0_ref, csum0_ref, texp_ref, normsum_ref, mblk_ch_ref,
               stile_ref, csum1_ref, mblk_h_ref,
               w1_ref, b1_ref, g1_ref, be1_ref, w2_ref, b2_ref, g2_ref, be2_ref,
               w3_ref, b3_ref,
               wself0_ref, wself1_ref,
               ggn_ref, bgn_ref, wgn_ref, bgn2_ref,
               wh1_ref, bh1_ref, wh2_ref, bh2_ref,
               out_ref):

        def dot(x, y):
            return jnp.dot(x, y, preferred_element_type=jnp.float32)

        def block_ln(y, mblk, gamma, beta, eps=1e-5):
            # LayerNorm over each diagonal block described by the block-mean matrix.
            mu = dot(y, mblk)
            var = jnp.maximum(dot(y * y, mblk) - mu * mu, 0.0)
            return (y - mu) * jax.lax.rsqrt(var + eps) * gamma + beta

        h0 = h0_ref[...]            # [BN, 6]   degree-0 input features
        feat = feat_ref[...]        # [E, 5]    concat(edge_w, r)
        yexp = yexp_ref[...]        # [E, 64]   Y_d[e, q] broadcast to channel-major cols
        src = src_ref[...]          # [E, BN]   one-hot source-node selector
        agg = agg_ref[...]          # [BN, E]   block-diag masked-mean aggregation
        texp = texp_ref[...]        # [16, 64]  (d,c) -> all (d,c,q) columns
        normsum = normsum_ref[...]  # [64, 16]  sum over q within (d,c)   (= texp.T)
        mblk_h = mblk_h_ref[...]    # [256,256] per-pair hidden block mean (both layers)

        # ---- radial MLPs of BOTH GConv layers, fused block-diagonally ----
        # Linear -> LN -> ReLU -> Linear -> LN -> ReLU -> Linear, 8 pairs stacked.
        y = dot(feat, w1_ref[...]) + b1_ref[...]                       # [E, 256]
        y = jnp.maximum(block_ln(y, mblk_h, g1_ref[...], be1_ref[...]), 0.0)
        y = dot(y, w2_ref[...]) + b2_ref[...]                          # [E, 256]
        y = jnp.maximum(block_ln(y, mblk_h, g2_ref[...], be2_ref[...]), 0.0)
        rcat = dot(y, w3_ref[...]) + b3_ref[...]                       # [E, 384]
        r0 = rcat[:, :R0_PAD]        # layer-0 radial weights, padded  [E, 128]
        r1 = rcat[:, R0_PAD:]        # layer-1 radial weights          [E, 256]

        # ---- GConvSE3 #0: degree-0 -> degrees 0..3 (self-interaction on d=0) ----
        h0_src = dot(src, h0)                                          # [E, 6]
        # t_all[e, 4*d_out+o] = sum_c R_(0,d_out)[e,o,c] * h0_src[e,c]
        t_all = dot(r0 * dot(h0_src, htile0_ref[...]), csum0_ref[...])  # [E, 16]
        z = dot(t_all, texp) * yexp                                    # [E, 64]
        h_mid = dot(agg, z) + dot(h0, wself0_ref[...])                 # [BN, 64]

        # ---- GNormSE3 (all 4 degrees fused): norm -> LN -> ReLU -> Linear -> rescale ----
        nrm = jnp.maximum(jnp.sqrt(dot(h_mid * h_mid, normsum)), 1e-12)  # [BN, 16]
        tn = jnp.maximum(
            block_ln(nrm, mblk_ch_ref[...], ggn_ref[...], bgn_ref[...]), 0.0)
        tn = dot(tn, wgn_ref[...]) + bgn2_ref[...]
        h_mid = h_mid * dot(tn / nrm, texp)                            # [BN, 64]

        # ---- GConvSE3 #1: degrees 0..3 -> degree 0 (self-interaction on d=0) ----
        h_src = dot(src, h_mid)                                        # [E, 64]
        # s_all[e, 4*d_in+c] = sum_q h_src[e, d_in, c, q] * Y_{d_in}[e, q]
        s_all = dot(h_src * yexp, normsum)                             # [E, 16]
        p = r1 * dot(s_all, stile_ref[...])                            # [E, 256]
        h_out = dot(dot(agg, p), csum1_ref[...]) + dot(h_mid, wself1_ref[...])  # [BN, 16]

        # ---- GMaxPooling over the n nodes of each graph ----
        pooled = jnp.concatenate(
            [jnp.max(h_out[g * n:(g + 1) * n, :], axis=0, keepdims=True)
             for g in range(b)], axis=0)                               # [B, 16]

        # ---- head: Linear -> ReLU -> Linear ----
        yh = jnp.maximum(dot(pooled, wh1_ref[...]) + bh1_ref[...], 0.0)
        out_ref[...] = dot(yh, wh2_ref[...]) + bh2_ref[...]            # [B, 1]

    return kernel


# ----------------------------- constant structure matrices -----------------------------
def _structure_constants(b, n):
    nd, m = NUM_DEGREES, NUM_CHANNELS
    widths = _WIDTHS
    offs = [m * sum(widths[:d]) for d in range(nd)]
    K = m * sum(widths)                       # 64

    # (d,c) -> all components (d,c,q) of that channel ; its transpose sums over q.
    texp = np.zeros((nd * m, K), np.float32)
    for d in range(nd):
        for c in range(m):
            for q in range(widths[d]):
                texp[d * m + c, offs[d] + c * widths[d] + q] = 1.0
    normsum = np.ascontiguousarray(texp.T)

    mblk_ch = np.zeros((nd * m, nd * m), np.float32)
    for d in range(nd):
        mblk_ch[d * m:(d + 1) * m, d * m:(d + 1) * m] = 1.0 / m

    # per-pair hidden block-mean for the stacked radial MLP of BOTH layers
    mblk_h = np.zeros((RAD_HID_ALL, RAD_HID_ALL), np.float32)
    for p2 in range(2 * nd):
        s = p2 * RADIAL_HIDDEN
        mblk_h[s:s + RADIAL_HIDDEN, s:s + RADIAL_HIDDEN] = 1.0 / RADIAL_HIDDEN

    # layer 0: pairs (0 -> d_out); R columns = pair*24 + o*6 + c (out-channel major),
    # padded to R0_PAD columns so the fused radial output splits on a lane boundary.
    mi0, mo0 = ATOM_FEATURE_SIZE, NUM_CHANNELS
    r0w = mi0 * mo0
    htile0 = np.zeros((mi0, R0_PAD), np.float32)
    csum0 = np.zeros((R0_PAD, nd * mo0), np.float32)
    for p2 in range(nd):
        for o in range(mo0):
            for c in range(mi0):
                col = p2 * r0w + o * mi0 + c
                htile0[c, col] = 1.0
                csum0[col, p2 * mo0 + o] = 1.0

    # layer 1: pairs (d_in -> 0); R columns = d_in*64 + o*4 + c (out-channel major)
    mi1, mo1 = NUM_CHANNELS, NUM_CHANNELS_OUT
    r1w = mi1 * mo1
    stile = np.zeros((nd * mi1, nd * r1w), np.float32)
    csum1 = np.zeros((nd * r1w, mo1), np.float32)
    for d in range(nd):
        for o in range(mo1):
            for c in range(mi1):
                col = d * r1w + o * mi1 + c
                stile[d * mi1 + c, col] = 1.0
                csum1[col, o] = 1.0

    # block-diagonal masked-mean aggregation + one-hot source selector (batch folded)
    nn_ = n * n
    agg = np.zeros((b * n, b * nn_), np.float32)
    src = np.zeros((b * nn_, b * n), np.float32)
    for g in range(b):
        for i in range(n):
            for j in range(n):
                e = g * nn_ + i * n + j
                src[e, g * n + j] = 1.0          # h_src[(i,j)] = h[j]
                if i != j:
                    agg[g * n + i, e] = 1.0 / (n - 1)

    consts = dict(texp=texp, normsum=normsum, mblk_ch=mblk_ch, mblk_h=mblk_h,
                  htile0=htile0, csum0=csum0, stile=stile, csum1=csum1,
                  agg=agg, src=src)
    return {k: jnp.asarray(v) for k, v in consts.items()}


# ----------------------------- basis / distances (plain-JAX glue) -----------------------------
def get_basis_and_r(pos, max_degree):
    """Real spherical harmonics Y_0..Y_{max_degree} of edge directions + distances.
    pos: [B, N, 3]. Edge (i=dst, j=src), d = x_dst - x_src. Returns flattened
    [B*N*N, ...] tensors (batch/i-major edge enumeration)."""
    b, n, _ = pos.shape
    d = pos[:, :, None, :] - pos[:, None, :, :]               # [B, N, N, 3]
    r = jnp.sqrt(jnp.sum(d * d, axis=-1, keepdims=True))      # [B, N, N, 1]
    u = d / jnp.maximum(r, 1e-12)
    x, y, z = u[..., 0], u[..., 1], u[..., 2]

    Y = {0: 0.28209479177387814 * jnp.ones_like(x)[..., None]}
    if max_degree >= 1:
        c1 = 0.4886025119029199
        Y[1] = jnp.stack([c1 * y, c1 * z, c1 * x], axis=-1)
    if max_degree >= 2:
        Y[2] = jnp.stack([
            1.0925484305920792 * x * y,
            1.0925484305920792 * y * z,
            0.31539156525252005 * (3.0 * z * z - 1.0),
            1.0925484305920792 * x * z,
            0.5462742152960396 * (x * x - y * y)], axis=-1)
    if max_degree >= 3:
        Y[3] = jnp.stack([
            0.5900435899266435 * y * (3.0 * x * x - y * y),
            2.890611442640554 * x * y * z,
            0.4570457994644658 * y * (5.0 * z * z - 1.0),
            0.3731763325901154 * z * (5.0 * z * z - 3.0),
            0.4570457994644658 * x * (5.0 * z * z - 1.0),
            1.445305721320277 * z * (x * x - y * y),
            0.5900435899266435 * x * (x * x - 3.0 * y * y)], axis=-1)

    basis = {l: v.reshape(b * n * n, v.shape[-1]) for l, v in Y.items()}
    return basis, r.reshape(b * n * n, 1)


# ----------------------------- deterministic parameter init -----------------------------
def _uniform(key, shape, bound):
    return jax.random.uniform(key, shape, jnp.float32, -bound, bound)


def linear_params(key, fan_in, fan_out):
    k1, k2 = jax.random.split(key)
    bound = 1.0 / math.sqrt(fan_in)
    return _uniform(k1, (fan_in, fan_out), bound), _uniform(k2, (1, fan_out), bound)


def radial_params(key, nc_in, nc_out, edge_dim=EDGE_DIM, hidden=RADIAL_HIDDEN):
    k1, k2, k3 = jax.random.split(key, 3)
    w1, b1 = linear_params(k1, edge_dim + 1, hidden)
    g1, be1 = jnp.ones((1, hidden), jnp.float32), jnp.zeros((1, hidden), jnp.float32)
    w2, b2 = linear_params(k2, hidden, hidden)
    g2, be2 = jnp.ones((1, hidden), jnp.float32), jnp.zeros((1, hidden), jnp.float32)
    w3, b3 = linear_params(k3, hidden, nc_out * nc_in)   # num_freq == 1
    return (w1, b1, g1, be1, w2, b2, g2, be2, w3, b3)


def init_params(key):
    keys = iter(jax.random.split(key, 64))
    nk = lambda: next(keys)

    def gconv_params(f_in, f_out):
        p = {"pairs": {}, "self": {}}
        f_in_d = dict(f_in)
        for d_out, m_out in f_out:
            for d_in, m_in in f_in:
                p["pairs"][(d_in, d_out)] = radial_params(nk(), m_in, m_out)
            if d_out in f_in_d:
                m_in = f_in_d[d_out]
                w = jax.random.normal(nk(), (m_out, m_in), jnp.float32) / math.sqrt(m_in)
                p["self"][d_out] = w.T                       # stored [m_in, m_out]
        return p

    f_in = [(0, ATOM_FEATURE_SIZE)]
    f_mid = [(d, NUM_CHANNELS) for d in range(NUM_DEGREES)]
    f_out = [(0, NUM_CHANNELS_OUT)]

    params = {
        "gconv0": gconv_params(f_in, f_mid),
        "gconv1": gconv_params(f_mid, f_out),
    }

    gnorm = {}
    for d, m in f_mid:
        g = jnp.ones((1, m), jnp.float32)
        be = jnp.zeros((1, m), jnp.float32)
        w = _uniform(nk(), (m, m), math.sqrt(6.0 / m))       # kaiming_uniform (relu)
        b = _uniform(nk(), (1, m), 1.0 / math.sqrt(m))
        gnorm[d] = (g, be, w, b)
    params["gnorm0"] = gnorm

    w1, b1 = linear_params(nk(), NUM_CHANNELS_OUT, NUM_CHANNELS_OUT)
    w2, b2 = linear_params(nk(), NUM_CHANNELS_OUT, OUT_DIM)
    params["head"] = (w1, b1, w2, b2)
    return params


def _stack_radial(pairs):
    """Stack the radial MLPs of 4 (d_in,d_out) pairs into block-diagonal weights."""
    cat = lambda i: jnp.concatenate([p[i] for p in pairs], axis=1)
    return (cat(0), cat(1), cat(2), cat(3),
            block_diag(*[p[4] for p in pairs]), cat(5), cat(6), cat(7),
            block_diag(*[p[8] for p in pairs]), cat(9))


def _fuse_radial(rad0, rad1):
    """Fuse the stacked radial MLPs of BOTH GConv layers into one block-diagonal MLP.
    Layer-0 output columns are zero-padded to R0_PAD so the in-kernel split of the
    fused result lands on a 128-lane tile boundary."""
    w3a = jnp.pad(rad0[8], ((0, 0), (0, R0_PAD - rad0[8].shape[1])))
    b3a = jnp.pad(rad0[9], ((0, 0), (0, R0_PAD - rad0[9].shape[1])))
    w1 = jnp.concatenate([rad0[0], rad1[0]], axis=1)      # [5, 256]
    b1 = jnp.concatenate([rad0[1], rad1[1]], axis=1)
    g1 = jnp.concatenate([rad0[2], rad1[2]], axis=1)
    be1 = jnp.concatenate([rad0[3], rad1[3]], axis=1)
    w2 = block_diag(rad0[4], rad1[4])                      # [256, 256]
    b2 = jnp.concatenate([rad0[5], rad1[5]], axis=1)
    g2 = jnp.concatenate([rad0[6], rad1[6]], axis=1)
    be2 = jnp.concatenate([rad0[7], rad1[7]], axis=1)
    w3 = block_diag(w3a, rad1[8])                          # [256, 384]
    b3 = jnp.concatenate([b3a, rad1[9]], axis=1)           # [1, 384]
    return (w1, b1, g1, be1, w2, b2, g2, be2, w3, b3)


# ----------------------------- full TFN forward (one pallas_call) -----------------------------
def tfn_forward(params, node_feat, pos, edge_w):
    """node_feat: [B, N, atom_feature_size, 1]; pos: [B, N, 3]; edge_w: [B, N, N, edge_dim]."""
    b, n = node_feat.shape[0], node_feat.shape[1]
    consts = _structure_constants(b, n)

    basis, r = get_basis_and_r(pos, NUM_DEGREES - 1)
    feat = jnp.concatenate([edge_w.reshape(b * n * n, EDGE_DIM), r], axis=-1)   # [E, 5]
    # Y_expand[e, off_d + c*(2d+1)+q] = Y_d[e, q]   (channel-major, lane-dense [E, 64])
    yexp = jnp.concatenate(
        [jnp.tile(basis[d], (1, NUM_CHANNELS)) for d in range(NUM_DEGREES)], axis=-1)

    h0 = node_feat.reshape(b * n, ATOM_FEATURE_SIZE)

    rad0 = _stack_radial([params["gconv0"]["pairs"][(0, d)] for d in range(NUM_DEGREES)])
    rad1 = _stack_radial([params["gconv1"]["pairs"][(d, 0)] for d in range(NUM_DEGREES)])
    rad = _fuse_radial(rad0, rad1)

    # self-interaction weights, padded to lane-dense node-feature width
    wself0 = jnp.pad(params["gconv0"]["self"][0],
                     ((0, 0), (0, MID_WIDTH - NUM_CHANNELS)))          # [6, 64]
    wself1 = jnp.pad(params["gconv1"]["self"][0],
                     ((0, MID_WIDTH - NUM_CHANNELS), (0, 0)))          # [64, 16]

    ggn = jnp.concatenate([params["gnorm0"][d][0] for d in range(NUM_DEGREES)], axis=1)
    bgn = jnp.concatenate([params["gnorm0"][d][1] for d in range(NUM_DEGREES)], axis=1)
    wgn = block_diag(*[params["gnorm0"][d][2] for d in range(NUM_DEGREES)])
    bgn2 = jnp.concatenate([params["gnorm0"][d][3] for d in range(NUM_DEGREES)], axis=1)

    wh1, bh1, wh2, bh2 = params["head"]

    return pl.pallas_call(
        make_tfn_kernel(b, n),
        out_shape=jax.ShapeDtypeStruct((b, OUT_DIM), jnp.float32),
    )(h0, feat, yexp, consts["src"], consts["agg"],
      consts["htile0"], consts["csum0"], consts["texp"], consts["normsum"],
      consts["mblk_ch"], consts["stile"], consts["csum1"], consts["mblk_h"],
      *rad,
      wself0, wself1,
      ggn, bgn, wgn, bgn2,
      wh1, bh1, wh2, bh2)


# ----------------------------- driver -----------------------------
if __name__ == "__main__":
    key = jax.random.PRNGKey(0)
    kp, kf, kx, kw = jax.random.split(key, 4)

    params = init_params(kp)
    node_feat = jax.random.normal(kf, (B, N, ATOM_FEATURE_SIZE, 1), jnp.float32)
    pos = jax.random.normal(kx, (B, N, 3), jnp.float32)
    edge_w = jax.random.normal(kw, (B, N, N, EDGE_DIM), jnp.float32)

    out = jax.jit(tfn_forward)(params, node_feat, pos, edge_w)
    out = jax.block_until_ready(out)
    assert out.shape == (B, OUT_DIM)
    assert bool(jnp.all(jnp.isfinite(out)))
    print("KERNEL_OK")
</pallas_src>

<mosaic_0001>
module attributes {stable_mosaic.version = 11 : i64} {
  func.func @kernel(%arg0: memref<16x6xf32, #tpu.memory_space<vmem>>, %arg1: memref<128x5xf32, #tpu.memory_space<vmem>>, %arg2: memref<128x64xf32, #tpu.memory_space<vmem>>, %arg3: memref<128x16xf32, #tpu.memory_space<vmem>>, %arg4: memref<16x128xf32, #tpu.memory_space<vmem>>, %arg5: memref<6x128xf32, #tpu.memory_space<vmem>>, %arg6: memref<128x16xf32, #tpu.memory_space<vmem>>, %arg7: memref<16x64xf32, #tpu.memory_space<vmem>>, %arg8: memref<64x16xf32, #tpu.memory_space<vmem>>, %arg9: memref<16x16xf32, #tpu.memory_space<vmem>>, %arg10: memref<16x256xf32, #tpu.memory_space<vmem>>, %arg11: memref<256x16xf32, #tpu.memory_space<vmem>>, %arg12: memref<256x256xf32, #tpu.memory_space<vmem>>, %arg13: memref<5x256xf32, #tpu.memory_space<vmem>>, %arg14: memref<1x256xf32, #tpu.memory_space<vmem>>, %arg15: memref<1x256xf32, #tpu.memory_space<vmem>>, %arg16: memref<1x256xf32, #tpu.memory_space<vmem>>, %arg17: memref<256x256xf32, #tpu.memory_space<vmem>>, %arg18: memref<1x256xf32, #tpu.memory_space<vmem>>, %arg19: memref<1x256xf32, #tpu.memory_space<vmem>>, %arg20: memref<1x256xf32, #tpu.memory_space<vmem>>, %arg21: memref<256x384xf32, #tpu.memory_space<vmem>>, %arg22: memref<1x384xf32, #tpu.memory_space<vmem>>, %arg23: memref<6x64xf32, #tpu.memory_space<vmem>>, %arg24: memref<64x16xf32, #tpu.memory_space<vmem>>, %arg25: memref<1x16xf32, #tpu.memory_space<vmem>>, %arg26: memref<1x16xf32, #tpu.memory_space<vmem>>, %arg27: memref<16x16xf32, #tpu.memory_space<vmem>>, %arg28: memref<1x16xf32, #tpu.memory_space<vmem>>, %arg29: memref<16x16xf32, #tpu.memory_space<vmem>>, %arg30: memref<1x16xf32, #tpu.memory_space<vmem>>, %arg31: memref<16x1xf32, #tpu.memory_space<vmem>>, %arg32: memref<1x1xf32, #tpu.memory_space<vmem>>, %arg33: memref<2x1xf32, #tpu.memory_space<vmem>>) attributes {dimension_semantics = [], scalar_prefetch = 0 : i64, scratch_operands = 0 : i64, tpu.core_type = #tpu.core_type<tc>} {
    %c0 = arith.constant 0 : index
    %c0_0 = arith.constant 0 : index
    %0 = vector.load %arg0[%c0, %c0_0] : memref<16x6xf32, #tpu.memory_space<vmem>>, vector<16x6xf32>
    %c0_1 = arith.constant 0 : index
    %c0_2 = arith.constant 0 : index
    %1 = vector.load %arg1[%c0_1, %c0_2] : memref<128x5xf32, #tpu.memory_space<vmem>>, vector<128x5xf32>
    %c0_3 = arith.constant 0 : index
    %c0_4 = arith.constant 0 : index
    %2 = vector.load %arg2[%c0_3, %c0_4] : memref<128x64xf32, #tpu.memory_space<vmem>>, vector<128x64xf32>
    %c0_5 = arith.constant 0 : index
    %c0_6 = arith.constant 0 : index
    %3 = vector.load %arg3[%c0_5, %c0_6] : memref<128x16xf32, #tpu.memory_space<vmem>>, vector<128x16xf32>
    %c0_7 = arith.constant 0 : index
    %c0_8 = arith.constant 0 : index
    %4 = vector.load %arg4[%c0_7, %c0_8] : memref<16x128xf32, #tpu.memory_space<vmem>>, vector<16x128xf32>
    %c0_9 = arith.constant 0 : index
    %c0_10 = arith.constant 0 : index
    %5 = vector.load %arg7[%c0_9, %c0_10] : memref<16x64xf32, #tpu.memory_space<vmem>>, vector<16x64xf32>
    %c0_11 = arith.constant 0 : index
    %c0_12 = arith.constant 0 : index
    %6 = vector.load %arg8[%c0_11, %c0_12] : memref<64x16xf32, #tpu.memory_space<vmem>>, vector<64x16xf32>
    %c0_13 = arith.constant 0 : index
    %c0_14 = arith.constant 0 : index
    %7 = vector.load %arg12[%c0_13, %c0_14] : memref<256x256xf32, #tpu.memory_space<vmem>>, vector<256x256xf32>
    %c0_15 = arith.constant 0 : index
    %c0_16 = arith.constant 0 : index
    %8 = vector.load %arg13[%c0_15, %c0_16] : memref<5x256xf32, #tpu.memory_space<vmem>>, vector<5x256xf32>
    %cst = arith.constant dense<0.000000e+00> : vector<128x256xf32>
    %9 = tpu.matmul %1, %8, %cst {dimension_numbers = #tpu.dot_dimension_numbers<[1], [0], [0], [1], [0, 0, 1, 1], [], []>} : vector<128x5xf32>, vector<5x256xf32>, vector<128x256xf32> -> vector<128x256xf32>
    %c0_17 = arith.constant 0 : index
    %c0_18 = arith.constant 0 : index
    %10 = vector.load %arg14[%c0_17, %c0_18] : memref<1x256xf32, #tpu.memory_space<vmem>>, vector<1x256xf32>
    %11 = vector.broadcast %10 : vector<1x256xf32> to vector<128x256xf32>
    %12 = arith.addf %9, %11 : vector<128x256xf32>
    %c0_19 = arith.constant 0 : index
    %c0_20 = arith.constant 0 : index
    %13 = vector.load %arg15[%c0_19, %c0_20] : memref<1x256xf32, #tpu.memory_space<vmem>>, vector<1x256xf32>
    %c0_21 = arith.constant 0 : index
    %c0_22 = arith.constant 0 : index
    %14 = vector.load %arg16[%c0_21, %c0_22] : memref<1x256xf32, #tpu.memory_space<vmem>>, vector<1x256xf32>
    %cst_23 = arith.constant dense<0.000000e+00> : vector<128x256xf32>
    %15 = tpu.matmul %12, %7, %cst_23 {dimension_numbers = #tpu.dot_dimension_numbers<[1], [0], [0], [1], [0, 0, 1, 1], [], []>} : vector<128x256xf32>, vector<256x256xf32>, vector<128x256xf32> -> vector<128x256xf32>
    %16 = arith.mulf %12, %12 : vector<128x256xf32>
    %cst_24 = arith.constant dense<0.000000e+00> : vector<128x256xf32>
    %17 = tpu.matmul %16, %7, %cst_24 {dimension_numbers = #tpu.dot_dimension_numbers<[1], [0], [0], [1], [0, 0, 1, 1], [], []>} : vector<128x256xf32>, vector<256x256xf32>, vector<128x256xf32> -> vector<128x256xf32>
    %18 = arith.mulf %15, %15 : vector<128x256xf32>
    %19 = arith.subf %17, %18 : vector<128x256xf32>
    %cst_25 = arith.constant 0.000000e+00 : f32
    %20 = vector.broadcast %cst_25 : f32 to vector<128x256xf32>
    %21 = arith.maximumf %19, %20 : vector<128x256xf32>
    %22 = arith.subf %12, %15 : vector<128x256xf32>
    %cst_26 = arith.constant 9.99999974E-6 : f32
    %23 = vector.broadcast %cst_26 : f32 to vector<128x256xf32>
    %24 = arith.addf %21, %23 : vector<128x256xf32>
    %25 = math.rsqrt %24 : vector<128x256xf32>
    %26 = arith.mulf %22, %25 : vector<128x256xf32>
    %27 = vector.broadcast %13 : vector<1x256xf32> to vector<128x256xf32>
    %28 = arith.mulf %26, %27 : vector<128x256xf32>
    %29 = vector.broadcast %14 : vector<1x256xf32> to vector<128x256xf32>
    %30 = arith.addf %28, %29 : vector<128x256xf32>
    %cst_27 = arith.constant 0.000000e+00 : f32
    %31 = vector.broadcast %cst_27 : f32 to vector<128x256xf32>
    %32 = arith.maximumf %30, %31 : vector<128x256xf32>
    %c0_28 = arith.constant 0 : index
    %c0_29 = arith.constant 0 : index
    %33 = vector.load %arg17[%c0_28, %c0_29] : memref<256x256xf32, #tpu.memory_space<vmem>>, vector<256x256xf32>
    %cst_30 = arith.constant dense<0.000000e+00> : vector<128x256xf32>
    %34 = tpu.matmul %32, %33, %cst_30 {dimension_numbers = #tpu.dot_dimension_numbers<[1], [0], [0], [1], [0, 0, 1, 1], [], []>} : vector<128x256xf32>, vector<256x256xf32>, vector<128x256xf32> -> vector<128x256xf32>
    %c0_31 = arith.constant 0 : index
    %c0_32 = arith.constant 0 : index
    %35 = vector.load %arg18[%c0_31, %c0_32] : memref<1x256xf32, #tpu.memory_space<vmem>>, vector<1x256xf32>
    %36 = vector.broadcast %35 : vector<1x256xf32> to vector<128x256xf32>
    %37 = arith.addf %34, %36 : vector<128x256xf32>
    %c0_33 = arith.constant 0 : index
    %c0_34 = arith.constant 0 : index
    %38 = vector.load %arg19[%c0_33, %c0_34] : memref<1x256xf32, #tpu.memory_space<vmem>>, vector<1x256xf32>
    %c0_35 = arith.constant 0 : index
    %c0_36 = arith.constant 0 : index
    %39 = vector.load %arg20[%c0_35, %c0_36] : memref<1x256xf32, #tpu.memory_space<vmem>>, vector<1x256xf32>
    %cst_37 = arith.constant dense<0.000000e+00> : vector<128x256xf32>
    %40 = tpu.matmul %37, %7, %cst_37 {dimension_numbers = #tpu.dot_dimension_numbers<[1], [0], [0], [1], [0, 0, 1, 1], [], []>} : vector<128x256xf32>, vector<256x256xf32>, vector<128x256xf32> -> vector<128x256xf32>
    %41 = arith.mulf %37, %37 : vector<128x256xf32>
    %cst_38 = arith.constant dense<0.000000e+00> : vector<128x256xf32>
    %42 = tpu.matmul %41, %7, %cst_38 {dimension_numbers = #tpu.dot_dimension_numbers<[1], [0], [0], [1], [0, 0, 1, 1], [], []>} : vector<128x256xf32>, vector<256x256xf32>, vector<128x256xf32> -> vector<128x256xf32>
    %43 = arith.mulf %40, %40 : vector<128x256xf32>
    %44 = arith.subf %42, %43 : vector<128x256xf32>
    %cst_39 = arith.constant 0.000000e+00 : f32
    %45 = vector.broadcast %cst_39 : f32 to vector<128x256xf32>
    %46 = arith.maximumf %44, %45 : vector<128x256xf32>
    %47 = arith.subf %37, %40 : vector<128x256xf32>
    %cst_40 = arith.constant 9.99999974E-6 : f32
    %48 = vector.broadcast %cst_40 : f32 to vector<128x256xf32>
    %49 = arith.addf %46, %48 : vector<128x256xf32>
    %50 = math.rsqrt %49 : vector<128x256xf32>
    %51 = arith.mulf %47, %50 : vector<128x256xf32>
    %52 = vector.broadcast %38 : vector<1x256xf32> to vector<128x256xf32>
    %53 = arith.mulf %51, %52 : vector<128x256xf32>
    %54 = vector.broadcast %39 : vector<1x256xf32> to vector<128x256xf32>
    %55 = arith.addf %53, %54 : vector<128x256xf32>
    %cst_41 = arith.constant 0.000000e+00 : f32
    %56 = vector.broadcast %cst_41 : f32 to vector<128x256xf32>
    %57 = arith.maximumf %55, %56 : vector<128x256xf32>
    %c0_42 = arith.constant 0 : index
    %c0_43 = arith.constant 0 : index
    %58 = vector.load %arg21[%c0_42, %c0_43] : memref<256x384xf32, #tpu.memory_space<vmem>>, vector<256x384xf32>
    %cst_44 = arith.constant dense<0.000000e+00> : vector<128x384xf32>
    %59 = tpu.matmul %57, %58, %cst_44 {dimension_numbers = #tpu.dot_dimension_numbers<[1], [0], [0], [1], [0, 0, 1, 1], [], []>} : vector<128x256xf32>, vector<256x384xf32>, vector<128x384xf32> -> vector<128x384xf32>
    %c0_45 = arith.constant 0 : index
    %c0_46 = arith.constant 0 : index
    %60 = vector.load %arg22[%c0_45, %c0_46] : memref<1x384xf32, #tpu.memory_space<vmem>>, vector<1x384xf32>
    %61 = vector.broadcast %60 : vector<1x384xf32> to vector<128x384xf32>
    %62 = arith.addf %59, %61 : vector<128x384xf32>
    %63 = vector.extract_strided_slice %62 {offsets = [0, 0], sizes = [128, 128], strides = [1, 1]} : vector<128x384xf32> to vector<128x128xf32>
    %64 = vector.extract_strided_slice %62 {offsets = [0, 128], sizes = [128, 256], strides = [1, 1]} : vector<128x384xf32> to vector<128x256xf32>
    %cst_47 = arith.constant dense<0.000000e+00> : vector<128x6xf32>
    %65 = tpu.matmul %3, %0, %cst_47 {dimension_numbers = #tpu.dot_dimension_numbers<[1], [0], [0], [1], [0, 0, 1, 1], [], []>} : vector<128x16xf32>, vector<16x6xf32>, vector<128x6xf32> -> vector<128x6xf32>
    %c0_48 = arith.constant 0 : index
    %c0_49 = arith.constant 0 : index
    %66 = vector.load %arg5[%c0_48, %c0_49] : memref<6x128xf32, #tpu.memory_space<vmem>>, vector<6x128xf32>
    %cst_50 = arith.constant dense<0.000000e+00> : vector<128x128xf32>
    %67 = tpu.matmul %65, %66, %cst_50 {dimension_numbers = #tpu.dot_dimension_numbers<[1], [0], [0], [1], [0, 0, 1, 1], [], []>} : vector<128x6xf32>, vector<6x128xf32>, vector<128x128xf32> -> vector<128x128xf32>
    %68 = arith.mulf %63, %67 : vector<128x128xf32>
    %c0_51 = arith.constant 0 : index
    %c0_52 = arith.constant 0 : index
    %69 = vector.load %arg6[%c0_51, %c0_52] : memref<128x16xf32, #tpu.memory_space<vmem>>, vector<128x16xf32>
    %cst_53 = arith.constant dense<0.000000e+00> : vector<128x16xf32>
    %70 = tpu.matmul %68, %69, %cst_53 {dimension_numbers = #tpu.dot_dimension_numbers<[1], [0], [0], [1], [0, 0, 1, 1], [], []>} : vector<128x128xf32>, vector<128x16xf32>, vector<128x16xf32> -> vector<128x16xf32>
    %cst_54 = arith.constant dense<0.000000e+00> : vector<128x64xf32>
    %71 = tpu.matmul %70, %5, %cst_54 {dimension_numbers = #tpu.dot_dimension_numbers<[1], [0], [0], [1], [0, 0, 1, 1], [], []>} : vector<128x16xf32>, vector<16x64xf32>, vector<128x64xf32> -> vector<128x64xf32>
    %72 = arith.mulf %71, %2 : vector<128x64xf32>
    %cst_55 = arith.constant dense<0.000000e+00> : vector<16x64xf32>
    %73 = tpu.matmul %4, %72, %cst_55 {dimension_numbers = #tpu.dot_dimension_numbers<[1], [0], [0], [1], [0, 0, 1, 1], [], []>} : vector<16x128xf32>, vector<128x64xf32>, vector<16x64xf32> -> vector<16x64xf32>
    %c0_56 = arith.constant 0 : index
    %c0_57 = arith.constant 0 : index
    %74 = vector.load %arg23[%c0_56, %c0_57] : memref<6x64xf32, #tpu.memory_space<vmem>>, vector<6x64xf32>
    %cst_58 = arith.constant dense<0.000000e+00> : vector<16x64xf32>
    %75 = tpu.matmul %0, %74, %cst_58 {dimension_numbers = #tpu.dot_dimension_numbers<[1], [0], [0], [1], [0, 0, 1, 1], [], []>} : vector<16x6xf32>, vector<6x64xf32>, vector<16x64xf32> -> vector<16x64xf32>
    %76 = arith.addf %73, %75 : vector<16x64xf32>
    %77 = arith.mulf %76, %76 : vector<16x64xf32>
    %cst_59 = arith.constant dense<0.000000e+00> : vector<16x16xf32>
    %78 = tpu.matmul %77, %6, %cst_59 {dimension_numbers = #tpu.dot_dimension_numbers<[1], [0], [0], [1], [0, 0, 1, 1], [], []>} : vector<16x64xf32>, vector<64x16xf32>, vector<16x16xf32> -> vector<16x16xf32>
    %79 = math.sqrt %78 : vector<16x16xf32>
    %cst_60 = arith.constant 9.99999996E-13 : f32
    %80 = vector.broadcast %cst_60 : f32 to vector<16x16xf32>
    %81 = arith.maximumf %79, %80 : vector<16x16xf32>
    %c0_61 = arith.constant 0 : index
    %c0_62 = arith.constant 0 : index
    %82 = vector.load %arg9[%c0_61, %c0_62] : memref<16x16xf32, #tpu.memory_space<vmem>>, vector<16x16xf32>
    %c0_63 = arith.constant 0 : index
    %c0_64 = arith.constant 0 : index
    %83 = vector.load %arg25[%c0_63, %c0_64] : memref<1x16xf32, #tpu.memory_space<vmem>>, vector<1x16xf32>
    %c0_65 = arith.constant 0 : index
    %c0_66 = arith.constant 0 : index
    %84 = vector.load %arg26[%c0_65, %c0_66] : memref<1x16xf32, #tpu.memory_space<vmem>>, vector<1x16xf32>
    %cst_67 = arith.constant dense<0.000000e+00> : vector<16x16xf32>
    %85 = tpu.matmul %81, %82, %cst_67 {dimension_numbers = #tpu.dot_dimension_numbers<[1], [0], [0], [1], [0, 0, 1, 1], [], []>} : vector<16x16xf32>, vector<16x16xf32>, vector<16x16xf32> -> vector<16x16xf32>
    %86 = arith.mulf %81, %81 : vector<16x16xf32>
    %cst_68 = arith.constant dense<0.000000e+00> : vector<16x16xf32>
    %87 = tpu.matmul %86, %82, %cst_68 {dimension_numbers = #tpu.dot_dimension_numbers<[1], [0], [0], [1], [0, 0, 1, 1], [], []>} : vector<16x16xf32>, vector<16x16xf32>, vector<16x16xf32> -> vector<16x16xf32>
    %88 = arith.mulf %85, %85 : vector<16x16xf32>
    %89 = arith.subf %87, %88 : vector<16x16xf32>
    %cst_69 = arith.constant 0.000000e+00 : f32
    %90 = vector.broadcast %cst_69 : f32 to vector<16x16xf32>
    %91 = arith.maximumf %89, %90 : vector<16x16xf32>
    %92 = arith.subf %81, %85 : vector<16x16xf32>
    %cst_70 = arith.constant 9.99999974E-6 : f32
    %93 = vector.broadcast %cst_70 : f32 to vector<16x16xf32>
    %94 = arith.addf %91, %93 : vector<16x16xf32>
    %95 = math.rsqrt %94 : vector<16x16xf32>
    %96 = arith.mulf %92, %95 : vector<16x16xf32>
    %97 = vector.broadcast %83 : vector<1x16xf32> to vector<16x16xf32>
    %98 = arith.mulf %96, %97 : vector<16x16xf32>
    %99 = vector.broadcast %84 : vector<1x16xf32> to vector<16x16xf32>
    %100 = arith.addf %98, %99 : vector<16x16xf32>
    %cst_71 = arith.constant 0.000000e+00 : f32
    %101 = vector.broadcast %cst_71 : f32 to vector<16x16xf32>
    %102 = arith.maximumf %100, %101 : vector<16x16xf32>
    %c0_72 = arith.constant 0 : index
    %c0_73 = arith.constant 0 : index
    %103 = vector.load %arg27[%c0_72, %c0_73] : memref<16x16xf32, #tpu.memory_space<vmem>>, vector<16x16xf32>
    %cst_74 = arith.constant dense<0.000000e+00> : vector<16x16xf32>
    %104 = tpu.matmul %102, %103, %cst_74 {dimension_numbers = #tpu.dot_dimension_numbers<[1], [0], [0], [1], [0, 0, 1, 1], [], []>} : vector<16x16xf32>, vector<16x16xf32>, vector<16x16xf32> -> vector<16x16xf32>
    %c0_75 = arith.constant 0 : index
    %c0_76 = arith.constant 0 : index
    %105 = vector.load %arg28[%c0_75, %c0_76] : memref<1x16xf32, #tpu.memory_space<vmem>>, vector<1x16xf32>
    %106 = vector.broadcast %105 : vector<1x16xf32> to vector<16x16xf32>
    %107 = arith.addf %104, %106 : vector<16x16xf32>
    %108 = arith.divf %107, %81 : vector<16x16xf32>
    %cst_77 = arith.constant dense<0.000000e+00> : vector<16x64xf32>
    %109 = tpu.matmul %108, %5, %cst_77 {dimension_numbers = #tpu.dot_dimension_numbers<[1], [0], [0], [1], [0, 0, 1, 1], [], []>} : vector<16x16xf32>, vector<16x64xf32>, vector<16x64xf32> -> vector<16x64xf32>
    %110 = arith.mulf %76, %109 : vector<16x64xf32>
    %cst_78 = arith.constant dense<0.000000e+00> : vector<128x64xf32>
    %111 = tpu.matmul %3, %110, %cst_78 {dimension_numbers = #tpu.dot_dimension_numbers<[1], [0], [0], [1], [0, 0, 1, 1], [], []>} : vector<128x16xf32>, vector<16x64xf32>, vector<128x64xf32> -> vector<128x64xf32>
    %112 = arith.mulf %111, %2 : vector<128x64xf32>
    %cst_79 = arith.constant dense<0.000000e+00> : vector<128x16xf32>
    %113 = tpu.matmul %112, %6, %cst_79 {dimension_numbers = #tpu.dot_dimension_numbers<[1], [0], [0], [1], [0, 0, 1, 1], [], []>} : vector<128x64xf32>, vector<64x16xf32>, vector<128x16xf32> -> vector<128x16xf32>
    %c0_80 = arith.constant 0 : index
    %c0_81 = arith.constant 0 : index
    %114 = vector.load %arg10[%c0_80, %c0_81] : memref<16x256xf32, #tpu.memory_space<vmem>>, vector<16x256xf32>
    %cst_82 = arith.constant dense<0.000000e+00> : vector<128x256xf32>
    %115 = tpu.matmul %113, %114, %cst_82 {dimension_numbers = #tpu.dot_dimension_numbers<[1], [0], [0], [1], [0, 0, 1, 1], [], []>} : vector<128x16xf32>, vector<16x256xf32>, vector<128x256xf32> -> vector<128x256xf32>
    %116 = arith.mulf %64, %115 : vector<128x256xf32>
    %cst_83 = arith.constant dense<0.000000e+00> : vector<16x256xf32>
    %117 = tpu.matmul %4, %116, %cst_83 {dimension_numbers = #tpu.dot_dimension_numbers<[1], [0], [0], [1], [0, 0, 1, 1], [], []>} : vector<16x128xf32>, vector<128x256xf32>, vector<16x256xf32> -> vector<16x256xf32>
    %c0_84 = arith.constant 0 : index
    %c0_85 = arith.constant 0 : index
    %118 = vector.load %arg11[%c0_84, %c0_85] : memref<256x16xf32, #tpu.memory_space<vmem>>, vector<256x16xf32>
    %cst_86 = arith.constant dense<0.000000e+00> : vector<16x16xf32>
    %119 = tpu.matmul %117, %118, %cst_86 {dimension_numbers = #tpu.dot_dimension_numbers<[1], [0], [0], [1], [0, 0, 1, 1], [], []>} : vector<16x256xf32>, vector<256x16xf32>, vector<16x16xf32> -> vector<16x16xf32>
    %c0_87 = arith.constant 0 : index
    %c0_88 = arith.constant 0 : index
    %120 = vector.load %arg24[%c0_87, %c0_88] : memref<64x16xf32, #tpu.memory_space<vmem>>, vector<64x16xf32>
    %cst_89 = arith.constant dense<0.000000e+00> : vector<16x16xf32>
    %121 = tpu.matmul %110, %120, %cst_89 {dimension_numbers = #tpu.dot_dimension_numbers<[1], [0], [0], [1], [0, 0, 1, 1], [], []>} : vector<16x64xf32>, vector<64x16xf32>, vector<16x16xf32> -> vector<16x16xf32>
    %122 = arith.addf %119, %121 : vector<16x16xf32>
    %123 = vector.extract_strided_slice %122 {offsets = [0, 0], sizes = [8, 16], strides = [1, 1]} : vector<16x16xf32> to vector<8x16xf32>
    %cst_90 = arith.constant dense<0xFF800000> : vector<16xf32>
    %124 = vector.multi_reduction <maximumf>, %123, %cst_90 [0] : vector<8x16xf32> to vector<16xf32>
    %125 = vector.shape_cast %124 : vector<16xf32> to vector<1x16xf32>
    %126 = vector.extract_strided_slice %122 {offsets = [8, 0], sizes = [8, 16], strides = [1, 1]} : vector<16x16xf32> to vector<8x16xf32>
    %cst_91 = arith.constant dense<0xFF800000> : vector<16xf32>
    %127 = vector.multi_reduction <maximumf>, %126, %cst_91 [0] : vector<8x16xf32> to vector<16xf32>
    %128 = vector.shape_cast %127 : vector<16xf32> to vector<1x16xf32>
    %129 = tpu.concatenate %125, %128 in 0 : vector<1x16xf32>, vector<1x16xf32> -> vector<2x16xf32>
    %c0_92 = arith.constant 0 : index
    %c0_93 = arith.constant 0 : index
    %130 = vector.load %arg29[%c0_92, %c0_93] : memref<16x16xf32, #tpu.memory_space<vmem>>, vector<16x16xf32>
    %cst_94 = arith.constant dense<0.000000e+00> : vector<2x16xf32>
    %131 = tpu.matmul %129, %130, %cst_94 {dimension_numbers = #tpu.dot_dimension_numbers<[1], [0], [0], [1], [0, 0, 1, 1], [], []>} : vector<2x16xf32>, vector<16x16xf32>, vector<2x16xf32> -> vector<2x16xf32>
    %c0_95 = arith.constant 0 : index
    %c0_96 = arith.constant 0 : index
    %132 = vector.load %arg30[%c0_95, %c0_96] : memref<1x16xf32, #tpu.memory_space<vmem>>, vector<1x16xf32>
    %133 = vector.broadcast %132 : vector<1x16xf32> to vector<2x16xf32>
    %134 = arith.addf %131, %133 : vector<2x16xf32>
    %cst_97 = arith.constant 0.000000e+00 : f32
    %135 = vector.broadcast %cst_97 : f32 to vector<2x16xf32>
    %136 = arith.maximumf %134, %135 : vector<2x16xf32>
    %c0_98 = arith.constant 0 : index
    %c0_99 = arith.constant 0 : index
    %137 = vector.load %arg31[%c0_98, %c0_99] : memref<16x1xf32, #tpu.memory_space<vmem>>, vector<16x1xf32>
    %cst_100 = arith.constant dense<0.000000e+00> : vector<2x1xf32>
    %138 = tpu.matmul %136, %137, %cst_100 {dimension_numbers = #tpu.dot_dimension_numbers<[1], [0], [0], [1], [0, 0, 1, 1], [], []>} : vector<2x16xf32>, vector<16x1xf32>, vector<2x1xf32> -> vector<2x1xf32>
    %c0_101 = arith.constant 0 : index
    %c0_102 = arith.constant 0 : index
    %139 = vector.load %arg32[%c0_101, %c0_102] : memref<1x1xf32, #tpu.memory_space<vmem>>, vector<1x1xf32>
    %140 = vector.broadcast %139 : vector<1x1xf32> to vector<2x1xf32>
    %141 = arith.addf %138, %140 : vector<2x1xf32>
    %c0_103 = arith.constant 0 : index
    %c0_104 = arith.constant 0 : index
    %142 = vector.load %arg33[%c0_103, %c0_104] : memref<2x1xf32, #tpu.memory_space<vmem>>, vector<2x1xf32>
    tpu.vector_store %arg33[%c0_103, %c0_104], %141 {strides = array<i32>} : memref<2x1xf32, #tpu.memory_space<vmem>>, vector<2x1xf32>,
    return
  }
}

</mosaic_0001>

<bundles_post_ra>
// kernel: tile.25
= control target key start
LH: loop header
LB: loop body
LE: loop exit
PB: predicated region body
PF: predicated region fallthrough
CT: control target
= control target key end

     0   :  { %s56_s0 = inlined_call_operand.vmem [shape: f32[128,4,7], index: 0, kind: input, shape index: {}]   ;;  %s57_s1 = inlined_call_operand.vmem [shape: f32[128,28], index: 1, kind: output, shape index: {}]  }
   0x1   :  { %v2_v0 = vld [vmem:[%s56_s0] sm:$0x7f]   ;;  %v16_v1 = vld [vmem:[%s56_s0 + $0x8] sm:$0x7f]   ;;  %v18_v2 = vld [vmem:[%s56_s0 + $0x10] sm:$0x7f]  }
   0x2   :  { %3 = vst [vmem:[%s57_s1] sm:$0x7f] %v2_v0   ;;  %17 = vst [vmem:[%s57_s1 + $0x7] sm:$0x7f] %v16_v1   ;;  %v20_v3 = vld [vmem:[%s56_s0 + $0x18] sm:$0x7f]  }
   0x3   :  { %19 = vst [vmem:[%s57_s1 + $0xe] sm:$0x7f] %v18_v2   ;;  %21 = vst [vmem:[%s57_s1 + $0x15] sm:$0x7f] %v20_v3  }

// kernel: tile.21
= control target key start
LH: loop header
LB: loop body
LE: loop exit
PB: predicated region body
PF: predicated region fallthrough
CT: control target
= control target key end

     0   :  { %s56_s0 = inlined_call_operand.vmem [shape: f32[128,4,5], index: 0, kind: input, shape index: {}]   ;;  %s57_s1 = inlined_call_operand.vmem [shape: f32[128,20], index: 1, kind: output, shape index: {}]  }
   0x1   :  { %v2_v0 = vld [vmem:[%s56_s0] sm:$0x1f]   ;;  %v16_v1 = vld [vmem:[%s56_s0 + $0x8] sm:$0x1f]   ;;  %v18_v2 = vld [vmem:[%s56_s0 + $0x10] sm:$0x1f]  }
   0x2   :  { %3 = vst [vmem:[%s57_s1] sm:$0x1f] %v2_v0   ;;  %17 = vst [vmem:[%s57_s1 + $0x5] sm:$0x1f] %v16_v1   ;;  %v20_v3 = vld [vmem:[%s56_s0 + $0x18] sm:$0x1f]  }
   0x3   :  { %19 = vst [vmem:[%s57_s1 + $0xa] sm:$0x1f] %v18_v2   ;;  %21 = vst [vmem:[%s57_s1 + $0xf] sm:$0x1f] %v20_v3  }

// kernel: tile.17
= control target key start
LH: loop header
LB: loop body
LE: loop exit
PB: predicated region body
PF: predicated region fallthrough
CT: control target
= control target key end

     0   :  { %s77_s0 = inlined_call_operand.vmem [shape: f32[128,4,3], index: 0, kind: input, shape index: {}]   ;;  %s78_s1 = inlined_call_operand.vmem [shape: f32[128,12], index: 1, kind: output, shape index: {}]  }
   0x1   :  { %v37_v0 = vld [vmem:[%s77_s0 + $0xc] sm:$0xf]  ;;  %v38_v1 = vld [vmem:[%s77_s0 + $0x8] sm:$0xf]  ;;  %v39_v2 = vld [vmem:[%s77_s0 + $0x4] sm:$0xf] }
   0x2   :  { %9 = vst [vmem:[#allocation0 + $0x8] sm:$0xf] %v37_v0  ;;  %14 = vst [vmem:[#allocation0 + $0x18] sm:$0xf] %v38_v1  ;;  %v19_v3 = vld [vmem:[%s77_s0] sm:$0xf] }
   0x3   :  { %18 = vst [vmem:[#allocation0] sm:$0xf] %v39_v2  ;;  %20 = vst [vmem:[#allocation0 + $0x10] sm:$0xf] %v19_v3 }
   0x9   :  { %v28_v5 = vld [vmem:[#allocation0 + $0x18] sm:$0x7]   ;;  %v32_v6 = vld [vmem:[#allocation0 + $0x8] sm:$0x7]  }
   0xa   :  { %v24_v4 = vld [vmem:[#allocation0] sm:$0x7]   ;;  %v21_v7 = vld [vmem:[#allocation0 + $0x10] sm:$0x7]   ;;  %41 = vst [vmem:[%s78_s1 + $0x6] sm:$0x7] %v28_v5  }
   0xb   :  { %40 = vst [vmem:[%s78_s1 + $0x3] sm:$0x7] %v24_v4   ;;  %42 = vst [vmem:[%s78_s1 + $0x9] sm:$0x7] %v32_v6  }
   0xc   :  { %22 = vst [vmem:[%s78_s1] sm:$0x7] %v21_v7  }

// kernel: tile.13
= control target key start
LH: loop header
LB: loop body
LE: loop exit
PB: predicated region body
PF: predicated region fallthrough
CT: control target
= control target key end

     0   :  { %s20_s0 = inlined_call_operand.<no memory space> [shape: f32[], index: 0, kind: input, shape index: {}]   ;;  %s21_s1 = inlined_call_operand.vmem [shape: f32[4], index: 1, kind: output, shape index: {}]  }
   0x1   :  { %v2_v0 = vstv %s20_s0 }
   0x2   :  { %3 = vst [vmem:[%s21_s1] sm:$0x1] %v2_v0 }

// kernel: tfn_forward.1
= control target key start
LH: loop header
LB: loop body
LE: loop exit
PB: predicated region body
PF: predicated region fallthrough
CT: control target
= control target key end

     0   :  { %s6084_s3 = smov 13   ;;  %v8656_v0 = vmov 0.0   ;;  %s6086_s7 = smov 1   ;;  %vm329_vm0 = vcmask 1044480   ;;  %vm280_vm1 = vcmask 39936   ;;  %vm2549_vm2 = vcmask 130048   ;;  %s8655_s0 = inlined_call_operand.smem [shape: u32[34], index: -1, kind: input, shape index: {}] }
   0x1   :  { %s5036_s6 = sld [smem:[%s8655_s0 + %s6084_s3]]   ;;  %400 = vmatprep.mubr.f32.mxu0 %v8656_v0  ;;  %s6087_s11 = smov 12   ;;  %vm2793_vm3 = vcmask 1045504   ;;  %vm2744_vm4 = vcmask 48128   ;;  %vm3490_vm5 = vcmask 523264   ;;  %vm6114_vm10 = vmmov 0  }
   0x2   :  { %s6131_s10 = sld [smem:[%s8655_s0 + %s6086_s7]]   ;;  %s6088_s15 = smov 17   ;;  %vm4851_vm11 = vcmask 1040384   ;;  %vm5018_vm12 = vcmask 1024  }
   0x3   :  { %s6136_s14 = sld [smem:[%s8655_s0 + %s6087_s11]]   ;;  %s6089_s19 = smov 14  }
   0x4   :  { %s6509_s18 = sld [smem:[%s8655_s0 + %s6088_s15]]   ;;  %s6090_s23 = smov 15  }
   0x5   :  { %s5037_s22 = sld [smem:[%s8655_s0 + %s6089_s19]]   ;;  %s6091_s27 = smov 16  }
   0x6   :  { %s5038_s26 = sld [smem:[%s8655_s0 + %s6090_s23]]   ;;  %s6092_s1 = smov 21  }
   0x7   :  { %v267_v1 = vld [vmem:[%s5036_s6 + $0x8] sm:$0x1f]  ;;  %v266_v2 = vld [vmem:[%s5036_s6] sm:$0x1f]  ;;  %s5039_s30 = sld [smem:[%s8655_s0 + %s6091_s27]]   ;;  %s6093_s5 = smov 18  }
   0x8   :  { %5057 = vmatprep.subr.msk.mxu0 %vm329_vm0, %v267_v1  ;;  %v142_v3 = vld [vmem:[%s6131_s10] sm:$0xff]  ;;  %v143_v4 = vld [vmem:[%s6131_s10 + $0x8] sm:$0xff]  ;;  %v144_v9 = vld [vmem:[%s6131_s10 + $0x10] sm:$0xff]  ;;  %s7284_s4 = sld [smem:[%s8655_s0 + %s6092_s1]]   ;;  %s6094_s12 = smov 19  }
   0x9   :  { %5058 = vmatpush1.msk.msra.mxu0 %vm329_vm0, %v266_v2  ;;  %v6143_v5 = vld [vmem:[%s6136_s14 + $0xf8] sm:$0xff]  ;;  %v6146_v6 = vld [vmem:[%s6136_s14 + $0xf0] sm:$0xff]  ;;  %v6151_v7 = vld [vmem:[%s6136_s14 + $0xe8] sm:$0xff]  ;;  %s5041_s8 = sld [smem:[%s8655_s0 + %s6093_s5]]   ;;  %s6095_s16 = smov 20  }
   0xa   :  { %5059 = vmatmul.mubr.msk.f32.vlgmr.msra.gmra.mxu0 %vm280_vm1, %v142_v3  ;;  %499 = vmatprep.subr.mxu1 %v6143_v5  ;;  %v6154_v8 = vld [vmem:[%s6136_s14 + $0xe0] sm:$0xff]  ;;  %v6160_v10 = vld [vmem:[%s6136_s14 + $0xd8] sm:$0xff]  ;;  %v6167_v11 = vld [vmem:[%s6136_s14 + $0xd0] sm:$0xff]  ;;  %s7586_s11 = sld [smem:[%s8655_s0]]   ;;  %s6096_s20 = smov 3  }
   0xb   :  { %406 = vmatprep.mubr.f32.mxu0 %v8656_v0  ;;  %500 = vmatpush1.msra.mxu1 %v6146_v6  ;;  %v6172_v12 = vld [vmem:[%s6136_s14 + $0xc8] sm:$0xff]  ;;  %v145_v13 = vld [vmem:[%s6131_s10 + $0x18] sm:$0xff]  ;;  %v6178_v14 = vld [vmem:[%s6136_s14 + $0xc0] sm:$0xff]  ;;  %s5042_s15 = sld [smem:[%s8655_s0 + %s6094_s12]]   ;;  %s6097_s24 = smov 5  }
   0xc   :  { %501 = vmatprep.subr.mxu1 %v6151_v7  ;;  %692 = vmatprep.subr.mxu0 %v6143_v5  ;;  %v6185_v15 = vld [vmem:[%s6136_s14 + $0xb8] sm:$0xff]  ;;  %v6190_v16 = vld [vmem:[%s6136_s14 + $0xb0] sm:$0xff]  ;;  %v146_v17 = vld [vmem:[%s6131_s10 + $0x20] sm:$0xff]  ;;  %s5043_s19 = sld [smem:[%s8655_s0 + %s6095_s16]]   ;;  %s6098_s28 = smov 6  }
   0xd   :  { %502 = vmatpush1.msra.mxu1 %v6154_v8  ;;  %693 = vmatpush1.msra.mxu0 %v6146_v6  ;;  %v6196_v18 = vld [vmem:[%s6136_s14 + $0xa8] sm:$0xff]  ;;  %v6203_v19 = vld [vmem:[%s6136_s14 + $0xa0] sm:$0xff]  ;;  %v6208_v20 = vld [vmem:[%s6136_s14 + $0x98] sm:$0xff]  ;;  %s7908_s23 = sld [smem:[%s8655_s0 + %s6096_s20]]   ;;  %s6099_s2 = smov 7  }
   0xe   :  { %5060 = vmatmul.mubr.msk.f32.gmra.mxu0 %vm280_vm1, %v143_v4  ;;  %503 = vmatprep.subr.mxu1 %v6160_v10  ;;  %v147_v21 = vld [vmem:[%s6131_s10 + $0x28] sm:$0xff]  ;;  %v6214_v22 = vld [vmem:[%s6136_s14 + $0x90] sm:$0xff]  ;;  %v6226_v24 = vld [vmem:[%s6136_s14 + $0x80] sm:$0xff]  ;;  %s5028_s27 = sld [smem:[%s8655_s0 + %s6097_s24]]   ;;  %s6100_s6 = smov 22  }
   0xf   :  { %412 = vmatprep.mubr.f32.mxu0 %v8656_v0  ;;  %694 = vmatprep.subr.mxu0 %v6151_v7  ;;  %v6221_v23 = vld [vmem:[%s6136_s14 + $0x88] sm:$0xff]  ;;  %v148_v25 = vld [vmem:[%s6131_s10 + $0x30] sm:$0xff]  ;;  %v6232_v26 = vld [vmem:[%s6136_s14 + $0x78] sm:$0xff]  ;;  %s7954_s1 = sld [smem:[%s8655_s0 + %s6098_s28]]   ;;  %s6112_s25 = smov 11  }
  0x10   :  { %504 = vmatpush1.msra.mxu1 %v6167_v11  ;;  %695 = vmatpush1.msra.mxu0 %v6154_v8  ;;  %v6239_v27 = vld [vmem:[%s6136_s14 + $0x70] sm:$0xff]  ;;  %v6244_v28 = vld [vmem:[%s6136_s14 + $0x68] sm:$0xff]  ;;  %v149_v29 = vld [vmem:[%s6131_s10 + $0x38] sm:$0xff]  ;;  %s5030_s5 = sld [smem:[%s8655_s0 + %s6099_s2]]   ;;  %s6113_s29 = smov 29  }
  0x11   :  { %505 = vmatprep.subr.mxu1 %v6172_v12  ;;  %696 = vmatprep.subr.mxu0 %v6160_v10  ;;  %v6250_v30 = vld [vmem:[%s6136_s14 + $0x60] sm:$0xff]  ;;  %v6257_v31 = vld [vmem:[%s6136_s14 + $0x58] sm:$0xff]  ;;  %v6262_v32 = vld [vmem:[%s6136_s14 + $0x50] sm:$0xff]  ;;  %s5045_s9 = sld [smem:[%s8655_s0 + %s6100_s6]]   ;;  %s6115_s3 = smov 31  }
  0x12   :  { %5061 = vmatmul.mubr.msk.f32.gmra.mxu0 %vm280_vm1, %v144_v9  ;;  %506 = vmatpush1.msra.mxu1 %v6178_v14  ;;  %v150_v33 = vld [vmem:[%s6131_s10 + $0x40] sm:$0xff]  ;;  %v6268_v34 = vld [vmem:[%s6136_s14 + $0x48] sm:$0xff]  ;;  %v6280_v36 = vld [vmem:[%s6136_s14 + $0x38] sm:$0xff]  ;;  %s8590_s28 = sld [smem:[%s8655_s0 + %s6112_s25]]   ;;  %s6116_s7 = smov 32  }
  0x13   :  { %418 = vmatprep.mubr.f32.mxu0 %v8656_v0  ;;  %697 = vmatpush1.msra.mxu0 %v6167_v11  ;;  %v6275_v35 = vld [vmem:[%s6136_s14 + $0x40] sm:$0xff]  ;;  %v151_v37 = vld [vmem:[%s6131_s10 + $0x48] sm:$0xff]  ;;  %v6286_v38 = vld [vmem:[%s6136_s14 + $0x30] sm:$0xff]  ;;  %s5052_s2 = sld [smem:[%s8655_s0 + %s6113_s29]]   ;;  %s6117_s12 = smov 30  }
  0x14   :  { %507 = vmatprep.subr.mxu1 %v6185_v15  ;;  %698 = vmatprep.subr.mxu0 %v6172_v12  ;;  %v6293_v39 = vld [vmem:[%s6136_s14 + $0x28] sm:$0xff]  ;;  %v6298_v40 = vld [vmem:[%s6136_s14 + $0x20] sm:$0xff]  ;;  %v152_v41 = vld [vmem:[%s6131_s10 + $0x50] sm:$0xff]  ;;  %s5054_s6 = sld [smem:[%s8655_s0 + %s6115_s3]]   ;;  %s6118_s16 = smov 33  }
  0x15   :  { %508 = vmatpush1.msra.mxu1 %v6190_v16  ;;  %699 = vmatpush1.msra.mxu0 %v6178_v14  ;;  %v6304_v42 = vld [vmem:[%s6136_s14 + $0x18] sm:$0xff]  ;;  %v6311_v43 = vld [vmem:[%s6136_s14 + $0x10] sm:$0xff]  ;;  %v6316_v44 = vld [vmem:[%s6136_s14 + $0x8] sm:$0xff] }
  0x16   :  { %5062 = vmatmul.mubr.msk.f32.gmra.mxu0 %vm280_vm1, %v145_v13  ;;  %509 = vmatprep.subr.mxu1 %v6196_v18  ;;  %v153_v45 = vld [vmem:[%s6131_s10 + $0x58] sm:$0xff]  ;;  %v6322_v46 = vld [vmem:[%s6136_s14] sm:$0xff]  ;;  %v6334_v48 = vld [vmem:[%s6136_s14 + $0x1f0] sm:$0xff] }
  0x17   :  { %424 = vmatprep.mubr.f32.mxu0 %v8656_v0  ;;  %700 = vmatprep.subr.mxu0 %v6185_v15  ;;  %v6329_v47 = vld [vmem:[%s6136_s14 + $0x1f8] sm:$0xff]  ;;  %v154_v49 = vld [vmem:[%s6131_s10 + $0x60] sm:$0xff]  ;;  %v6340_v50 = vld [vmem:[%s6136_s14 + $0x1e8] sm:$0xff] }
  0x18   :  { %510 = vmatpush1.msra.mxu1 %v6203_v19  ;;  %701 = vmatpush1.msra.mxu0 %v6190_v16  ;;  %v6347_v51 = vld [vmem:[%s6136_s14 + $0x1e0] sm:$0xff]  ;;  %v6352_v52 = vld [vmem:[%s6136_s14 + $0x1d8] sm:$0xff]  ;;  %v155_v53 = vld [vmem:[%s6131_s10 + $0x68] sm:$0xff] }
  0x19   :  { %511 = vmatprep.subr.mxu1 %v6208_v20  ;;  %702 = vmatprep.subr.mxu0 %v6196_v18  ;;  %v6358_v54 = vld [vmem:[%s6136_s14 + $0x1d0] sm:$0xff]  ;;  %v6365_v55 = vld [vmem:[%s6136_s14 + $0x1c8] sm:$0xff]  ;;  %v6370_v56 = vld [vmem:[%s6136_s14 + $0x1c0] sm:$0xff] }
  0x1a   :  { %5063 = vmatmul.mubr.msk.f32.gmra.mxu0 %vm280_vm1, %v146_v17  ;;  %512 = vmatpush1.msra.mxu1 %v6214_v22  ;;  %v156_v57 = vld [vmem:[%s6131_s10 + $0x70] sm:$0xff]  ;;  %v6376_v58 = vld [vmem:[%s6136_s14 + $0x1b8] sm:$0xff]  ;;  %v6388_v60 = vld [vmem:[%s6136_s14 + $0x1a8] sm:$0xff] }
  0x1b   :  { %430 = vmatprep.mubr.f32.mxu0 %v8656_v0  ;;  %703 = vmatpush1.msra.mxu0 %v6203_v19  ;;  %v6383_v59 = vld [vmem:[%s6136_s14 + $0x1b0] sm:$0xff]  ;;  %v157_v61 = vld [vmem:[%s6131_s10 + $0x78] sm:$0xff]  ;;  %v6394_v62 = vld [vmem:[%s6136_s14 + $0x1a0] sm:$0xff]  ;;  %s6101_s10 = smov 23  }
  0x1c   :  { %513 = vmatprep.subr.mxu1 %v6221_v23  ;;  %704 = vmatprep.subr.mxu0 %v6208_v20  ;;  %v6399_v63 = vld [vmem:[%s6136_s14 + $0x198] sm:$0xff]  ;;  %v6404_v1 = vld [vmem:[%s6136_s14 + $0x190] sm:$0xff]  ;;  %v6409_v2 = vld [vmem:[%s6136_s14 + $0x188] sm:$0xff] }
  0x1d   :  { %514 = vmatpush1.msra.mxu1 %v6226_v24  ;;  %705 = vmatpush1.msra.mxu0 %v6214_v22  ;;  %v6414_v3 = vld [vmem:[%s6136_s14 + $0x180] sm:$0xff]  ;;  %v6419_v4 = vld [vmem:[%s6136_s14 + $0x178] sm:$0xff]  ;;  %v6424_v9 = vld [vmem:[%s6136_s14 + $0x170] sm:$0xff] }
  0x1e   :  { %5064 = vmatmul.mubr.msk.f32.gmra.mxu0 %vm280_vm1, %v147_v21  ;;  %515 = vmatprep.subr.mxu1 %v6232_v26  ;;  %8720 = vst [vmem:[#allocation3_spill] sm:$0xff] %v6424_v9  ;;  %v6429_v13 = vld [vmem:[%s6136_s14 + $0x168] sm:$0xff]  ;;  %v6434_v17 = vld [vmem:[%s6136_s14 + $0x160] sm:$0xff]  ;;  %v6439_v21 = vld [vmem:[%s6136_s14 + $0x158] sm:$0xff] }
  0x1f   :  { %436 = vmatprep.mubr.f32.mxu0 %v8656_v0  ;;  %706 = vmatprep.subr.mxu0 %v6221_v23  ;;  %8721 = vst [vmem:[#allocation4_spill] sm:$0xff] %v6429_v13  ;;  %8722 = vst [vmem:[#allocation5_spill] sm:$0xff] %v6434_v17 }
  0x20   :  { %516 = vmatpush1.msra.mxu1 %v6239_v27  ;;  %707 = vmatpush1.msra.mxu0 %v6226_v24  ;;  %8723 = vst [vmem:[#allocation6_spill] sm:$0xff] %v6439_v21 }
  0x21   :  { %517 = vmatprep.subr.mxu1 %v6244_v28  ;;  %708 = vmatprep.subr.mxu0 %v6232_v26 }
  0x22   :  { %5065 = vmatmul.mubr.msk.f32.gmra.mxu0 %vm280_vm1, %v148_v25  ;;  %518 = vmatpush1.msra.mxu1 %v6250_v30  ;;  %v6444_v25 = vld [vmem:[%s6136_s14 + $0x150] sm:$0xff] }
  0x23   :  { %442 = vmatprep.mubr.f32.mxu0 %v8656_v0  ;;  %709 = vmatpush1.msra.mxu0 %v6239_v27  ;;  %8724 = vst [vmem:[#allocation7_spill] sm:$0xff] %v6444_v25 }
  0x24   :  { %519 = vmatprep.subr.mxu1 %v6257_v31  ;;  %710 = vmatprep.subr.mxu0 %v6244_v28 }
  0x25   :  { %520 = vmatpush1.msra.mxu1 %v6262_v32  ;;  %711 = vmatpush1.msra.mxu0 %v6250_v30 }
  0x26   :  { %5066 = vmatmul.mubr.msk.f32.gmra.mxu0 %vm280_vm1, %v149_v29  ;;  %521 = vmatprep.subr.mxu1 %v6268_v34  ;;  %v6449_v29 = vld [vmem:[%s6136_s14 + $0x148] sm:$0xff] }
  0x27   :  { %448 = vmatprep.mubr.f32.mxu0 %v8656_v0  ;;  %712 = vmatprep.subr.mxu0 %v6257_v31  ;;  %8725 = vst [vmem:[#allocation8_spill] sm:$0xff] %v6449_v29 }
  0x28   :  { %522 = vmatpush1.msra.mxu1 %v6275_v35  ;;  %713 = vmatpush1.msra.mxu0 %v6262_v32 }
  0x29   :  { %523 = vmatprep.subr.mxu1 %v6280_v36  ;;  %714 = vmatprep.subr.mxu0 %v6268_v34 }
  0x2a   :  { %5067 = vmatmul.mubr.msk.f32.gmra.mxu0 %vm280_vm1, %v150_v33  ;;  %524 = vmatpush1.msra.mxu1 %v6286_v38  ;;  %v6454_v33 = vld [vmem:[%s6136_s14 + $0x140] sm:$0xff] }
  0x2b   :  { %454 = vmatprep.mubr.f32.mxu0 %v8656_v0  ;;  %715 = vmatpush1.msra.mxu0 %v6275_v35  ;;  %8726 = vst [vmem:[#allocation9_spill] sm:$0xff] %v6454_v33 }
  0x2c   :  { %525 = vmatprep.subr.mxu1 %v6293_v39  ;;  %716 = vmatprep.subr.mxu0 %v6280_v36 }
  0x2d   :  { %526 = vmatpush1.msra.mxu1 %v6298_v40  ;;  %717 = vmatpush1.msra.mxu0 %v6286_v38 }
  0x2e   :  { %5068 = vmatmul.mubr.msk.f32.gmra.mxu0 %vm280_vm1, %v151_v37  ;;  %527 = vmatprep.subr.mxu1 %v6304_v42  ;;  %v6459_v37 = vld [vmem:[%s6136_s14 + $0x138] sm:$0xff] }
  0x2f   :  { %460 = vmatprep.mubr.f32.mxu0 %v8656_v0  ;;  %718 = vmatprep.subr.mxu0 %v6293_v39  ;;  %8727 = vst [vmem:[#allocation10_spill] sm:$0xff] %v6459_v37 }
  0x30   :  { %528 = vmatpush1.msra.mxu1 %v6311_v43  ;;  %719 = vmatpush1.msra.mxu0 %v6298_v40 }
  0x31   :  { %529 = vmatprep.subr.mxu1 %v6316_v44  ;;  %720 = vmatprep.subr.mxu0 %v6304_v42 }
  0x32   :  { %5069 = vmatmul.mubr.msk.f32.gmra.mxu0 %vm280_vm1, %v152_v41  ;;  %530 = vmatpush1.msra.mxu1 %v6322_v46  ;;  %v6464_v41 = vld [vmem:[%s6136_s14 + $0x130] sm:$0xff] }
  0x33   :  { %466 = vmatprep.mubr.f32.mxu0 %v8656_v0  ;;  %721 = vmatpush1.msra.mxu0 %v6311_v43  ;;  %8728 = vst [vmem:[#allocation11_spill] sm:$0xff] %v6464_v41 }
  0x34   :  { %531 = vmatprep.subr.mxu1 %v6329_v47  ;;  %722 = vmatprep.subr.mxu0 %v6316_v44 }
  0x35   :  { %532 = vmatpush2.msra.mxu1 %v6334_v48  ;;  %723 = vmatpush1.msra.mxu0 %v6322_v46 }
  0x36   :  { %5070 = vmatmul.mubr.msk.f32.gmra.mxu0 %vm280_vm1, %v153_v45  ;;  %533 = vmatprep.subr.mxu1 %v6340_v50  ;;  %v6469_v45 = vld [vmem:[%s6136_s14 + $0x128] sm:$0xff] }
  0x37   :  { %472 = vmatprep.mubr.f32.mxu0 %v8656_v0  ;;  %724 = vmatprep.subr.mxu0 %v6329_v47  ;;  %8729 = vst [vmem:[#allocation12_spill] sm:$0xff] %v6469_v45 }
  0x38   :  { %534 = vmatpush2.msra.mxu1 %v6347_v51  ;;  %725 = vmatpush2.msra.mxu0 %v6334_v48 }
  0x39   :  { %535 = vmatprep.subr.mxu1 %v6352_v52  ;;  %726 = vmatprep.subr.mxu0 %v6340_v50 }
  0x3a   :  { %5071 = vmatmul.mubr.msk.f32.gmra.mxu0 %vm280_vm1, %v154_v49  ;;  %536 = vmatpush2.msra.mxu1 %v6358_v54  ;;  %v6474_v49 = vld [vmem:[%s6136_s14 + $0x120] sm:$0xff] }
  0x3b   :  { %478 = vmatprep.mubr.f32.mxu0 %v8656_v0  ;;  %727 = vmatpush2.msra.mxu0 %v6347_v51  ;;  %8730 = vst [vmem:[#allocation13_spill] sm:$0xff] %v6474_v49 }
  0x3c   :  { %537 = vmatprep.subr.mxu1 %v6365_v55  ;;  %728 = vmatprep.subr.mxu0 %v6352_v52 }
  0x3d   :  { %538 = vmatpush2.msra.mxu1 %v6370_v56  ;;  %729 = vmatpush2.msra.mxu0 %v6358_v54 }
  0x3e   :  { %5072 = vmatmul.mubr.msk.f32.gmra.mxu0 %vm280_vm1, %v155_v53  ;;  %539 = vmatprep.subr.mxu1 %v6376_v58  ;;  %v6479_v53 = vld [vmem:[%s6136_s14 + $0x118] sm:$0xff] }
  0x3f   :  { %484 = vmatprep.mubr.f32.mxu0 %v8656_v0  ;;  %730 = vmatprep.subr.mxu0 %v6365_v55  ;;  %8731 = vst [vmem:[#allocation14_spill] sm:$0xff] %v6479_v53 }
  0x40   :  { %540 = vmatpush2.msra.mxu1 %v6383_v59  ;;  %731 = vmatpush2.msra.mxu0 %v6370_v56 }
  0x41   :  { %541 = vmatprep.subr.mxu1 %v6388_v60  ;;  %732 = vmatprep.subr.mxu0 %v6376_v58 }
  0x42   :  { %5073 = vmatmul.mubr.msk.f32.gmra.mxu0 %vm280_vm1, %v156_v57  ;;  %542 = vmatpush2.msra.mxu1 %v6394_v62  ;;  %v6484_v57 = vld [vmem:[%s6136_s14 + $0x110] sm:$0xff] }
  0x43   :  { %490 = vmatprep.mubr.f32.mxu0 %v8656_v0  ;;  %733 = vmatpush2.msra.mxu0 %v6383_v59  ;;  %8732 = vst [vmem:[#allocation15_spill] sm:$0xff] %v6484_v57  ;;  %v6494_v0 = vld [vmem:[%s6136_s14 + $0x100] sm:$0xff] }
  0x44   :  { %543 = vmatprep.subr.mxu1 %v6399_v63  ;;  %734 = vmatprep.subr.mxu0 %v6388_v60  ;;  %8734 = vst [vmem:[#allocation17_spill] sm:$0xff] %v6494_v0 }
  0x45   :  { %544 = vmatpush2.msra.mxu1 %v6404_v1  ;;  %735 = vmatpush2.msra.mxu0 %v6394_v62 }
  0x46   :  { %5074 = vmatmul.mubr.msk.f32.gmra.mxu0 %vm280_vm1, %v157_v61  ;;  %545 = vmatprep.subr.mxu1 %v6409_v2  ;;  %v6489_v61 = vld [vmem:[%s6136_s14 + $0x108] sm:$0xff] }
  0x47   :  { %736 = vmatprep.subr.mxu0 %v6399_v63  ;;  %546 = vmatpush2.msra.mxu1 %v6414_v3  ;;  %8733 = vst [vmem:[#allocation16_spill] sm:$0xff] %v6489_v61 }
  0x48   :  { %737 = vmatpush2.msra.mxu0 %v6404_v1  ;;  %547 = vmatprep.subr.mxu1 %v6419_v4 }
  0x49   :  { %738 = vmatprep.subr.mxu0 %v6409_v2  ;;  %548 = vmatpush2.msra.mxu1 %v6424_v9 }
  0x4a   :  { %739 = vmatpush2.msra.mxu0 %v6414_v3  ;;  %549 = vmatprep.subr.mxu1 %v6429_v13 }
  0x4b   :  { %740 = vmatprep.subr.mxu0 %v6419_v4  ;;  %550 = vmatpush2.msra.mxu1 %v6434_v17 }
  0x4c   :  { %741 = vmatpush2.msra.mxu0 %v6424_v9  ;;  %551 = vmatprep.subr.mxu1 %v6439_v21 }
  0x4d   :  { %742 = vmatprep.subr.mxu0 %v6429_v13  ;;  %552 = vmatpush2.msra.mxu1 %v6444_v25  ;;  %v1221_v13 = vld [vmem:[%s6509_s18 + $0xd0] sm:$0xff] }
  0x4e   :  { %743 = vmatpush2.msra.mxu0 %v6434_v17  ;;  %553 = vmatprep.subr.mxu1 %v6449_v29  ;;  %v1222_v17 = vld [vmem:[%s6509_s18 + $0xd8] sm:$0xff] }
  0x4f   :  { %744 = vmatprep.subr.mxu0 %v6439_v21  ;;  %554 = vmatpush2.msra.mxu1 %v6454_v33 }
  0x50   :  { %745 = vmatpush2.msra.mxu0 %v6444_v25  ;;  %555 = vmatprep.subr.mxu1 %v6459_v37  ;;  %v1225_v25 = vld [vmem:[%s6509_s18 + $0xf0] sm:$0xff] }
  0x51   :  { %746 = vmatprep.subr.mxu0 %v6449_v29  ;;  %556 = vmatpush2.msra.mxu1 %v6464_v41 }
  0x52   :  { %747 = vmatpush2.msra.mxu0 %v6454_v33  ;;  %557 = vmatprep.subr.mxu1 %v6469_v45 }
  0x53   :  { %748 = vmatprep.subr.mxu0 %v6459_v37  ;;  %558 = vmatpush2.msra.mxu1 %v6474_v49 }
  0x54   :  { %749 = vmatpush2.msra.mxu0 %v6464_v41  ;;  %559 = vmatprep.subr.mxu1 %v6479_v53 }
  0x55   :  { %750 = vmatprep.subr.mxu0 %v6469_v45  ;;  %560 = vmatpush2.msra.mxu1 %v6484_v57 }
  0x56   :  { %751 = vmatpush2.msra.mxu0 %v6474_v49  ;;  %561 = vmatprep.subr.mxu1 %v6489_v61  ;;  %v1226_v49 = vld [vmem:[%s6509_s18 + $0xf8] sm:$0xff] }
  0x57   :  { %752 = vmatprep.subr.mxu0 %v6479_v53  ;;  %562 = vmatpush2.msra.mxu1 %v6494_v0  ;;  %v270_v53 = vlaneseq }
  0x58   :  { %753 = vmatpush2.msra.mxu0 %v6484_v57  ;;  %1271 = vmatprep.subr.mxu1 %v1226_v49 }
  0x59   :  { %754 = vmatprep.subr.mxu0 %v6489_v61  ;;  %v268_v61 = vld [vmem:[%s5037_s22] sm:$0x3] }
  0x5a   :  { %755 = vmatpush2.msra.mxu0 %v6494_v0  ;;  %v6515_v0 = vshrl.u32 %v270_v53, 7 }
  0x5b   :  { %1434 = vmatprep.subr.mxu0 %v6143_v5 }
  0x5c   :  { %8735 = vst [vmem:[#allocation18_spill] sm:$0xff] %v6515_v0  ;;  %v6518_v5 = vsub.s32 0, %v6515_v0  ;;  %v6521_v57 = vsub.s32 1, %v6515_v0 }
  0x5e   :  { %8736 = vst [vmem:[#allocation19_spill] sm:$0xff] %v6518_v5  ;;  %8737 = vst [vmem:[#allocation20_spill] sm:$0xff] %v6521_v57  ;;  %v6524_v45 = vrot.slane %v268_v61, %v6518_v5  ;;  %v6527_v49 = vrot.slane %v268_v61, %v6521_v57  ;;  %v1224_v5 = vld [vmem:[%s6509_s18 + $0xe8] sm:$0xff] }
  0xca   :  { %v402_v41 = vpop.f32.mrf.mxu0 }
  0xcb   :  { %v6530_v37 = vadd.f32 %v402_v41, %v6524_v45 }
  0xcc   :  { %v404_v53 = vpop.f32.mrf.mxu0 }
  0xcd   :  { %8738 = vst [vmem:[#allocation21_spill] sm:$0xff] %v6530_v37  ;;  %v6533_v33 = vadd.f32 %v404_v53, %v6527_v49  ;;  %v660_v61 = vmul.f32 %v6530_v37, %v6530_v37  ;;  %v1223_v53 = vld [vmem:[%s6509_s18 + $0xe0] sm:$0xff] }
  0xce   :  { %v408_v29 = vpop.f32.mrf.mxu0 }
  0xcf   :  { %8739 = vst [vmem:[#allocation22_spill] sm:$0xff] %v6533_v33  ;;  %563 = vmatprep.mubr.f32.mxu1 %v6533_v33  ;;  %v661_v0 = vmul.f32 %v6533_v33, %v6533_v33  ;;  %v6543_v41 = vadd.f32 %v408_v29, %v6524_v45 }
  0xd0   :  { %v410_v57 = vpop.f32.mrf.mxu0  ;;  %564 = vmatmul.mubr.f32.vlgmr.msra.gmra.mxu1 %v6530_v37  ;;  %v1220_v37 = vld [vmem:[%s6509_s18 + $0xc8] sm:$0xff] }
  0xd1   :  { %8740 = vst [vmem:[#allocation23_spill] sm:$0xff] %v6543_v41  ;;  %v6548_v21 = vadd.f32 %v410_v57, %v6527_v49  ;;  %756 = vmatprep.mubr.f32.mxu0 %v661_v0  ;;  %1272 = vmatpush1.msra.mxu1 %v1225_v25  ;;  %v662_v25 = vmul.f32 %v6543_v41, %v6543_v41 }
  0xd2   :  { %v414_v33 = vpop.f32.mrf.mxu0  ;;  %757 = vmatmul.mubr.f32.vlgmr.msra.gmra.mxu0 %v660_v61  ;;  %1273 = vmatprep.subr.mxu1 %v1224_v5  ;;  %v1219_v5 = vld [vmem:[%s6509_s18 + $0xc0] sm:$0xff] }
  0xd3   :  { %8741 = vst [vmem:[#allocation24_spill] sm:$0xff] %v6548_v21  ;;  %569 = vmatprep.mubr.f32.mxu1 %v6548_v21  ;;  %v663_v29 = vmul.f32 %v6548_v21, %v6548_v21  ;;  %1274 = vmatpush1.msra.mxu1 %v1223_v53  ;;  %v6557_v57 = vadd.f32 %v414_v33, %v6524_v45  ;;  %v1218_v53 = vld [vmem:[%s6509_s18 + $0xb8] sm:$0xff]  ;;  %v1217_v33 = vld [vmem:[%s6509_s18 + $0xb0] sm:$0xff] }
  0xd4   :  { %v416_v0 = vpop.f32.mrf.mxu0  ;;  %570 = vmatmul.mubr.f32.gmra.mxu1 %v6543_v41  ;;  %1275 = vmatprep.subr.mxu1 %v1222_v17  ;;  %v1216_v17 = vld [vmem:[%s6509_s18 + $0xa8] sm:$0xff] }
  0xd5   :  { %8742 = vst [vmem:[#allocation25_spill] sm:$0xff] %v6557_v57  ;;  %v6564_v61 = vadd.f32 %v416_v0, %v6527_v49  ;;  %762 = vmatprep.mubr.f32.mxu0 %v663_v29  ;;  %1276 = vmatpush1.msra.mxu1 %v1221_v13  ;;  %v664_v13 = vmul.f32 %v6557_v57, %v6557_v57 }
  0xd6   :  { %v420_v21 = vpop.f32.mrf.mxu0  ;;  %763 = vmatmul.mubr.f32.gmra.mxu0 %v662_v25  ;;  %1277 = vmatprep.subr.mxu1 %v1220_v37  ;;  %v1215_v37 = vld [vmem:[%s6509_s18 + $0xa0] sm:$0xff] }
  0xd7   :  { %8743 = vst [vmem:[#allocation26_spill] sm:$0xff] %v6564_v61  ;;  %575 = vmatprep.mubr.f32.mxu1 %v6564_v61  ;;  %v665_v9 = vmul.f32 %v6564_v61, %v6564_v61  ;;  %1278 = vmatpush1.msra.mxu1 %v1219_v5  ;;  %v6573_v0 = vadd.f32 %v420_v21, %v6524_v45  ;;  %v1214_v5 = vld [vmem:[%s6509_s18 + $0x98] sm:$0xff]  ;;  %v1213_v21 = vld [vmem:[%s6509_s18 + $0x90] sm:$0xff] }
  0xd8   :  { %v422_v29 = vpop.f32.mrf.mxu0  ;;  %576 = vmatmul.mubr.f32.gmra.mxu1 %v6557_v57  ;;  %1279 = vmatprep.subr.mxu1 %v1218_v53  ;;  %v1212_v53 = vld [vmem:[%s6509_s18 + $0x88] sm:$0xff] }
  0xd9   :  { %8744 = vst [vmem:[#allocation27_spill] sm:$0xff] %v6573_v0  ;;  %v6580_v25 = vadd.f32 %v422_v29, %v6527_v49  ;;  %768 = vmatprep.mubr.f32.mxu0 %v665_v9  ;;  %1280 = vmatpush1.msra.mxu1 %v1217_v33  ;;  %v666_v33 = vmul.f32 %v6573_v0, %v6573_v0 }
  0xda   :  { %v426_v61 = vpop.f32.mrf.mxu0  ;;  %769 = vmatmul.mubr.f32.gmra.mxu0 %v664_v13  ;;  %1281 = vmatprep.subr.mxu1 %v1216_v17  ;;  %v1211_v17 = vld [vmem:[%s6509_s18 + $0x80] sm:$0xff] }
  0xdb   :  { %8745 = vst [vmem:[#allocation28_spill] sm:$0xff] %v6580_v25  ;;  %581 = vmatprep.mubr.f32.mxu1 %v6580_v25  ;;  %v667_v41 = vmul.f32 %v6580_v25, %v6580_v25  ;;  %1282 = vmatpush1.msra.mxu1 %v1215_v37  ;;  %v6589_v29 = vadd.f32 %v426_v61, %v6524_v45  ;;  %v1210_v37 = vld [vmem:[%s6509_s18 + $0x78] sm:$0xff]  ;;  %v1209_v61 = vld [vmem:[%s6509_s18 + $0x70] sm:$0xff] }
  0xdc   :  { %v428_v9 = vpop.f32.mrf.mxu0  ;;  %582 = vmatmul.mubr.f32.gmra.mxu1 %v6573_v0  ;;  %1283 = vmatprep.subr.mxu1 %v1214_v5  ;;  %v1208_v5 = vld [vmem:[%s6509_s18 + $0x68] sm:$0xff] }
  0xdd   :  { %8746 = vst [vmem:[#allocation29_spill] sm:$0xff] %v6589_v29  ;;  %v6596_v13 = vadd.f32 %v428_v9, %v6527_v49  ;;  %774 = vmatprep.mubr.f32.mxu0 %v667_v41  ;;  %1284 = vmatpush1.msra.mxu1 %v1213_v21  ;;  %v668_v21 = vmul.f32 %v6589_v29, %v6589_v29 }
  0xde   :  { %v432_v25 = vpop.f32.mrf.mxu0  ;;  %775 = vmatmul.mubr.f32.gmra.mxu0 %v666_v33  ;;  %1285 = vmatprep.subr.mxu1 %v1212_v53  ;;  %v1207_v53 = vld [vmem:[%s6509_s18 + $0x60] sm:$0xff] }
  0xdf   :  { %8747 = vst [vmem:[#allocation30_spill] sm:$0xff] %v6596_v13  ;;  %587 = vmatprep.mubr.f32.mxu1 %v6596_v13  ;;  %v669_v57 = vmul.f32 %v6596_v13, %v6596_v13  ;;  %1286 = vmatpush1.msra.mxu1 %v1211_v17  ;;  %v6605_v9 = vadd.f32 %v432_v25, %v6524_v45  ;;  %v1206_v17 = vld [vmem:[%s6509_s18 + $0x58] sm:$0xff]  ;;  %v1205_v25 = vld [vmem:[%s6509_s18 + $0x50] sm:$0xff] }
  0xe0   :  { %v434_v41 = vpop.f32.mrf.mxu0  ;;  %588 = vmatmul.mubr.f32.gmra.mxu1 %v6589_v29  ;;  %1287 = vmatprep.subr.mxu1 %v1210_v37  ;;  %v1204_v37 = vld [vmem:[%s6509_s18 + $0x48] sm:$0xff] }
  0xe1   :  { %8748 = vst [vmem:[#allocation31_spill] sm:$0xff] %v6605_v9  ;;  %v6612_v33 = vadd.f32 %v434_v41, %v6527_v49  ;;  %780 = vmatprep.mubr.f32.mxu0 %v669_v57  ;;  %1288 = vmatpush1.msra.mxu1 %v1209_v61  ;;  %v670_v61 = vmul.f32 %v6605_v9, %v6605_v9 }
  0xe2   :  { %v438_v13 = vpop.f32.mrf.mxu0  ;;  %781 = vmatmul.mubr.f32.gmra.mxu0 %v668_v21  ;;  %1289 = vmatprep.subr.mxu1 %v1208_v5  ;;  %v1203_v5 = vld [vmem:[%s6509_s18 + $0x40] sm:$0xff] }
  0xe3   :  { %8749 = vst [vmem:[#allocation32_spill] sm:$0xff] %v6612_v33  ;;  %593 = vmatprep.mubr.f32.mxu1 %v6612_v33  ;;  %v671_v0 = vmul.f32 %v6612_v33, %v6612_v33  ;;  %1290 = vmatpush1.msra.mxu1 %v1207_v53  ;;  %v6621_v41 = vadd.f32 %v438_v13, %v6524_v45  ;;  %v1202_v53 = vld [vmem:[%s6509_s18 + $0x38] sm:$0xff]  ;;  %v1201_v13 = vld [vmem:[%s6509_s18 + $0x30] sm:$0xff] }
  0xe4   :  { %v440_v57 = vpop.f32.mrf.mxu0  ;;  %594 = vmatmul.mubr.f32.gmra.mxu1 %v6605_v9  ;;  %1291 = vmatprep.subr.mxu1 %v1206_v17  ;;  %v1200_v17 = vld [vmem:[%s6509_s18 + $0x28] sm:$0xff] }
  0xe5   :  { %8750 = vst [vmem:[#allocation33_spill] sm:$0xff] %v6621_v41  ;;  %v6628_v21 = vadd.f32 %v440_v57, %v6527_v49  ;;  %786 = vmatprep.mubr.f32.mxu0 %v671_v0  ;;  %1292 = vmatpush1.msra.mxu1 %v1205_v25  ;;  %v672_v25 = vmul.f32 %v6621_v41, %v6621_v41 }
  0xe6   :  { %v444_v33 = vpop.f32.mrf.mxu0  ;;  %787 = vmatmul.mubr.f32.gmra.mxu0 %v670_v61  ;;  %1293 = vmatprep.subr.mxu1 %v1204_v37  ;;  %v1199_v37 = vld [vmem:[%s6509_s18 + $0x20] sm:$0xff] }
  0xe7   :  { %8751 = vst [vmem:[#allocation34_spill] sm:$0xff] %v6628_v21  ;;  %599 = vmatprep.mubr.f32.mxu1 %v6628_v21  ;;  %v673_v29 = vmul.f32 %v6628_v21, %v6628_v21  ;;  %1294 = vmatpush1.msra.mxu1 %v1203_v5  ;;  %v6637_v57 = vadd.f32 %v444_v33, %v6524_v45  ;;  %v1198_v21 = vld [vmem:[%s6509_s18 + $0x18] sm:$0xff]  ;;  %v1197_v5 = vld [vmem:[%s6509_s18 + $0x10] sm:$0xff] }
  0xe8   :  { %v446_v0 = vpop.f32.mrf.mxu0  ;;  %600 = vmatmul.mubr.f32.gmra.mxu1 %v6621_v41  ;;  %1295 = vmatprep.subr.mxu1 %v1202_v53 }
  0xe9   :  { %v6644_v61 = vadd.f32 %v446_v0, %v6527_v49  ;;  %792 = vmatprep.mubr.f32.mxu0 %v673_v29  ;;  %1296 = vmatpush1.msra.mxu1 %v1201_v13  ;;  %v674_v29 = vmul.f32 %v6637_v57, %v6637_v57 }
  0xea   :  { %v450_v9 = vpop.f32.mrf.mxu0  ;;  %793 = vmatmul.mubr.f32.gmra.mxu0 %v672_v25  ;;  %1297 = vmatprep.subr.mxu1 %v1200_v17 }
  0xeb   :  { %605 = vmatprep.mubr.f32.mxu1 %v6644_v61  ;;  %v675_v33 = vmul.f32 %v6644_v61, %v6644_v61  ;;  %1298 = vmatpush1.msra.mxu1 %v1199_v37  ;;  %v6652_v41 = vadd.f32 %v450_v9, %v6524_v45 }
  0xec   :  { %v452_v53 = vpop.f32.mrf.mxu0  ;;  %606 = vmatmul.mubr.f32.gmra.mxu1 %v6637_v57  ;;  %1299 = vmatprep.subr.mxu1 %v1198_v21 }
  0xed   :  { %v6658_v13 = vadd.f32 %v452_v53, %v6527_v49  ;;  %798 = vmatprep.mubr.f32.mxu0 %v675_v33  ;;  %1300 = vmatpush1.msra.mxu1 %v1197_v5  ;;  %v676_v21 = vmul.f32 %v6652_v41, %v6652_v41 }
  0xee   :  { %v456_v17 = vpop.f32.mrf.mxu0  ;;  %799 = vmatmul.mubr.f32.gmra.mxu0 %v674_v29 }
  0xef   :  { %611 = vmatprep.mubr.f32.mxu1 %v6658_v13  ;;  %v677_v9 = vmul.f32 %v6658_v13, %v6658_v13  ;;  %1435 = vmatpush1.msra.mxu0 %v6146_v6  ;;  %v6665_v0 = vadd.f32 %v456_v17, %v6524_v45 }
  0xf0   :  { %v458_v25 = vpop.f32.mrf.mxu0  ;;  %612 = vmatmul.mubr.f32.gmra.mxu1 %v6652_v41  ;;  %1436 = vmatprep.subr.mxu0 %v6151_v7 }
  0xf1   :  { %v6672_v37 = vadd.f32 %v458_v25, %v6527_v49  ;;  %804 = vmatprep.mubr.f32.mxu0 %v677_v9  ;;  %1437 = vmatpush1.msra.mxu0 %v6154_v8  ;;  %v678_v8 = vmul.f32 %v6665_v0, %v6665_v0 }
  0xf2   :  { %v462_v5 = vpop.f32.mrf.mxu0  ;;  %805 = vmatmul.mubr.f32.gmra.mxu0 %v676_v21  ;;  %1438 = vmatprep.subr.mxu0 %v6160_v10 }
  0xf3   :  { %617 = vmatprep.mubr.f32.mxu1 %v6672_v37  ;;  %v679_v6 = vmul.f32 %v6672_v37, %v6672_v37  ;;  %1439 = vmatpush1.msra.mxu0 %v6167_v11  ;;  %v6681_v33 = vadd.f32 %v462_v5, %v6524_v45 }
  0xf4   :  { %v464_v7 = vpop.f32.mrf.mxu0  ;;  %618 = vmatmul.mubr.f32.gmra.mxu1 %v6665_v0  ;;  %1440 = vmatprep.subr.mxu0 %v6172_v12 }
  0xf5   :  { %v6688_v10 = vadd.f32 %v464_v7, %v6527_v49  ;;  %810 = vmatprep.mubr.f32.mxu0 %v679_v6  ;;  %1441 = vmatpush1.msra.mxu0 %v6178_v14  ;;  %v680_v14 = vmul.f32 %v6681_v33, %v6681_v33 }
  0xf6   :  { %v468_v53 = vpop.f32.mrf.mxu0  ;;  %811 = vmatmul.mubr.f32.gmra.mxu0 %v678_v8  ;;  %1442 = vmatprep.subr.mxu0 %v6185_v15 }
  0xf7   :  { %623 = vmatprep.mubr.f32.mxu1 %v6688_v10  ;;  %v681_v11 = vmul.f32 %v6688_v10, %v6688_v10  ;;  %1443 = vmatpush1.msra.mxu0 %v6190_v16  ;;  %v6697_v29 = vadd.f32 %v468_v53, %v6524_v45  ;;  %v8764_v53 = vld [vmem:[#allocation7_spill] sm:$0xff] }
  0xf8   :  { %v470_v12 = vpop.f32.mrf.mxu0  ;;  %624 = vmatmul.mubr.f32.gmra.mxu1 %v6681_v33  ;;  %1444 = vmatprep.subr.mxu0 %v6196_v18 }
  0xf9   :  { %8752 = vst [vmem:[#allocation35_spill] sm:$0xff] %v6697_v29  ;;  %v6704_v15 = vadd.f32 %v470_v12, %v6527_v49  ;;  %816 = vmatprep.mubr.f32.mxu0 %v681_v11  ;;  %1445 = vmatpush1.msra.mxu0 %v6203_v19  ;;  %v682_v19 = vmul.f32 %v6697_v29, %v6697_v29  ;;  %v1240_v11 = vld [vmem:[%s6509_s18 + $0x168] sm:$0xff] }
  0xfa   :  { %v474_v17 = vpop.f32.mrf.mxu0  ;;  %817 = vmatmul.mubr.f32.gmra.mxu0 %v680_v14  ;;  %1446 = vmatprep.subr.mxu0 %v6208_v20  ;;  %v8765_v12 = vld [vmem:[#allocation8_spill] sm:$0xff]  ;;  %v1239_v14 = vld [vmem:[%s6509_s18 + $0x160] sm:$0xff] }
  0xfb   :  { %629 = vmatprep.mubr.f32.mxu1 %v6704_v15  ;;  %v683_v16 = vmul.f32 %v6704_v15, %v6704_v15  ;;  %1447 = vmatpush1.msra.mxu0 %v6214_v22  ;;  %v6713_v9 = vadd.f32 %v474_v17, %v6524_v45  ;;  %v8766_v17 = vld [vmem:[#allocation9_spill] sm:$0xff] }
  0xfc   :  { %v476_v18 = vpop.f32.mrf.mxu0  ;;  %630 = vmatmul.mubr.f32.gmra.mxu1 %v6697_v29  ;;  %1448 = vmatprep.subr.mxu0 %v6221_v23 }
  0xfd   :  { %8753 = vst [vmem:[#allocation36_spill] sm:$0xff] %v6713_v9  ;;  %v6720_v20 = vadd.f32 %v476_v18, %v6527_v49  ;;  %822 = vmatprep.mubr.f32.mxu0 %v683_v16  ;;  %1449 = vmatpush1.msra.mxu0 %v6226_v24  ;;  %v684_v24 = vmul.f32 %v6713_v9, %v6713_v9  ;;  %v1238_v16 = vld [vmem:[%s6509_s18 + $0x158] sm:$0xff] }
  0xfe   :  { %v480_v25 = vpop.f32.mrf.mxu0  ;;  %823 = vmatmul.mubr.f32.gmra.mxu0 %v682_v19  ;;  %1450 = vmatprep.subr.mxu0 %v6232_v26  ;;  %v8767_v18 = vld [vmem:[#allocation10_spill] sm:$0xff]  ;;  %v1237_v19 = vld [vmem:[%s6509_s18 + $0x150] sm:$0xff] }
  0xff   :  { %635 = vmatprep.mubr.f32.mxu1 %v6720_v20  ;;  %v685_v22 = vmul.f32 %v6720_v20, %v6720_v20  ;;  %1451 = vmatpush1.msra.mxu0 %v6239_v27  ;;  %v6729_v21 = vadd.f32 %v480_v25, %v6524_v45  ;;  %v8768_v25 = vld [vmem:[#allocation11_spill] sm:$0xff] }
 0x100   :  { %v482_v23 = vpop.f32.mrf.mxu0  ;;  %636 = vmatmul.mubr.f32.gmra.mxu1 %v6713_v9  ;;  %1452 = vmatprep.subr.mxu0 %v6244_v28 }
 0x101   :  { %8754 = vst [vmem:[#allocation37_spill] sm:$0xff] %v6729_v21  ;;  %v6736_v26 = vadd.f32 %v482_v23, %v6527_v49  ;;  %828 = vmatprep.mubr.f32.mxu0 %v685_v22  ;;  %1453 = vmatpush1.msra.mxu0 %v6250_v30  ;;  %v686_v30 = vmul.f32 %v6729_v21, %v6729_v21  ;;  %v1236_v22 = vld [vmem:[%s6509_s18 + $0x148] sm:$0xff] }
 0x102   :  { %v486_v5 = vpop.f32.mrf.mxu0  ;;  %829 = vmatmul.mubr.f32.gmra.mxu0 %v684_v24  ;;  %1454 = vmatprep.subr.mxu0 %v6257_v31  ;;  %v8769_v23 = vld [vmem:[#allocation12_spill] sm:$0xff]  ;;  %v1235_v24 = vld [vmem:[%s6509_s18 + $0x140] sm:$0xff] }
 0x103   :  { %8755 = vst [vmem:[#allocation38_spill] sm:$0xff] %v6736_v26  ;;  %641 = vmatprep.mubr.f32.mxu1 %v6736_v26  ;;  %v687_v27 = vmul.f32 %v6736_v26, %v6736_v26  ;;  %1455 = vmatpush1.msra.mxu0 %v6262_v32  ;;  %v6745_v6 = vadd.f32 %v486_v5, %v6524_v45  ;;  %v8770_v5 = vld [vmem:[#allocation13_spill] sm:$0xff] }
 0x104   :  { %v488_v28 = vpop.f32.mrf.mxu0  ;;  %642 = vmatmul.mubr.f32.gmra.mxu1 %v6729_v21  ;;  %1456 = vmatprep.subr.mxu0 %v6268_v34 }
 0x105   :  { %8756 = vst [vmem:[#allocation39_spill] sm:$0xff] %v6745_v6  ;;  %v6752_v31 = vadd.f32 %v488_v28, %v6527_v49  ;;  %834 = vmatprep.mubr.f32.mxu0 %v687_v27  ;;  %1457 = vmatpush1.msra.mxu0 %v6275_v35  ;;  %v688_v35 = vmul.f32 %v6745_v6, %v6745_v6  ;;  %v1234_v27 = vld [vmem:[%s6509_s18 + $0x138] sm:$0xff] }
 0x106   :  { %v492_v7 = vpop.f32.mrf.mxu0  ;;  %835 = vmatmul.mubr.f32.gmra.mxu0 %v686_v30  ;;  %1458 = vmatprep.subr.mxu0 %v6280_v36  ;;  %v8771_v28 = vld [vmem:[#allocation14_spill] sm:$0xff]  ;;  %v1233_v30 = vld [vmem:[%s6509_s18 + $0x130] sm:$0xff] }
 0x107   :  { %8757 = vst [vmem:[#allocation40_spill] sm:$0xff] %v6752_v31  ;;  %647 = vmatprep.mubr.f32.mxu1 %v6752_v31  ;;  %v689_v32 = vmul.f32 %v6752_v31, %v6752_v31  ;;  %1459 = vmatpush1.msra.mxu0 %v6286_v38  ;;  %v6761_v8 = vadd.f32 %v492_v7, %v6524_v45  ;;  %v8762_v45 = vld [vmem:[#allocation5_spill] sm:$0xff]  ;;  %v8772_v7 = vld [vmem:[#allocation15_spill] sm:$0xff] }
 0x108   :  { %v494_v34 = vpop.f32.mrf.mxu0  ;;  %648 = vmatmul.mubr.f32.gmra.mxu1 %v6745_v6  ;;  %1460 = vmatprep.subr.mxu0 %v6293_v39 }
 0x109   :  { %8758 = vst [vmem:[#allocation41_spill] sm:$0xff] %v6761_v8  ;;  %v6768_v36 = vadd.f32 %v494_v34, %v6527_v49  ;;  %840 = vmatprep.mubr.f32.mxu0 %v689_v32  ;;  %1461 = vmatpush1.msra.mxu0 %v6298_v40  ;;  %v690_v39 = vmul.f32 %v6761_v8, %v6761_v8  ;;  %v1196_v40 = vld [vmem:[%s6509_s18 + $0x8] sm:$0xff]  ;;  %v8763_v49 = vld [vmem:[#allocation6_spill] sm:$0xff] }
 0x10a   :  { %841 = vmatmul.mubr.f32.gmra.mxu0 %v688_v35  ;;  %1462 = vmatprep.subr.mxu0 %v6304_v42  ;;  %v1195_v42 = vld [vmem:[%s6509_s18] sm:$0xff]  ;;  %v1232_v32 = vld [vmem:[%s6509_s18 + $0x128] sm:$0xff] }
 0x10b   :  { %8759 = vst [vmem:[#allocation42_spill] sm:$0xff] %v6768_v36  ;;  %653 = vmatprep.mubr.f32.mxu1 %v6768_v36  ;;  %v691_v38 = vmul.f32 %v6768_v36, %v6768_v36  ;;  %1463 = vmatpush1.msra.mxu0 %v6311_v43  ;;  %v1258_v43 = vld [vmem:[%s6509_s18 + $0x1f8] sm:$0xff]  ;;  %v8773_v34 = vld [vmem:[#allocation16_spill] sm:$0xff]  ;;  %v1231_v35 = vld [vmem:[%s6509_s18 + $0x120] sm:$0xff] }
 0x10c   :  { %654 = vmatmul.mubr.f32.gmra.mxu1 %v6761_v8  ;;  %1464 = vmatprep.subr.mxu0 %v6316_v44  ;;  %v1257_v44 = vld [vmem:[%s6509_s18 + $0x1f0] sm:$0xff] }
 0x10d   :  { %846 = vmatprep.mubr.f32.mxu0 %v691_v38  ;;  %1465 = vmatpush1.msra.mxu0 %v6322_v46  ;;  %v1256_v46 = vld [vmem:[%s6509_s18 + $0x1e8] sm:$0xff]  ;;  %v8774_v38 = vld [vmem:[#allocation17_spill] sm:$0xff] }
 0x10e   :  { %847 = vmatmul.mubr.f32.gmra.mxu0 %v690_v39  ;;  %1466 = vmatprep.subr.mxu0 %v6329_v47  ;;  %v1255_v47 = vld [vmem:[%s6509_s18 + $0x1e0] sm:$0xff]  ;;  %v1230_v39 = vld [vmem:[%s6509_s18 + $0x118] sm:$0xff] }
 0x10f   :  { %1467 = vmatpush2.msra.mxu0 %v6334_v48  ;;  %1301 = vmatprep.subr.mxu1 %v1196_v40  ;;  %v1254_v48 = vld [vmem:[%s6509_s18 + $0x1d8] sm:$0xff]  ;;  %v1229_v40 = vld [vmem:[%s6509_s18 + $0x110] sm:$0xff] }
 0x110   :  { %1468 = vmatprep.subr.mxu0 %v6340_v50  ;;  %1302 = vmatpush1.msra.mxu1 %v1195_v42  ;;  %v1253_v50 = vld [vmem:[%s6509_s18 + $0x1d0] sm:$0xff]  ;;  %v1228_v42 = vld [vmem:[%s6509_s18 + $0x108] sm:$0xff] }
 0x111   :  { %1469 = vmatpush2.msra.mxu0 %v6347_v51  ;;  %1303 = vmatprep.subr.mxu1 %v1258_v43  ;;  %v1252_v51 = vld [vmem:[%s6509_s18 + $0x1c8] sm:$0xff]  ;;  %v1227_v43 = vld [vmem:[%s6509_s18 + $0x100] sm:$0xff] }
 0x112   :  { %1470 = vmatprep.subr.mxu0 %v6352_v52  ;;  %1304 = vmatpush2.msra.mxu1 %v1257_v44  ;;  %v1251_v52 = vld [vmem:[%s6509_s18 + $0x1c0] sm:$0xff]  ;;  %v6003_v44 = vld [vmem:[%s6136_s14 + $0xf8] sm:$0xff] }
 0x113   :  { %1471 = vmatpush2.msra.mxu0 %v6358_v54  ;;  %1305 = vmatprep.subr.mxu1 %v1256_v46  ;;  %v1250_v54 = vld [vmem:[%s6509_s18 + $0x1b8] sm:$0xff] }
 0x114   :  { %1472 = vmatprep.subr.mxu0 %v6365_v55  ;;  %1306 = vmatpush2.msra.mxu1 %v1255_v47  ;;  %v1249_v55 = vld [vmem:[%s6509_s18 + $0x1b0] sm:$0xff] }
 0x115   :  { %1473 = vmatpush2.msra.mxu0 %v6370_v56  ;;  %1307 = vmatprep.subr.mxu1 %v1254_v48  ;;  %v1248_v56 = vld [vmem:[%s6509_s18 + $0x1a8] sm:$0xff] }
 0x116   :  { %1474 = vmatprep.subr.mxu0 %v6376_v58  ;;  %1308 = vmatpush2.msra.mxu1 %v1253_v50  ;;  %v1247_v58 = vld [vmem:[%s6509_s18 + $0x1a0] sm:$0xff] }
 0x117   :  { %1475 = vmatpush2.msra.mxu0 %v6383_v59  ;;  %1309 = vmatprep.subr.mxu1 %v1252_v51  ;;  %v1246_v59 = vld [vmem:[%s6509_s18 + $0x198] sm:$0xff] }
 0x118   :  { %1476 = vmatprep.subr.mxu0 %v6388_v60  ;;  %1310 = vmatpush2.msra.mxu1 %v1251_v52  ;;  %v1245_v60 = vld [vmem:[%s6509_s18 + $0x190] sm:$0xff] }
 0x119   :  { %1477 = vmatpush2.msra.mxu0 %v6394_v62  ;;  %1311 = vmatprep.subr.mxu1 %v1250_v54  ;;  %v8760_v62 = vld [vmem:[#allocation3_spill] sm:$0xff] }
 0x11a   :  { %1478 = vmatprep.subr.mxu0 %v6399_v63  ;;  %1312 = vmatpush2.msra.mxu1 %v1249_v55  ;;  %v1244_v63 = vld [vmem:[%s6509_s18 + $0x188] sm:$0xff] }
 0x11b   :  { %1479 = vmatpush2.msra.mxu0 %v6404_v1  ;;  %1313 = vmatprep.subr.mxu1 %v1248_v56  ;;  %v8761_v1 = vld [vmem:[#allocation4_spill] sm:$0xff] }
 0x11c   :  { %1480 = vmatprep.subr.mxu0 %v6409_v2  ;;  %1314 = vmatpush2.msra.mxu1 %v1247_v58  ;;  %v1243_v2 = vld [vmem:[%s6509_s18 + $0x180] sm:$0xff] }
 0x11d   :  { %1481 = vmatpush2.msra.mxu0 %v6414_v3  ;;  %1315 = vmatprep.subr.mxu1 %v1246_v59  ;;  %v1242_v3 = vld [vmem:[%s6509_s18 + $0x178] sm:$0xff] }
 0x11e   :  { %1482 = vmatprep.subr.mxu0 %v6419_v4  ;;  %1316 = vmatpush2.msra.mxu1 %v1245_v60  ;;  %v1241_v4 = vld [vmem:[%s6509_s18 + $0x170] sm:$0xff] }
 0x11f   :  { %1483 = vmatpush2.msra.mxu0 %v8760_v62  ;;  %1317 = vmatprep.subr.mxu1 %v1244_v63 }
 0x120   :  { %1484 = vmatprep.subr.mxu0 %v8761_v1  ;;  %1318 = vmatpush2.msra.mxu1 %v1243_v2 }
 0x121   :  { %1485 = vmatpush2.msra.mxu0 %v8762_v45  ;;  %1319 = vmatprep.subr.mxu1 %v1242_v3 }
 0x122   :  { %1486 = vmatprep.subr.mxu0 %v8763_v49  ;;  %1320 = vmatpush2.msra.mxu1 %v1241_v4 }
 0x123   :  { %1487 = vmatpush2.msra.mxu0 %v8764_v53  ;;  %1321 = vmatprep.subr.mxu1 %v1240_v11 }
 0x124   :  { %1488 = vmatprep.subr.mxu0 %v8765_v12  ;;  %1322 = vmatpush2.msra.mxu1 %v1239_v14 }
 0x125   :  { %1489 = vmatpush2.msra.mxu0 %v8766_v17  ;;  %1323 = vmatprep.subr.mxu1 %v1238_v16 }
 0x126   :  { %1490 = vmatprep.subr.mxu0 %v8767_v18  ;;  %1324 = vmatpush2.msra.mxu1 %v1237_v19 }
 0x127   :  { %1491 = vmatpush2.msra.mxu0 %v8768_v25  ;;  %1325 = vmatprep.subr.mxu1 %v1236_v22 }
 0x128   :  { %1492 = vmatprep.subr.mxu0 %v8769_v23  ;;  %1326 = vmatpush2.msra.mxu1 %v1235_v24 }
 0x129   :  { %1493 = vmatpush2.msra.mxu0 %v8770_v5  ;;  %1327 = vmatprep.subr.mxu1 %v1234_v27 }
 0x12a   :  { %1494 = vmatprep.subr.mxu0 %v8771_v28  ;;  %1328 = vmatpush2.msra.mxu1 %v1233_v30 }
 0x12b   :  { %1495 = vmatpush2.msra.mxu0 %v8772_v7  ;;  %1329 = vmatprep.subr.mxu1 %v1232_v32  ;;  %v497_v7 = vld [vmem:[%s5038_s26] sm:$0x3] }
 0x12c   :  { %1496 = vmatprep.subr.mxu0 %v8773_v34  ;;  %1330 = vmatpush2.msra.mxu1 %v1231_v35  ;;  %v498_v35 = vld [vmem:[%s5039_s30] sm:$0x3] }
 0x12d   :  { %1497 = vmatpush2.msra.mxu0 %v8774_v38  ;;  %1331 = vmatprep.subr.mxu1 %v1230_v39 }
 0x12e   :  { %1332 = vmatpush2.msra.mxu1 %v1229_v40 }
 0x12f   :  { %1333 = vmatprep.subr.mxu1 %v1228_v42 }
 0x130   :  { %1334 = vmatpush2.msra.mxu1 %v1227_v43 }
 0x131   :  { %1627 = vmatprep.subr.mxu1 %v6003_v44  ;;  %v8775_v44 = vld [vmem:[#allocation19_spill] sm:$0xff] }
 0x190   :  { %v6848_v46 = vpop.f32.mrf.mxu1 }
 0x191   :  { %v853_v47 = vmul.f32 %v6848_v46, %v6848_v46 }
 0x192   :  { %v6852_v48 = vpop.f32.mrf.mxu1  ;;  %v758_v50 = vpop.f32.mrf.mxu0 }
 0x193   :  { %v854_v51 = vmul.f32 %v6852_v48, %v6852_v48  ;;  %v885_v52 = vsub.f32 %v758_v50, %v853_v47  ;;  %v6891_v47 = vrot.slane %v497_v7, %v8775_v44  ;;  %v8776_v50 = vld [vmem:[#allocation20_spill] sm:$0xff] }
 0x194   :  { %v6856_v54 = vpop.f32.mrf.mxu1  ;;  %v760_v55 = vpop.f32.mrf.mxu0 }
 0x195   :  { %v917_v56 = vmax.f32 %v885_v52, 0.0  ;;  %v855_v58 = vmul.f32 %v6856_v54, %v6856_v54  ;;  %v886_v59 = vsub.f32 %v760_v55, %v854_v51  ;;  %v6894_v51 = vrot.slane %v497_v7, %v8776_v50 }
 0x196   :  { %v6860_v60 = vpop.f32.mrf.mxu1  ;;  %v764_v62 = vpop.f32.mrf.mxu0 }
 0x197   :  { %v981_v63 = vadd.f32 1e-05, %v917_v56  ;;  %v918_v1 = vmax.f32 %v886_v59, 0.0  ;;  %v856_v2 = vmul.f32 %v6860_v60, %v6860_v60  ;;  %v887_v45 = vsub.f32 %v764_v62, %v855_v58  ;;  %v8777_v62 = vld [vmem:[#allocation21_spill] sm:$0xff] }
 0x198   :  { %v6870_v3 = vpop.f32.mrf.mxu1  ;;  %v766_v49 = vpop.f32.mrf.mxu0  ;;  %v6899_v58 = vrot.slane %v498_v35, %v8775_v44  ;;  %v6902_v59 = vrot.slane %v498_v35, %v8776_v50 }
 0x199   :  { %5863 = vrsqrt.f32 %v981_v63  ;;  %v982_v4 = vadd.f32 1e-05, %v918_v1  ;;  %v857_v53 = vmul.f32 %v6870_v3, %v6870_v3  ;;  %v919_v11 = vmax.f32 %v887_v45, 0.0 }
 0x19a   :  { %v888_v12 = vsub.f32 %v766_v49, %v856_v2  ;;  %v6874_v14 = vpop.f32.mrf.mxu1  ;;  %v770_v17 = vpop.f32.mrf.mxu0  ;;  %v949_v63 = vsub.f32 %v8777_v62, %v6848_v46  ;;  %v8778_v49 = vld [vmem:[#allocation22_spill] sm:$0xff] }
 0x19b   :  { %5865 = vrsqrt.f32 %v982_v4  ;;  %v858_v16 = vmul.f32 %v6874_v14, %v6874_v14  ;;  %v889_v18 = vsub.f32 %v770_v17, %v857_v53  ;;  %v983_v5 = vadd.f32 1e-05, %v919_v11  ;;  %v8779_v53 = vld [vmem:[#allocation23_spill] sm:$0xff] }
 0x19c   :  { %v920_v19 = vmax.f32 %v888_v12, 0.0  ;;  %v6878_v25 = vpop.f32.mrf.mxu1  ;;  %v772_v22 = vpop.f32.mrf.mxu0  ;;  %v950_v4 = vsub.f32 %v8778_v49, %v6852_v48 }
 0x19d   :  { %v859_v23 = vmul.f32 %v6878_v25, %v6878_v25  ;;  %v890_v24 = vsub.f32 %v772_v22, %v858_v16  ;;  %v921_v32 = vmax.f32 %v889_v18, 0.0 }
 0x19e   :  { %v984_v27 = vadd.f32 1e-05, %v920_v19  ;;  %v6882_v28 = vpop.f32.mrf.mxu1  ;;  %v776_v30 = vpop.f32.mrf.mxu0  ;;  %v8780_v19 = vld [vmem:[#allocation24_spill] sm:$0xff] }
 0x19f   :  { %v860_v34 = vmul.f32 %v6882_v28, %v6882_v28  ;;  %v922_v38 = vmax.f32 %v890_v24, 0.0  ;;  %v891_v39 = vsub.f32 %v776_v30, %v859_v23  ;;  %v985_v1 = vadd.f32 1e-05, %v921_v32  ;;  %v8782_v30 = vld [vmem:[#allocation26_spill] sm:$0xff]  ;;  %v8783_v32 = vld [vmem:[#allocation27_spill] sm:$0xff] }
 0x1a0   :  { %5867 = vrsqrt.f32 %v984_v27  ;;  %v6886_v40 = vpop.f32.mrf.mxu1  ;;  %v778_v42 = vpop.f32.mrf.mxu0  ;;  %v8781_v27 = vld [vmem:[#allocation25_spill] sm:$0xff] }
 0x1a1   :  { %v861_v43 = vmul.f32 %v6886_v40, %v6886_v40  ;;  %5869 = vrsqrt.f32 %v983_v5  ;;  %v892_v52 = vsub.f32 %v778_v42, %v860_v34  ;;  %v986_v12 = vadd.f32 1e-05, %v922_v38 }
 0x1a2   :  { %v6896_v55 = vpop.f32.mrf.mxu1  ;;  %v782_v56 = vpop.f32.mrf.mxu0  ;;  %v923_v17 = vmax.f32 %v891_v39, 0.0  ;;  %5871 = vrsqrt.f32 %v985_v1 }
 0x1a3   :  { %v862_v2 = vmul.f32 %v6896_v55, %v6896_v55  ;;  %v893_v45 = vsub.f32 %v782_v56, %v861_v43  ;;  %v924_v46 = vmax.f32 %v892_v52, 0.0  ;;  %v8784_v43 = vld [vmem:[#allocation28_spill] sm:$0xff]  ;;  %5873 = vrsqrt.f32 %v986_v12 }
 0x1a4   :  { %v6912_v16 = vpop.f32.mrf.mxu1  ;;  %v784_v18 = vpop.f32.mrf.mxu0 }
 0x1a5   :  { %v863_v23 = vmul.f32 %v6912_v16, %v6912_v16  ;;  %v894_v24 = vsub.f32 %v784_v18, %v862_v2  ;;  %v925_v35 = vmax.f32 %v893_v45, 0.0  ;;  %v987_v2 = vadd.f32 1e-05, %v923_v17  ;;  %v8785_v45 = vld [vmem:[#allocation29_spill] sm:$0xff] }
 0x1a6   :  { %v5864_v5 = vpop.eup %5863  ;;  %v6924_v38 = vpop.f32.mrf.mxu1  ;;  %v988_v11 = vadd.f32 1e-05, %v924_v46 }
 0x1a7   :  { %v788_v39 = vpop.f32.mrf.mxu0  ;;  %v1045_v42 = vmul.f32 %v5864_v5, %v949_v63  ;;  %v864_v56 = vmul.f32 %v6924_v38, %v6924_v38  ;;  %v926_v49 = vmax.f32 %v894_v24, 0.0  ;;  %v8786_v63 = vld [vmem:[#allocation30_spill] sm:$0xff]  ;;  %v989_v52 = vadd.f32 1e-05, %v925_v35  ;;  %v8787_v24 = vld [vmem:[#allocation31_spill] sm:$0xff] }
 0x1a8   :  { %v5866_v62 = vpop.eup %5865  ;;  %v895_v18 = vsub.f32 %v788_v39, %v863_v23  ;;  %v6930_v48 = vpop.f32.mrf.mxu1  ;;  %5875 = vrsqrt.f32 %v987_v2 }
 0x1a9   :  { %v790_v34 = vpop.f32.mrf.mxu0  ;;  %v865_v5 = vmul.f32 %v6930_v48, %v6930_v48  ;;  %v1046_v17 = vmul.f32 %v5866_v62, %v950_v4  ;;  %v1088_v23 = vmul.f32 %v6891_v47, %v1045_v42  ;;  %v990_v1 = vadd.f32 1e-05, %v926_v49 }
 0x1aa   :  { %v896_v22 = vsub.f32 %v790_v34, %v864_v56  ;;  %v6938_v50 = vpop.f32.mrf.mxu1  ;;  %v927_v44 = vmax.f32 %v895_v18, 0.0  ;;  %5877 = vrsqrt.f32 %v988_v11  ;;  %v8788_v18 = vld [vmem:[#allocation32_spill] sm:$0xff]  ;;  %v8789_v11 = vld [vmem:[#allocation33_spill] sm:$0xff] }
 0x1ab   :  { %v794_v12 = vpop.f32.mrf.mxu0  ;;  %v866_v46 = vmul.f32 %v6938_v50, %v6938_v50  ;;  %v1089_v35 = vmul.f32 %v6894_v51, %v1046_v17  ;;  %v1131_v62 = vadd.f32 %v6899_v58, %v1088_v23  ;;  %5879 = vrsqrt.f32 %v989_v52 }
 0x1ac   :  { %v897_v7 = vsub.f32 %v794_v12, %v865_v5  ;;  %v928_v36 = vmax.f32 %v896_v22, 0.0  ;;  %v6945_v8 = vpop.f32.mrf.mxu1  ;;  %v991_v17 = vadd.f32 1e-05, %v927_v44  ;;  %5881 = vrsqrt.f32 %v990_v1 }
 0x1ad   :  { %v796_v34 = vpop.f32.mrf.mxu0  ;;  %v5868_v56 = vpop.eup %5867  ;;  %v867_v4 = vmul.f32 %v6945_v8, %v6945_v8  ;;  %v1132_v12 = vadd.f32 %v6902_v59, %v1089_v35  ;;  %v8790_v5 = vsub.f32 %v8780_v19, %v6860_v60  ;;  %v8791_v35 = vld [vmem:[#allocation34_spill] sm:$0xff]  ;;  %v1163_v31 = vmax.f32 %v1131_v62, 0.0 }
 0x1ae   :  { %v898_v42 = vsub.f32 %v796_v34, %v866_v46  ;;  %v929_v2 = vmax.f32 %v897_v7, 0.0  ;;  %v6953_v49 = vpop.f32.mrf.mxu1  ;;  %v5870_v39 = vpop.eup %5869  ;;  %v992_v52 = vadd.f32 1e-05, %v928_v36  ;;  %v8792_v60 = vsub.f32 %v8779_v53, %v6856_v54 }
 0x1af   :  { %v800_v22 = vpop.f32.mrf.mxu0  ;;  %v868_v46 = vmul.f32 %v6953_v49, %v6953_v49  ;;  %v1164_v7 = vmax.f32 %v1132_v12, 0.0  ;;  %v1048_v9 = vmul.f32 %v5868_v56, %v8790_v5  ;;  %5883 = vrsqrt.f32 %v991_v17  ;;  %v5872_v62 = vpop.eup %5871 }
 0x1b0   :  { %v930_v6 = vmax.f32 %v898_v42, 0.0  ;;  %v6960_v23 = vpop.f32.mrf.mxu1  ;;  %v899_v26 = vsub.f32 %v800_v22, %v867_v4  ;;  %v993_v21 = vadd.f32 1e-05, %v929_v2  ;;  %v1047_v19 = vmul.f32 %v5870_v39, %v8792_v60  ;;  %v5874_v53 = vpop.eup %5873  ;;  %v6008_v2 = vld [vmem:[%s6136_s14 + $0xd0] sm:$0xff] }
 0x1b1   :  { %v802_v34 = vpop.f32.mrf.mxu0  ;;  %v869_v42 = vmul.f32 %v6960_v23, %v6960_v23  ;;  %1335 = vmatprep.mubr.f32.mxu1 %v1164_v7  ;;  %v1091_v12 = vmul.f32 %v6894_v51, %v1048_v9  ;;  %5885 = vrsqrt.f32 %v992_v52 }
 0x1b2   :  { %v900_v29 = vsub.f32 %v802_v34, %v868_v46  ;;  %v6969_v36 = vpop.f32.mrf.mxu1  ;;  %v994_v56 = vadd.f32 1e-05, %v930_v6  ;;  %1336 = vmatmul.mubr.f32.vlgmr.msra.gmra.mxu1 %v1163_v31  ;;  %v1090_v54 = vmul.f32 %v6891_v47, %v1047_v19  ;;  %v6004_v6 = vld [vmem:[%s6136_s14 + $0xf0] sm:$0xff]  ;;  %v931_v39 = vmax.f32 %v899_v26, 0.0  ;;  %v6005_v34 = vld [vmem:[%s6136_s14 + $0xe8] sm:$0xff]  ;;  %v6006_v26 = vld [vmem:[%s6136_s14 + $0xe0] sm:$0xff] }
 0x1b3   :  { %v806_v1 = vpop.f32.mrf.mxu0  ;;  %v870_v4 = vmul.f32 %v6969_v36, %v6969_v36  ;;  %v1134_v46 = vadd.f32 %v6902_v59, %v1091_v12  ;;  %1628 = vmatpush1.msra.mxu1 %v6004_v6  ;;  %5887 = vrsqrt.f32 %v993_v21 }
 0x1b4   :  { %v901_v5 = vsub.f32 %v806_v1, %v869_v42  ;;  %v6979_v22 = vpop.f32.mrf.mxu1  ;;  %v932_v17 = vmax.f32 %v900_v29, 0.0  ;;  %1629 = vmatprep.subr.mxu1 %v6005_v34  ;;  %v1133_v60 = vadd.f32 %v6899_v58, %v1090_v54  ;;  %5889 = vrsqrt.f32 %v994_v56 }
 0x1b5   :  { %8793 = vst [vmem:[#allocation3_spill] sm:$0xff] %v6979_v22  ;;  %v808_v9 = vpop.f32.mrf.mxu0  ;;  %v871_v31 = vmul.f32 %v6979_v22, %v6979_v22  ;;  %v1166_v42 = vmax.f32 %v1134_v46, 0.0  ;;  %1630 = vmatpush1.msra.mxu1 %v6006_v26  ;;  %v8794_v56 = vsub.f32 %v8782_v30, %v6874_v14  ;;  %v995_v29 = vadd.f32 1e-05, %v931_v39  ;;  %v6013_v22 = vld [vmem:[%s6136_s14 + $0xa8] sm:$0xff] }
 0x1b6   :  { %v902_v52 = vsub.f32 %v808_v9, %v870_v4  ;;  %v6989_v1 = vpop.f32.mrf.mxu1  ;;  %v933_v19 = vmax.f32 %v901_v5, 0.0  ;;  %v6007_v4 = vld [vmem:[%s6136_s14 + $0xd8] sm:$0xff]  ;;  %v1165_v6 = vmax.f32 %v1133_v60, 0.0  ;;  %v7004_v5 = vpop.eup %5875  ;;  %v996_v7 = vadd.f32 1e-05, %v932_v17 }
 0x1b7   :  { %v812_v12 = vpop.f32.mrf.mxu0  ;;  %v872_v21 = vmul.f32 %v6989_v1, %v6989_v1  ;;  %1631 = vmatprep.subr.mxu1 %v6007_v4  ;;  %1341 = vmatprep.mubr.f32.mxu1 %v1166_v42  ;;  %v1050_v26 = vmul.f32 %v5874_v53, %v8794_v56  ;;  %v5878_v42 = vpop.eup %5877  ;;  %v8795_v39 = vsub.f32 %v8781_v27, %v6870_v3  ;;  %5891 = vrsqrt.f32 %v995_v29 }
 0x1b8   :  { %v934_v9 = vmax.f32 %v902_v52, 0.0  ;;  %v903_v46 = vsub.f32 %v812_v12, %v871_v31  ;;  %v6998_v34 = vpop.f32.mrf.mxu1  ;;  %1632 = vmatpush1.msra.mxu1 %v6008_v2  ;;  %v6009_v52 = vld [vmem:[%s6136_s14 + $0xc8] sm:$0xff]  ;;  %v7017_v60 = vpop.eup %5879  ;;  %v997_v56 = vadd.f32 1e-05, %v933_v19  ;;  %v6011_v19 = vld [vmem:[%s6136_s14 + $0xb8] sm:$0xff]  ;;  %5893 = vrsqrt.f32 %v996_v7  ;;  %v6014_v7 = vld [vmem:[%s6136_s14 + $0xa0] sm:$0xff] }
 0x1b9   :  { %v814_v54 = vpop.f32.mrf.mxu0  ;;  %v873_v31 = vmul.f32 %v6998_v34, %v6998_v34  ;;  %1633 = vmatprep.subr.mxu1 %v6009_v52  ;;  %1342 = vmatmul.mubr.f32.gmra.mxu1 %v1165_v6  ;;  %v1093_v30 = vmul.f32 %v6894_v51, %v1050_v26  ;;  %v1049_v17 = vmul.f32 %v5872_v62, %v8795_v39  ;;  %v6010_v6 = vld [vmem:[%s6136_s14 + $0xc0] sm:$0xff]  ;;  %v5882_v39 = vpop.eup %5881 }
 0x1ba   :  { %v935_v12 = vmax.f32 %v903_v46, 0.0  ;;  %v904_v14 = vsub.f32 %v814_v54, %v872_v21  ;;  %v7012_v2 = vpop.f32.mrf.mxu1  ;;  %1634 = vmatpush1.msra.mxu1 %v6010_v6  ;;  %v998_v54 = vadd.f32 1e-05, %v934_v9  ;;  %v6012_v9 = vld [vmem:[%s6136_s14 + $0xb0] sm:$0xff]  ;;  %5895 = vrsqrt.f32 %v997_v56 }
 0x1bb   :  { %v818_v53 = vpop.f32.mrf.mxu0  ;;  %v874_v46 = vmul.f32 %v7012_v2, %v7012_v2  ;;  %v1136_v4 = vadd.f32 %v6902_v59, %v1093_v30  ;;  %v1092_v3 = vmul.f32 %v6891_v47, %v1049_v17  ;;  %1635 = vmatprep.subr.mxu1 %v6011_v19 }
 0x1bc   :  { %v905_v21 = vsub.f32 %v818_v53, %v873_v31  ;;  %v936_v26 = vmax.f32 %v904_v14, 0.0  ;;  %v7026_v27 = vpop.f32.mrf.mxu1  ;;  %v999_v52 = vadd.f32 1e-05, %v935_v12  ;;  %1636 = vmatpush1.msra.mxu1 %v6012_v9  ;;  %v8796_v12 = vsub.f32 %v8784_v43, %v6882_v28 }
 0x1bd   :  { %v820_v62 = vpop.f32.mrf.mxu0  ;;  %v875_v31 = vmul.f32 %v7026_v27, %v7026_v27  ;;  %v1168_v14 = vmax.f32 %v1136_v4, 0.0  ;;  %v1135_v17 = vadd.f32 %v6899_v58, %v1092_v3  ;;  %1637 = vmatprep.subr.mxu1 %v6013_v22  ;;  %v7042_v4 = vpop.eup %5883  ;;  %5897 = vrsqrt.f32 %v998_v54 }
 0x1be   :  { %v906_v53 = vsub.f32 %v820_v62, %v874_v46  ;;  %v937_v30 = vmax.f32 %v905_v21, 0.0  ;;  %v7033_v6 = vpop.f32.mrf.mxu1  ;;  %v1000_v29 = vadd.f32 1e-05, %v936_v26  ;;  %v1052_v19 = vmul.f32 %v5878_v42, %v8796_v12  ;;  %1638 = vmatpush1.msra.mxu1 %v6014_v7  ;;  %v6015_v26 = vld [vmem:[%s6136_s14 + $0x98] sm:$0xff]  ;;  %v5886_v28 = vpop.eup %5885  ;;  %v6017_v7 = vld [vmem:[%s6136_s14 + $0x88] sm:$0xff] }
 0x1bf   :  { %v824_v44 = vpop.f32.mrf.mxu0  ;;  %v876_v46 = vmul.f32 %v7033_v6, %v7033_v6  ;;  %1347 = vmatprep.mubr.f32.mxu1 %v1168_v14  ;;  %v1167_v21 = vmax.f32 %v1135_v17, 0.0  ;;  %1639 = vmatprep.subr.mxu1 %v6015_v26  ;;  %v968_v43 = vsub.f32 %v6672_v37, %v6989_v1  ;;  %5899 = vrsqrt.f32 %v999_v52 }
 0x1c0   :  { %v938_v3 = vmax.f32 %v906_v53, 0.0  ;;  %v907_v62 = vsub.f32 %v824_v44, %v875_v31  ;;  %v7044_v22 = vpop.f32.mrf.mxu1  ;;  %v1095_v42 = vmul.f32 %v6894_v51, %v1052_v19  ;;  %v8797_v54 = vsub.f32 %v8783_v32, %v6878_v25  ;;  %v6016_v53 = vld [vmem:[%s6136_s14 + $0x90] sm:$0xff]  ;;  %v7060_v19 = vpop.eup %5887 }
 0x1c1   :  { %v826_v56 = vpop.f32.mrf.mxu0  ;;  %1640 = vmatpush1.msra.mxu1 %v6016_v53  ;;  %v1001_v44 = vadd.f32 1e-05, %v937_v30  ;;  %v877_v14 = vmul.f32 %v7044_v22, %v7044_v22  ;;  %5901 = vrsqrt.f32 %v1000_v29 }
 0x1c2   :  { %v1051_v9 = vmul.f32 %v7004_v5, %v8797_v54  ;;  %1348 = vmatmul.mubr.f32.gmra.mxu1 %v1167_v21  ;;  %v939_v31 = vmax.f32 %v907_v62, 0.0  ;;  %v908_v17 = vsub.f32 %v826_v56, %v876_v46  ;;  %v7057_v12 = vpop.f32.mrf.mxu1  ;;  %1641 = vmatprep.subr.mxu1 %v6017_v7  ;;  %v1138_v25 = vadd.f32 %v6902_v59, %v1095_v42  ;;  %v6018_v21 = vld [vmem:[%s6136_s14 + $0x80] sm:$0xff]  ;;  %v7068_v46 = vpop.eup %5889  ;;  %v6020_v7 = vld [vmem:[%s6136_s14 + $0x70] sm:$0xff] }
 0x1c3   :  { %v830_v52 = vpop.f32.mrf.mxu0  ;;  %v8798_v5 = vsub.f32 %v8786_v63, %v6896_v55  ;;  %1642 = vmatpush1.msra.mxu1 %v6018_v21  ;;  %v1002_v62 = vadd.f32 1e-05, %v938_v3  ;;  %v878_v54 = vmul.f32 %v7057_v12, %v7057_v12  ;;  %v969_v3 = vsub.f32 %v6681_v33, %v6998_v34  ;;  %v8811_v33 = vld [vmem:[#allocation37_spill] sm:$0xff] }
 0x1c4   :  { %v1094_v32 = vmul.f32 %v6891_v47, %v1051_v9  ;;  %v1003_v56 = vadd.f32 1e-05, %v939_v31  ;;  %v940_v26 = vmax.f32 %v908_v17, 0.0  ;;  %v7072_v29 = vpop.f32.mrf.mxu1  ;;  %v6019_v9 = vld [vmem:[%s6136_s14 + $0x78] sm:$0xff]  ;;  %v1170_v53 = vmax.f32 %v1138_v25, 0.0 }
 0x1c5   :  { %v1054_v30 = vmul.f32 %v5882_v39, %v8798_v5  ;;  %v832_v42 = vpop.f32.mrf.mxu0  ;;  %1643 = vmatprep.subr.mxu1 %v6019_v9  ;;  %v909_v39 = vsub.f32 %v830_v52, %v877_v14  ;;  %5903 = vrsqrt.f32 %v1001_v44  ;;  %v8799_v31 = vsub.f32 %v8785_v45, %v6886_v40  ;;  %v6021_v14 = vld [vmem:[%s6136_s14 + $0x68] sm:$0xff]  ;;  %v6022_v9 = vld [vmem:[%s6136_s14 + $0x60] sm:$0xff] }
 0x1c6   :  { %v1137_v55 = vadd.f32 %v6899_v58, %v1094_v32  ;;  %1644 = vmatpush1.msra.mxu1 %v6020_v7  ;;  %v879_v25 = vmul.f32 %v7072_v29, %v7072_v29  ;;  %v7086_v5 = vpop.f32.mrf.mxu1  ;;  %1353 = vmatprep.mubr.f32.mxu1 %v1170_v53  ;;  %5905 = vrsqrt.f32 %v1002_v62  ;;  %v910_v45 = vsub.f32 %v832_v42, %v878_v54  ;;  %v6023_v53 = vld [vmem:[%s6136_s14 + $0x58] sm:$0xff] }
 0x1c7   :  { %v1097_v63 = vmul.f32 %v6894_v51, %v1054_v30  ;;  %v1053_v17 = vmul.f32 %v7017_v60, %v8799_v31  ;;  %v836_v32 = vpop.f32.mrf.mxu0  ;;  %1645 = vmatprep.subr.mxu1 %v6021_v14  ;;  %v1004_v30 = vadd.f32 1e-05, %v940_v26  ;;  %v941_v44 = vmax.f32 %v909_v39, 0.0 }
 0x1c8   :  { %v1169_v52 = vmax.f32 %v1137_v55, 0.0  ;;  %1646 = vmatpush1.msra.mxu1 %v6022_v9  ;;  %v8800_v60 = vsub.f32 %v8788_v18, %v6924_v38  ;;  %v7095_v31 = vpop.f32.mrf.mxu1  ;;  %5907 = vrsqrt.f32 %v1003_v56  ;;  %v880_v62 = vmul.f32 %v7086_v5, %v7086_v5 }
 0x1c9   :  { %v1140_v21 = vadd.f32 %v6902_v59, %v1097_v63  ;;  %v1096_v40 = vmul.f32 %v6891_v47, %v1053_v17  ;;  %v838_v14 = vpop.f32.mrf.mxu0  ;;  %1647 = vmatprep.subr.mxu1 %v6023_v53  ;;  %v1005_v55 = vadd.f32 1e-05, %v941_v44  ;;  %v7100_v63 = vpop.eup %5891  ;;  %v942_v38 = vmax.f32 %v910_v45, 0.0  ;;  %v6024_v17 = vld [vmem:[%s6136_s14 + $0x50] sm:$0xff] }
 0x1ca   :  { %v1056_v7 = vmul.f32 %v5886_v28, %v8800_v60  ;;  %1354 = vmatmul.mubr.f32.gmra.mxu1 %v1169_v52  ;;  %v911_v28 = vsub.f32 %v836_v32, %v879_v25  ;;  %v7104_v42 = vpop.f32.mrf.mxu1  ;;  %v5894_v56 = vpop.eup %5893  ;;  %v970_v52 = vsub.f32 %v6688_v10, %v7012_v2  ;;  %5909 = vrsqrt.f32 %v1004_v30  ;;  %v6025_v32 = vld [vmem:[%s6136_s14 + $0x48] sm:$0xff]  ;;  %v6039_v2 = vld [vmem:[%s6136_s14 + $0x1d8] sm:$0xff] }
 0x1cb   :  { %v1172_v26 = vmax.f32 %v1140_v21, 0.0  ;;  %v1139_v54 = vadd.f32 %v6899_v58, %v1096_v40  ;;  %v842_v39 = vpop.f32.mrf.mxu0  ;;  %1648 = vmatpush1.msra.mxu1 %v6024_v17  ;;  %v8801_v21 = vsub.f32 %v8787_v24, %v6912_v16  ;;  %v881_v25 = vmul.f32 %v7095_v31, %v7095_v31  ;;  %v7116_v9 = vpop.eup %5895 }
 0x1cc   :  { %v1099_v18 = vmul.f32 %v6894_v51, %v1056_v7  ;;  %1649 = vmatprep.subr.mxu1 %v6025_v32  ;;  %v1006_v45 = vadd.f32 1e-05, %v942_v38  ;;  %v943_v7 = vmax.f32 %v911_v28, 0.0  ;;  %v7119_v30 = vpop.f32.mrf.mxu1  ;;  %v5898_v16 = vpop.eup %5897  ;;  %5911 = vrsqrt.f32 %v1005_v55  ;;  %v6027_v38 = vld [vmem:[%s6136_s14 + $0x38] sm:$0xff]  ;;  %v6028_v32 = vld [vmem:[%s6136_s14 + $0x30] sm:$0xff] }
 0x1cd   :  { %1359 = vmatprep.mubr.f32.mxu1 %v1172_v26  ;;  %v1055_v44 = vmul.f32 %v7042_v4, %v8801_v21  ;;  %v1171_v40 = vmax.f32 %v1139_v54, 0.0  ;;  %v844_v53 = vpop.f32.mrf.mxu0  ;;  %v6026_v26 = vld [vmem:[%s6136_s14 + $0x40] sm:$0xff]  ;;  %v912_v4 = vsub.f32 %v838_v14, %v880_v62  ;;  %v8802_v17 = vsub.f32 %v8791_v35, %v6938_v50 }
 0x1ce   :  { %v1142_v60 = vadd.f32 %v6902_v59, %v1099_v18  ;;  %1650 = vmatpush1.msra.mxu1 %v6026_v26  ;;  %v7128_v18 = vpop.eup %5899  ;;  %5913 = vrsqrt.f32 %v1006_v45  ;;  %v1007_v21 = vadd.f32 1e-05, %v943_v7  ;;  %v882_v55 = vmul.f32 %v7104_v42, %v7104_v42 }
 0x1cf   :  { %v1098_v24 = vmul.f32 %v6891_v47, %v1055_v44  ;;  %v1058_v54 = vmul.f32 %v7068_v46, %v8802_v17  ;;  %1651 = vmatprep.subr.mxu1 %v6027_v38  ;;  %1360 = vmatmul.mubr.f32.gmra.mxu1 %v1171_v40  ;;  %v848_v44 = vpop.f32.mrf.mxu0  ;;  %v944_v62 = vmax.f32 %v912_v4, 0.0  ;;  %v913_v35 = vsub.f32 %v842_v39, %v881_v25  ;;  %v7134_v46 = vpop.f32.mrf.mxu1  ;;  %v6029_v25 = vld [vmem:[%s6136_s14 + $0x28] sm:$0xff] }
 0x1d0   :  { %v1174_v28 = vmax.f32 %v1142_v60, 0.0  ;;  %1652 = vmatpush1.msra.mxu1 %v6028_v32  ;;  %v5902_v40 = vpop.eup %5901  ;;  %v972_v45 = vsub.f32 %v6704_v15, %v7033_v6  ;;  %5915 = vrsqrt.f32 %v1007_v21  ;;  %v8803_v60 = vsub.f32 %v8789_v11, %v6930_v48  ;;  %v6031_v32 = vld [vmem:[%s6136_s14 + $0x18] sm:$0xff] }
 0x1d1   :  { %v1141_v14 = vadd.f32 %v6899_v58, %v1098_v24  ;;  %v1101_v50 = vmul.f32 %v6894_v51, %v1058_v54  ;;  %v883_v39 = vmul.f32 %v7119_v30, %v7119_v30  ;;  %1653 = vmatprep.subr.mxu1 %v6029_v25  ;;  %v1008_v24 = vadd.f32 1e-05, %v944_v62  ;;  %v6030_v54 = vld [vmem:[%s6136_s14 + $0x20] sm:$0xff]  ;;  %v850_v21 = vpop.f32.mrf.mxu0 }
 0x1d2   :  { %1365 = vmatprep.mubr.f32.mxu1 %v1174_v28  ;;  %v1057_v7 = vmul.f32 %v7060_v19, %v8803_v60  ;;  %v945_v17 = vmax.f32 %v913_v35, 0.0  ;;  %1654 = vmatpush1.msra.mxu1 %v6030_v54  ;;  %v914_v28 = vsub.f32 %v844_v53, %v882_v55  ;;  %v8804_v48 = vsub.f32 %v6644_v61, %v6953_v49  ;;  %v6032_v35 = vld [vmem:[%s6136_s14 + $0x10] sm:$0xff] }
 0x1d3   :  { %v1173_v26 = vmax.f32 %v1141_v14, 0.0  ;;  %v1144_v4 = vadd.f32 %v6902_v59, %v1101_v50  ;;  %v884_v19 = vmul.f32 %v7134_v46, %v7134_v46  ;;  %1655 = vmatprep.subr.mxu1 %v6031_v32  ;;  %v7155_v14 = vpop.eup %5903  ;;  %v974_v62 = vsub.f32 %v6720_v20, %v7057_v12  ;;  %v6041_v20 = vld [vmem:[%s6136_s14 + $0x1c8] sm:$0xff] }
 0x1d4   :  { %v1100_v38 = vmul.f32 %v6891_v47, %v1057_v7  ;;  %v1060_v11 = vmul.f32 %v5894_v56, %v8804_v48  ;;  %5917 = vrsqrt.f32 %v1008_v24  ;;  %v1009_v55 = vadd.f32 1e-05, %v945_v17  ;;  %1656 = vmatpush1.msra.mxu1 %v6032_v35  ;;  %v5906_v60 = vpop.eup %5905  ;;  %v6033_v17 = vld [vmem:[%s6136_s14 + $0x8] sm:$0xff]  ;;  %v6034_v48 = vld [vmem:[%s6136_s14] sm:$0xff] }
 0x1d5   :  { %1366 = vmatmul.mubr.f32.gmra.mxu1 %v1173_v26  ;;  %v1176_v53 = vmax.f32 %v1144_v4, 0.0  ;;  %v946_v49 = vmax.f32 %v914_v28, 0.0  ;;  %v915_v50 = vsub.f32 %v848_v44, %v883_v39  ;;  %v8805_v7 = vsub.f32 %v6637_v57, %v6945_v8  ;;  %1657 = vmatprep.subr.mxu1 %v6033_v17  ;;  %v5908_v44 = vpop.eup %5907 }
 0x1d6   :  { %v1143_v61 = vadd.f32 %v6899_v58, %v1100_v38  ;;  %v1103_v56 = vmul.f32 %v6894_v51, %v1060_v11  ;;  %5919 = vrsqrt.f32 %v1009_v55  ;;  %v916_v26 = vsub.f32 %v850_v21, %v884_v19  ;;  %1658 = vmatpush1.msra.mxu1 %v6034_v48  ;;  %v6042_v48 = vld [vmem:[%s6136_s14 + $0x1c0] sm:$0xff] }
 0x1d7   :  { %1371 = vmatprep.mubr.f32.mxu1 %v1176_v53  ;;  %v1059_v25 = vmul.f32 %v7100_v63, %v8805_v7  ;;  %v8806_v24 = vsub.f32 %v6658_v13, %v6969_v36  ;;  %v1010_v54 = vadd.f32 1e-05, %v946_v49  ;;  %v947_v28 = vmax.f32 %v915_v50, 0.0  ;;  %v5910_v11 = vpop.eup %5909 }
 0x1d8   :  { %v1175_v39 = vmax.f32 %v1143_v61, 0.0  ;;  %v1146_v38 = vadd.f32 %v6902_v59, %v1103_v56  ;;  %v948_v8 = vmax.f32 %v916_v26, 0.0  ;;  %v8807_v13 = vsub.f32 %v6652_v41, %v6960_v23  ;;  %v6036_v23 = vld [vmem:[%s6136_s14 + $0x1f0] sm:$0xff]  ;;  %v8808_v56 = vld [vmem:[#allocation3_spill] sm:$0xff] }
 0x1d9   :  { %v1062_v4 = vmul.f32 %v5898_v16, %v8806_v24  ;;  %v1102_v57 = vmul.f32 %v6891_v47, %v1059_v25  ;;  %v6035_v16 = vld [vmem:[%s6136_s14 + $0x1f8] sm:$0xff]  ;;  %5921 = vrsqrt.f32 %v1010_v54  ;;  %v1011_v21 = vadd.f32 1e-05, %v947_v28  ;;  %v6038_v26 = vld [vmem:[%s6136_s14 + $0x1e0] sm:$0xff] }
 0x1da   :  { %v1061_v36 = vmul.f32 %v7116_v9, %v8807_v13  ;;  %1659 = vmatprep.subr.mxu1 %v6035_v16  ;;  %1372 = vmatmul.mubr.f32.gmra.mxu1 %v1175_v39  ;;  %v1178_v19 = vmax.f32 %v1146_v38, 0.0  ;;  %v1064_v32 = vmul.f32 %v5902_v40, %v968_v43  ;;  %v1012_v55 = vadd.f32 1e-05, %v948_v8  ;;  %v5912_v9 = vpop.eup %5911  ;;  %v6037_v43 = vld [vmem:[%s6136_s14 + $0x1e8] sm:$0xff]  ;;  %v6040_v38 = vld [vmem:[%s6136_s14 + $0x1d0] sm:$0xff] }
 0x1db   :  { %v1105_v63 = vmul.f32 %v6894_v51, %v1062_v4  ;;  %v1145_v53 = vadd.f32 %v6899_v58, %v1102_v57  ;;  %1660 = vmatpush2.msra.mxu1 %v6036_v23  ;;  %5923 = vrsqrt.f32 %v1011_v21  ;;  %v8809_v50 = vsub.f32 %v6665_v0, %v8808_v56  ;;  %v5914_v40 = vpop.eup %5913  ;;  %v8813_v57 = vld [vmem:[#allocation36_spill] sm:$0xff]  ;;  %v6043_v21 = vld [vmem:[%s6136_s14 + $0x1b8] sm:$0xff] }
 0x1dc   :  { %v1104_v41 = vmul.f32 %v6891_v47, %v1061_v36  ;;  %1377 = vmatprep.mubr.f32.mxu1 %v1178_v19  ;;  %v1107_v49 = vmul.f32 %v6894_v51, %v1064_v32  ;;  %v1066_v1 = vmul.f32 %v5906_v60, %v970_v52  ;;  %1661 = vmatprep.subr.mxu1 %v6037_v43  ;;  %5925 = vrsqrt.f32 %v1012_v55  ;;  %v8810_v60 = vld [vmem:[#allocation35_spill] sm:$0xff]  ;;  %v6044_v55 = vld [vmem:[%s6136_s14 + $0x1b0] sm:$0xff] }
 0x1dd   :  { %v1148_v61 = vadd.f32 %v6902_v59, %v1105_v63  ;;  %v1063_v37 = vmul.f32 %v7128_v18, %v8809_v50  ;;  %v1177_v35 = vmax.f32 %v1145_v53, 0.0  ;;  %1662 = vmatpush2.msra.mxu1 %v6038_v26  ;;  %v1065_v10 = vmul.f32 %v7155_v14, %v969_v3  ;;  %v5916_v52 = vpop.eup %5915  ;;  %v8814_v63 = vld [vmem:[#allocation39_spill] sm:$0xff] }
 0x1de   :  { %v1147_v25 = vadd.f32 %v6899_v58, %v1104_v41  ;;  %v1150_v24 = vadd.f32 %v6902_v59, %v1107_v49  ;;  %v1109_v18 = vmul.f32 %v6894_v51, %v1066_v1  ;;  %1663 = vmatprep.subr.mxu1 %v6039_v2  ;;  %v971_v4 = vsub.f32 %v8810_v60, %v7026_v27  ;;  %v6045_v50 = vld [vmem:[%s6136_s14 + $0x1a8] sm:$0xff]  ;;  %v8816_v1 = vld [vmem:[#allocation41_spill] sm:$0xff] }
 0x1df   :  { %v1180_v7 = vmax.f32 %v1148_v61, 0.0  ;;  %v1106_v0 = vmul.f32 %v6891_v47, %v1063_v37  ;;  %1378 = vmatmul.mubr.f32.gmra.mxu1 %v1177_v35  ;;  %v1068_v17 = vmul.f32 %v5910_v11, %v972_v45  ;;  %v1070_v39 = vmul.f32 %v5914_v40, %v974_v62  ;;  %v8815_v61 = vld [vmem:[#allocation40_spill] sm:$0xff]  ;;  %v6047_v2 = vld [vmem:[%s6136_s14 + $0x198] sm:$0xff] }
 0x1e0   :  { %v975_v34 = vsub.f32 %v8811_v33, %v7072_v29  ;;  %v1179_v3 = vmax.f32 %v1147_v25, 0.0  ;;  %v1182_v14 = vmax.f32 %v1150_v24, 0.0  ;;  %v1152_v54 = vadd.f32 %v6902_v59, %v1109_v18  ;;  %1664 = vmatpush2.msra.mxu1 %v6040_v38  ;;  %v8812_v29 = vld [vmem:[#allocation38_spill] sm:$0xff]  ;;  %v6049_v33 = vld [vmem:[%s6136_s14 + $0x188] sm:$0xff] }
 0x1e1   :  { %1383 = vmatprep.mubr.f32.mxu1 %v1180_v7  ;;  %v1149_v27 = vadd.f32 %v6899_v58, %v1106_v0  ;;  %v1108_v15 = vmul.f32 %v6891_v47, %v1065_v10  ;;  %v1111_v6 = vmul.f32 %v6894_v51, %v1068_v17  ;;  %v1067_v45 = vmul.f32 %v5908_v44, %v971_v4  ;;  %v5918_v12 = vpop.eup %5917  ;;  %v6046_v25 = vld [vmem:[%s6136_s14 + $0x1a0] sm:$0xff] }
 0x1e2   :  { %1665 = vmatprep.subr.mxu1 %v6041_v20  ;;  %v976_v62 = vsub.f32 %v8812_v29, %v7086_v5  ;;  %v1071_v28 = vmul.f32 %v5916_v52, %v975_v34  ;;  %v973_v8 = vsub.f32 %v8813_v57, %v7044_v22  ;;  %v977_v13 = vsub.f32 %v8814_v63, %v7095_v31  ;;  %v8817_v24 = vld [vmem:[#allocation42_spill] sm:$0xff]  ;;  %v6052_v20 = vld [vmem:[%s6136_s14 + $0x170] sm:$0xff] }
 0x1e3   :  { %1666 = vmatpush2.msra.mxu1 %v6042_v48  ;;  %v1113_v44 = vmul.f32 %v6894_v51, %v1070_v39  ;;  %v5920_v36 = vpop.eup %5919  ;;  %v1184_v16 = vmax.f32 %v1152_v54, 0.0  ;;  %v1154_v11 = vadd.f32 %v6902_v59, %v1111_v6  ;;  %v1181_v32 = vmax.f32 %v1149_v27, 0.0  ;;  %v6048_v39 = vld [vmem:[%s6136_s14 + $0x190] sm:$0xff]  ;;  %v6050_v54 = vld [vmem:[%s6136_s14 + $0x180] sm:$0xff]  ;;  %v6051_v6 = vld [vmem:[%s6136_s14 + $0x178] sm:$0xff] }
 0x1e4   :  { %1384 = vmatmul.mubr.f32.gmra.mxu1 %v1179_v3  ;;  %v1072_v5 = vmul.f32 %v5918_v12, %v976_v62  ;;  %v1114_v19 = vmul.f32 %v6891_v47, %v1071_v28  ;;  %1667 = vmatprep.subr.mxu1 %v6043_v21  ;;  %v1151_v22 = vadd.f32 %v6899_v58, %v1108_v15  ;;  %v6053_v12 = vld [vmem:[%s6136_s14 + $0x168] sm:$0xff]  ;;  %v6054_v62 = vld [vmem:[%s6136_s14 + $0x160] sm:$0xff]  ;;  %v6055_v28 = vld [vmem:[%s6136_s14 + $0x158] sm:$0xff] }
 0x1e5   :  { %1389 = vmatprep.mubr.f32.mxu1 %v1182_v14  ;;  %v1110_v53 = vmul.f32 %v6891_v47, %v1067_v45  ;;  %v1069_v31 = vmul.f32 %v5912_v9, %v973_v8  ;;  %1668 = vmatpush2.msra.mxu1 %v6044_v55  ;;  %v978_v41 = vsub.f32 %v8815_v61, %v7104_v42  ;;  %v1186_v40 = vmax.f32 %v1154_v11, 0.0  ;;  %v6057_v48 = vld [vmem:[%s6136_s14 + $0x148] sm:$0xff]  ;;  %v6058_v57 = vld [vmem:[%s6136_s14 + $0x140] sm:$0xff]  ;;  %v6059_v63 = vld [vmem:[%s6136_s14 + $0x138] sm:$0xff] }
 0x1e6   :  { %v1115_v23 = vmul.f32 %v6894_v51, %v1072_v5  ;;  %v7239_v49 = vadd.f32 %v6899_v58, %v1114_v19  ;;  %v1073_v56 = vmul.f32 %v5920_v36, %v977_v13  ;;  %1669 = vmatprep.subr.mxu1 %v6045_v50  ;;  %v5922_v37 = vpop.eup %5921  ;;  %v979_v43 = vsub.f32 %v8816_v1, %v7119_v30  ;;  %v6060_v13 = vld [vmem:[%s6136_s14 + $0x130] sm:$0xff]  ;;  %v6063_v5 = vld [vmem:[%s6136_s14 + $0x118] sm:$0xff]  ;;  %v6065_v21 = vld [vmem:[%s6136_s14 + $0x108] sm:$0xff] }
 0x1e7   :  { %v1156_v9 = vadd.f32 %v6902_v59, %v1113_v44  ;;  %v1074_v35 = vmul.f32 %v5922_v37, %v978_v41  ;;  %1670 = vmatpush2.msra.mxu1 %v6046_v25  ;;  %v980_v0 = vsub.f32 %v8817_v24, %v7134_v46  ;;  %v1183_v18 = vmax.f32 %v1151_v22, 0.0  ;;  %v6061_v44 = vld [vmem:[%s6136_s14 + $0x128] sm:$0xff]  ;;  %v6064_v19 = vld [vmem:[%s6136_s14 + $0x110] sm:$0xff]  ;;  %v2169_v25 = vld [vmem:[%s7284_s4 + $0x138] sm:$0xff] }
 0x1e8   :  { %1390 = vmatmul.mubr.f32.gmra.mxu1 %v1181_v32  ;;  %v1158_v42 = vadd.f32 %v6902_v59, %v1115_v23  ;;  %v1116_v7 = vmul.f32 %v6891_v47, %v1073_v56  ;;  %v5924_v26 = vpop.eup %5923  ;;  %v1153_v30 = vadd.f32 %v6899_v58, %v1110_v53  ;;  %v1112_v10 = vmul.f32 %v6891_v47, %v1069_v31  ;;  %v6066_v32 = vld [vmem:[%s6136_s14 + $0x100] sm:$0xff]  ;;  %v2176_v53 = vld [vmem:[%s7284_s4 + $0x170] sm:$0xff]  ;;  %v2175_v1 = vld [vmem:[%s7284_s4 + $0x168] sm:$0xff] }
 0x1e9   :  { %1395 = vmatprep.mubr.f32.mxu1 %v1184_v16  ;;  %1671 = vmatprep.subr.mxu1 %v6047_v2  ;;  %v5926_v52 = vpop.eup %5925  ;;  %v1117_v60 = vmul.f32 %v6894_v51, %v1074_v35  ;;  %v1075_v17 = vmul.f32 %v5924_v26, %v979_v43  ;;  %v1188_v34 = vmax.f32 %v1156_v9, 0.0  ;;  %v1189_v8 = vmax.f32 %v7239_v49, 0.0  ;;  %v6062_v16 = vld [vmem:[%s6136_s14 + $0x120] sm:$0xff]  ;;  %v8819_v41 = vld [vmem:[#allocation20_spill] sm:$0xff]  ;;  %v2173_v9 = vld [vmem:[%s7284_s4 + $0x158] sm:$0xff] }
 0x1ea   :  { %v1159_v4 = vadd.f32 %v6899_v58, %v1116_v7  ;;  %1672 = vmatpush2.msra.mxu1 %v6048_v39  ;;  %v1076_v46 = vmul.f32 %v5926_v52, %v980_v0  ;;  %v1185_v38 = vmax.f32 %v1153_v30, 0.0  ;;  %v1155_v27 = vadd.f32 %v6899_v58, %v1112_v10  ;;  %2243 = vmatprep.subr.mxu0 %v2176_v53  ;;  %v1259_v31 = vld [vmem:[%s5041_s8] sm:$0x3]  ;;  %v2167_v0 = vld [vmem:[%s7284_s4 + $0x128] sm:$0xff]  ;;  %v2164_v2 = vld [vmem:[%s7284_s4 + $0x110] sm:$0xff] }
 0x1eb   :  { %1673 = vmatprep.subr.mxu1 %v6049_v33  ;;  %v1160_v3 = vadd.f32 %v6902_v59, %v1117_v60  ;;  %v1118_v14 = vmul.f32 %v6891_v47, %v1075_v17  ;;  %v1190_v29 = vmax.f32 %v1158_v42, 0.0  ;;  %v8818_v55 = vld [vmem:[#allocation19_spill] sm:$0xff]  ;;  %v7294_v23 = vrot.slane %v1259_v31, %v8819_v41  ;;  %v2172_v42 = vld [vmem:[%s7284_s4 + $0x150] sm:$0xff] }
 0x1ec   :  { %1396 = vmatmul.mubr.f32.gmra.mxu1 %v1183_v18  ;;  %v1119_v15 = vmul.f32 %v6894_v51, %v1076_v46  ;;  %v1187_v51 = vmax.f32 %v1155_v27, 0.0  ;;  %v1191_v11 = vmax.f32 %v1159_v4, 0.0  ;;  %v7291_v61 = vrot.slane %v1259_v31, %v8818_v55  ;;  %v2170_v7 = vld [vmem:[%s7284_s4 + $0x140] sm:$0xff]  ;;  %v2163_v60 = vld [vmem:[%s7284_s4 + $0x108] sm:$0xff]  ;;  %v2161_v4 = vld [vmem:[%s7284_s4 + $0xf8] sm:$0xff] }
 0x1ed   :  { %1401 = vmatprep.mubr.f32.mxu1 %v1186_v40  ;;  %1674 = vmatpush2.msra.mxu1 %v6050_v54  ;;  %v1161_v45 = vadd.f32 %v6899_v58, %v1118_v14  ;;  %v6056_v58 = vld [vmem:[%s6136_s14 + $0x150] sm:$0xff]  ;;  %v2166_v30 = vld [vmem:[%s7284_s4 + $0x120] sm:$0xff]  ;;  %v2155_v54 = vld [vmem:[%s7284_s4 + $0xc8] sm:$0xff]  ;;  %s5046_s14 = sld [smem:[%s8655_s0 + %s6101_s10]]  }
 0x1ee   :  { %1675 = vmatprep.subr.mxu1 %v6051_v6  ;;  %v1162_v47 = vadd.f32 %v6902_v59, %v1119_v15  ;;  %v1192_v59 = vmax.f32 %v1160_v3, 0.0  ;;  %v2160_v39 = vld [vmem:[%s7284_s4 + $0xf0] sm:$0xff]  ;;  %v2158_v46 = vld [vmem:[%s7284_s4 + $0xe0] sm:$0xff]  ;;  %v2157_v3 = vld [vmem:[%s7284_s4 + $0xd8] sm:$0xff]  ;;  %s5055_s10 = sld [smem:[%s8655_s0 + %s6116_s7]]  }
 0x1ef   :  { %1676 = vmatpush2.msra.mxu1 %v6052_v20  ;;  %v1193_v22 = vmax.f32 %v1161_v45, 0.0  ;;  %v2152_v15 = vld [vmem:[%s7284_s4 + $0xb0] sm:$0xff]  ;;  %v2151_v45 = vld [vmem:[%s7284_s4 + $0xa8] sm:$0xff] }
 0x1f0   :  { %1402 = vmatmul.mubr.f32.gmra.mxu1 %v1185_v38  ;;  %1677 = vmatprep.subr.mxu1 %v6053_v12  ;;  %v1194_v36 = vmax.f32 %v1162_v47, 0.0  ;;  %v2154_v38 = vld [vmem:[%s7284_s4 + $0xc0] sm:$0xff]  ;;  %v2149_v47 = vld [vmem:[%s7284_s4 + $0x98] sm:$0xff]  ;;  %v2148_v12 = vld [vmem:[%s7284_s4 + $0x90] sm:$0xff] }
 0x1f1   :  { %1407 = vmatprep.mubr.f32.mxu1 %v1188_v34  ;;  %1678 = vmatpush2.msra.mxu1 %v6054_v62 }
 0x1f2   :  { %1679 = vmatprep.subr.mxu1 %v6055_v28 }
 0x1f3   :  { %1680 = vmatpush2.msra.mxu1 %v6056_v58  ;;  %v2145_v58 = vld [vmem:[%s7284_s4 + $0x78] sm:$0xff] }
 0x1f4   :  { %1408 = vmatmul.mubr.f32.gmra.mxu1 %v1187_v51  ;;  %1681 = vmatprep.subr.mxu1 %v6057_v48  ;;  %v2146_v51 = vld [vmem:[%s7284_s4 + $0x80] sm:$0xff] }
 0x1f5   :  { %1413 = vmatprep.mubr.f32.mxu1 %v1190_v29  ;;  %1682 = vmatpush2.msra.mxu1 %v6058_v57  ;;  %v2143_v57 = vld [vmem:[%s7284_s4 + $0x68] sm:$0xff] }
 0x1f6   :  { %1683 = vmatprep.subr.mxu1 %v6059_v63  ;;  %v2142_v63 = vld [vmem:[%s7284_s4 + $0x60] sm:$0xff] }
 0x1f7   :  { %1684 = vmatpush2.msra.mxu1 %v6060_v13 }
 0x1f8   :  { %1414 = vmatmul.mubr.f32.gmra.mxu1 %v1189_v8  ;;  %1685 = vmatprep.subr.mxu1 %v6061_v44 }
 0x1f9   :  { %1419 = vmatprep.mubr.f32.mxu1 %v1192_v59  ;;  %1686 = vmatpush2.msra.mxu1 %v6062_v16 }
 0x1fa   :  { %1687 = vmatprep.subr.mxu1 %v6063_v5 }
 0x1fb   :  { %1688 = vmatpush2.msra.mxu1 %v6064_v19 }
 0x1fc   :  { %1420 = vmatmul.mubr.f32.gmra.mxu1 %v1191_v11  ;;  %1689 = vmatprep.subr.mxu1 %v6065_v21  ;;  %v2139_v11 = vld [vmem:[%s7284_s4 + $0x48] sm:$0xff]  ;;  %v2137_v21 = vld [vmem:[%s7284_s4 + $0x38] sm:$0xff] }
 0x1fd   :  { %1425 = vmatprep.mubr.f32.mxu1 %v1194_v36  ;;  %1690 = vmatpush2.msra.mxu1 %v6066_v32  ;;  %v2140_v36 = vld [vmem:[%s7284_s4 + $0x50] sm:$0xff] }
 0x200   :  { %1426 = vmatmul.mubr.f32.gmra.mxu1 %v1193_v22  ;;  %v2136_v22 = vld [vmem:[%s7284_s4 + $0x30] sm:$0xff] }
 0x272   :  { %v1337_v49 = vpop.f32.mrf.mxu1 }
 0x273   :  { %v7297_v56 = vadd.f32 %v1337_v49, %v7291_v61  ;;  %v2134_v49 = vld [vmem:[%s7284_s4 + $0x20] sm:$0xff] }
 0x274   :  { %v1339_v50 = vpop.f32.mrf.mxu1 }
 0x275   :  { %v7300_v37 = vadd.f32 %v1339_v50, %v7294_v23  ;;  %v1595_v40 = vmul.f32 %v7297_v56, %v7297_v56 }
 0x277   :  { %1498 = vmatprep.mubr.f32.mxu0 %v7300_v37  ;;  %v1596_v43 = vmul.f32 %v7300_v37, %v7300_v37 }
 0x278   :  { %1499 = vmatmul.mubr.f32.vlgmr.msra.gmra.mxu0 %v7297_v56 }
 0x279   :  { %v1343_v35 = vpop.f32.mrf.mxu1  ;;  %1691 = vmatprep.mubr.f32.mxu1 %v1596_v43  ;;  %2244 = vmatpush1.msra.mxu0 %v2175_v1  ;;  %v2133_v1 = vld [vmem:[%s7284_s4 + $0x18] sm:$0xff] }
 0x27a   :  { %1692 = vmatmul.mubr.f32.vlgmr.msra.gmra.mxu1 %v1595_v40  ;;  %2245 = vmatprep.subr.mxu0 %v2173_v9  ;;  %v7314_v26 = vadd.f32 %v1343_v35, %v7291_v61 }
 0x27b   :  { %v1345_v24 = vpop.f32.mrf.mxu1  ;;  %2246 = vmatpush1.msra.mxu0 %v2172_v42 }
 0x27c   :  { %v7318_v18 = vadd.f32 %v1345_v24, %v7294_v23  ;;  %2247 = vmatprep.subr.mxu0 %v2170_v7  ;;  %v1597_v52 = vmul.f32 %v7314_v26, %v7314_v26 }
 0x27d   :  { %2248 = vmatpush1.msra.mxu0 %v2169_v25 }
 0x27e   :  { %1504 = vmatprep.mubr.f32.mxu0 %v7318_v18  ;;  %v1598_v10 = vmul.f32 %v7318_v18, %v7318_v18  ;;  %2249 = vmatprep.subr.mxu0 %v2167_v0 }
 0x27f   :  { %1505 = vmatmul.mubr.f32.gmra.mxu0 %v7314_v26 }
 0x280   :  { %1697 = vmatprep.mubr.f32.mxu1 %v1598_v10  ;;  %2250 = vmatpush1.msra.mxu0 %v2166_v30 }
 0x281   :  { %1698 = vmatmul.mubr.f32.gmra.mxu1 %v1597_v52  ;;  %2251 = vmatprep.subr.mxu0 %v2164_v2 }
 0x282   :  { %v1349_v17 = vpop.f32.mrf.mxu1  ;;  %2252 = vmatpush1.msra.mxu0 %v2163_v60 }
 0x283   :  { %v7333_v33 = vadd.f32 %v1349_v17, %v7291_v61  ;;  %2253 = vmatprep.subr.mxu0 %v2161_v4 }
 0x284   :  { %v1351_v34 = vpop.f32.mrf.mxu1  ;;  %2254 = vmatpush1.msra.mxu0 %v2160_v39 }
 0x285   :  { %v7337_v14 = vadd.f32 %v1351_v34, %v7294_v23  ;;  %2255 = vmatprep.subr.mxu0 %v2158_v46  ;;  %v1599_v6 = vmul.f32 %v7333_v33, %v7333_v33 }
 0x286   :  { %2256 = vmatpush1.msra.mxu0 %v2157_v3 }
 0x287   :  { %1510 = vmatprep.mubr.f32.mxu0 %v7337_v14  ;;  %v1600_v27 = vmul.f32 %v7337_v14, %v7337_v14  ;;  %2257 = vmatprep.subr.mxu0 %v2155_v54 }
 0x288   :  { %1511 = vmatmul.mubr.f32.gmra.mxu0 %v7333_v33 }
 0x289   :  { %1703 = vmatprep.mubr.f32.mxu1 %v1600_v27  ;;  %2258 = vmatpush1.msra.mxu0 %v2154_v38 }
 0x28a   :  { %v1355_v20 = vpop.f32.mrf.mxu1  ;;  %1704 = vmatmul.mubr.f32.gmra.mxu1 %v1599_v6  ;;  %2259 = vmatprep.subr.mxu0 %v2152_v15 }
 0x28b   :  { %v7352_v29 = vadd.f32 %v1355_v20, %v7291_v61  ;;  %2260 = vmatpush1.msra.mxu0 %v2151_v45 }
 0x28c   :  { %v1357_v62 = vpop.f32.mrf.mxu1  ;;  %2261 = vmatprep.subr.mxu0 %v2149_v47 }
 0x28d   :  { %v7356_v28 = vadd.f32 %v1357_v62, %v7294_v23  ;;  %2262 = vmatpush1.msra.mxu0 %v2148_v12  ;;  %v1601_v8 = vmul.f32 %v7352_v29, %v7352_v29 }
 0x28e   :  { %2263 = vmatprep.subr.mxu0 %v2146_v51 }
 0x28f   :  { %v1361_v48 = vpop.f32.mrf.mxu1  ;;  %1516 = vmatprep.mubr.f32.mxu0 %v7356_v28  ;;  %v1602_v59 = vmul.f32 %v7356_v28, %v7356_v28  ;;  %2264 = vmatpush1.msra.mxu0 %v2145_v58 }
 0x290   :  { %1517 = vmatmul.mubr.f32.gmra.mxu0 %v7352_v29  ;;  %v7368_v13 = vadd.f32 %v1361_v48, %v7291_v61  ;;  %2265 = vmatprep.subr.mxu0 %v2143_v57 }
 0x291   :  { %v1363_v44 = vpop.f32.mrf.mxu1  ;;  %1709 = vmatprep.mubr.f32.mxu1 %v1602_v59  ;;  %2266 = vmatpush1.msra.mxu0 %v2142_v63 }
 0x292   :  { %v7372_v16 = vadd.f32 %v1363_v44, %v7294_v23  ;;  %1710 = vmatmul.mubr.f32.gmra.mxu1 %v1601_v8  ;;  %2267 = vmatprep.subr.mxu0 %v2140_v36  ;;  %v1603_v32 = vmul.f32 %v7368_v13, %v7368_v13 }
 0x293   :  { %2268 = vmatpush1.msra.mxu0 %v2139_v11 }
 0x294   :  { %1522 = vmatprep.mubr.f32.mxu0 %v7372_v16  ;;  %v1604_v19 = vmul.f32 %v7372_v16, %v7372_v16  ;;  %2269 = vmatprep.subr.mxu0 %v2137_v21 }
 0x295   :  { %v1367_v5 = vpop.f32.mrf.mxu1  ;;  %1523 = vmatmul.mubr.f32.gmra.mxu0 %v7368_v13 }
 0x296   :  { %v7384_v53 = vadd.f32 %v1367_v5, %v7291_v61  ;;  %1715 = vmatprep.mubr.f32.mxu1 %v1604_v19  ;;  %2270 = vmatpush1.msra.mxu0 %v2136_v22 }
 0x297   :  { %v1369_v31 = vpop.f32.mrf.mxu1  ;;  %1716 = vmatmul.mubr.f32.gmra.mxu1 %v1603_v32  ;;  %2271 = vmatprep.subr.mxu0 %v2134_v49 }
 0x298   :  { %v7388_v50 = vadd.f32 %v1369_v31, %v7294_v23  ;;  %v1605_v40 = vmul.f32 %v7384_v53, %v7384_v53  ;;  %2272 = vmatpush1.msra.mxu0 %v2133_v1 }
 0x29a   :  { %v1373_v43 = vpop.f32.mrf.mxu1  ;;  %1528 = vmatprep.mubr.f32.mxu0 %v7388_v50  ;;  %v1606_v9 = vmul.f32 %v7388_v50, %v7388_v50 }
 0x29b   :  { %1529 = vmatmul.mubr.f32.gmra.mxu0 %v7384_v53  ;;  %v7398_v42 = vadd.f32 %v1373_v43, %v7291_v61 }
 0x29c   :  { %v1375_v35 = vpop.f32.mrf.mxu1  ;;  %1721 = vmatprep.mubr.f32.mxu1 %v1606_v9 }
 0x29d   :  { %v7401_v7 = vadd.f32 %v1375_v35, %v7294_v23  ;;  %1722 = vmatmul.mubr.f32.gmra.mxu1 %v1605_v40  ;;  %v1607_v0 = vmul.f32 %v7398_v42, %v7398_v42  ;;  %v2131_v40 = vld [vmem:[%s7284_s4 + $0x8] sm:$0xff]  ;;  %v2130_v35 = vld [vmem:[%s7284_s4] sm:$0xff] }
 0x29e   :  { %2273 = vmatprep.subr.mxu0 %v2131_v40  ;;  %v2209_v40 = vld [vmem:[%s7284_s4 + $0x278] sm:$0xff] }
 0x29f   :  { %v1379_v25 = vpop.f32.mrf.mxu1  ;;  %1534 = vmatprep.mubr.f32.mxu0 %v7401_v7  ;;  %v1608_v24 = vmul.f32 %v7401_v7, %v7401_v7  ;;  %2274 = vmatpush1.msra.mxu0 %v2130_v35  ;;  %v2210_v35 = vld [vmem:[%s7284_s4 + $0x280] sm:$0xff] }
 0x2a0   :  { %1535 = vmatmul.mubr.f32.gmra.mxu0 %v7398_v42  ;;  %v7410_v30 = vadd.f32 %v1379_v25, %v7291_v61 }
 0x2a1   :  { %v1381_v10 = vpop.f32.mrf.mxu1  ;;  %1727 = vmatprep.mubr.f32.mxu1 %v1608_v24 }
 0x2a2   :  { %v7413_v2 = vadd.f32 %v1381_v10, %v7294_v23  ;;  %1728 = vmatmul.mubr.f32.gmra.mxu1 %v1607_v0  ;;  %v1609_v39 = vmul.f32 %v7410_v30, %v7410_v30 }
 0x2a4   :  { %v1385_v52 = vpop.f32.mrf.mxu1  ;;  %1540 = vmatprep.mubr.f32.mxu0 %v7413_v2  ;;  %v1610_v60 = vmul.f32 %v7413_v2, %v7413_v2 }
 0x2a5   :  { %v7419_v4 = vadd.f32 %v1385_v52, %v7291_v61  ;;  %1541 = vmatmul.mubr.f32.gmra.mxu0 %v7410_v30 }
 0x2a6   :  { %v1387_v17 = vpop.f32.mrf.mxu1  ;;  %1733 = vmatprep.mubr.f32.mxu1 %v1610_v60 }
 0x2a7   :  { %v7425_v46 = vadd.f32 %v1387_v17, %v7294_v23  ;;  %1734 = vmatmul.mubr.f32.gmra.mxu1 %v1609_v39  ;;  %v1611_v27 = vmul.f32 %v7419_v4, %v7419_v4 }
 0x2a8   :  { %v1391_v34 = vpop.f32.mrf.mxu1 }
 0x2a9   :  { %1546 = vmatprep.mubr.f32.mxu0 %v7425_v46  ;;  %v1612_v3 = vmul.f32 %v7425_v46, %v7425_v46  ;;  %v7431_v54 = vadd.f32 %v1391_v34, %v7291_v61 }
 0x2aa   :  { %v1393_v38 = vpop.f32.mrf.mxu1  ;;  %1547 = vmatmul.mubr.f32.gmra.mxu0 %v7419_v4 }
 0x2ab   :  { %v7437_v15 = vadd.f32 %v1393_v38, %v7294_v23  ;;  %1739 = vmatprep.mubr.f32.mxu1 %v1612_v3  ;;  %v1613_v12 = vmul.f32 %v7431_v54, %v7431_v54 }
 0x2ac   :  { %v1397_v6 = vpop.f32.mrf.mxu1  ;;  %1740 = vmatmul.mubr.f32.gmra.mxu1 %v1611_v27  ;;  %v2225_v27 = vld [vmem:[%s7284_s4 + $0x2f8] sm:$0xff] }
 0x2ad   :  { %1552 = vmatprep.mubr.f32.mxu0 %v7437_v15  ;;  %v1614_v45 = vmul.f32 %v7437_v15, %v7437_v15  ;;  %v7443_v20 = vadd.f32 %v1397_v6, %v7291_v61  ;;  %5194 = vmatprep.subr.mxu1 %v2225_v27  ;;  %v2223_v6 = vld [vmem:[%s7284_s4 + $0x2e8] sm:$0xff]  ;;  %v2156_v27 = vld [vmem:[%s7284_s4 + $0xd0] sm:$0xff] }
 0x2ae   :  { %v1399_v47 = vpop.f32.mrf.mxu1  ;;  %1553 = vmatmul.mubr.f32.gmra.mxu0 %v7431_v54 }
 0x2af   :  { %v7449_v62 = vadd.f32 %v1399_v47, %v7294_v23  ;;  %1745 = vmatprep.mubr.f32.mxu1 %v1614_v45  ;;  %v1615_v57 = vmul.f32 %v7443_v20, %v7443_v20  ;;  %v2177_v45 = vld [vmem:[%s7284_s4 + $0x178] sm:$0xff] }
 0x2b0   :  { %v1403_v51 = vpop.f32.mrf.mxu1  ;;  %1746 = vmatmul.mubr.f32.gmra.mxu1 %v1613_v12  ;;  %v2221_v47 = vld [vmem:[%s7284_s4 + $0x2d8] sm:$0xff]  ;;  %v2222_v12 = vld [vmem:[%s7284_s4 + $0x2e0] sm:$0xff] }
 0x2b1   :  { %1558 = vmatprep.mubr.f32.mxu0 %v7449_v62  ;;  %v1616_v58 = vmul.f32 %v7449_v62, %v7449_v62  ;;  %v7455_v48 = vadd.f32 %v1403_v51, %v7291_v61  ;;  %5195 = vmatpush3.msra.mxu1 %v2177_v45  ;;  %v2220_v51 = vld [vmem:[%s7284_s4 + $0x2d0] sm:$0xff]  ;;  %v2201_v45 = vld [vmem:[%s7284_s4 + $0x238] sm:$0xff] }
 0x2b2   :  { %v1405_v59 = vpop.f32.mrf.mxu1  ;;  %1559 = vmatmul.mubr.f32.gmra.mxu0 %v7443_v20  ;;  %5196 = vmatprep.subr.mxu1 %v2222_v12  ;;  %v2153_v12 = vld [vmem:[%s7284_s4 + $0xb8] sm:$0xff] }
 0x2b3   :  { %v7461_v8 = vadd.f32 %v1405_v59, %v7294_v23  ;;  %1751 = vmatprep.mubr.f32.mxu1 %v1616_v58  ;;  %v1617_v5 = vmul.f32 %v7455_v48, %v7455_v48  ;;  %v2174_v58 = vld [vmem:[%s7284_s4 + $0x160] sm:$0xff] }
 0x2b4   :  { %v1409_v63 = vpop.f32.mrf.mxu1  ;;  %1752 = vmatmul.mubr.f32.gmra.mxu1 %v1615_v57  ;;  %v2218_v59 = vld [vmem:[%s7284_s4 + $0x2c0] sm:$0xff]  ;;  %v2219_v57 = vld [vmem:[%s7284_s4 + $0x2c8] sm:$0xff] }
 0x2b5   :  { %1564 = vmatprep.mubr.f32.mxu0 %v7461_v8  ;;  %v1618_v44 = vmul.f32 %v7461_v8, %v7461_v8  ;;  %v7467_v36 = vadd.f32 %v1409_v63, %v7291_v61  ;;  %5197 = vmatpush3.msra.mxu1 %v2174_v58  ;;  %v2217_v63 = vld [vmem:[%s7284_s4 + $0x2b8] sm:$0xff]  ;;  %v2198_v58 = vld [vmem:[%s7284_s4 + $0x220] sm:$0xff] }
 0x2b6   :  { %v1411_v11 = vpop.f32.mrf.mxu1  ;;  %1565 = vmatmul.mubr.f32.gmra.mxu0 %v7455_v48  ;;  %5198 = vmatprep.subr.mxu1 %v2219_v57  ;;  %v2150_v57 = vld [vmem:[%s7284_s4 + $0xa0] sm:$0xff] }
 0x2b7   :  { %v7473_v19 = vadd.f32 %v1411_v11, %v7294_v23  ;;  %1757 = vmatprep.mubr.f32.mxu1 %v1618_v44  ;;  %v1619_v49 = vmul.f32 %v7467_v36, %v7467_v36  ;;  %v2171_v44 = vld [vmem:[%s7284_s4 + $0x148] sm:$0xff] }
 0x2b8   :  { %v1415_v21 = vpop.f32.mrf.mxu1  ;;  %1758 = vmatmul.mubr.f32.gmra.mxu1 %v1617_v5  ;;  %v2215_v11 = vld [vmem:[%s7284_s4 + $0x2a8] sm:$0xff]  ;;  %v2216_v5 = vld [vmem:[%s7284_s4 + $0x2b0] sm:$0xff] }
 0x2b9   :  { %1570 = vmatprep.mubr.f32.mxu0 %v7473_v19  ;;  %v1620_v32 = vmul.f32 %v7473_v19, %v7473_v19  ;;  %v7479_v22 = vadd.f32 %v1415_v21, %v7291_v61  ;;  %5199 = vmatpush3.msra.mxu1 %v2171_v44  ;;  %v2214_v21 = vld [vmem:[%s7284_s4 + $0x2a0] sm:$0xff]  ;;  %v2195_v44 = vld [vmem:[%s7284_s4 + $0x208] sm:$0xff] }
 0x2ba   :  { %v1417_v31 = vpop.f32.mrf.mxu1  ;;  %1571 = vmatmul.mubr.f32.gmra.mxu0 %v7467_v36  ;;  %5200 = vmatprep.subr.mxu1 %v2216_v5  ;;  %v2147_v5 = vld [vmem:[%s7284_s4 + $0x88] sm:$0xff] }
 0x2bb   :  { %v7485_v1 = vadd.f32 %v1417_v31, %v7294_v23  ;;  %1763 = vmatprep.mubr.f32.mxu1 %v1620_v32  ;;  %v1621_v0 = vmul.f32 %v7479_v22, %v7479_v22  ;;  %v2168_v32 = vld [vmem:[%s7284_s4 + $0x130] sm:$0xff] }
 0x2bc   :  { %v1421_v43 = vpop.f32.mrf.mxu1  ;;  %1764 = vmatmul.mubr.f32.gmra.mxu1 %v1619_v49  ;;  %v2212_v31 = vld [vmem:[%s7284_s4 + $0x290] sm:$0xff]  ;;  %v2213_v49 = vld [vmem:[%s7284_s4 + $0x298] sm:$0xff] }
 0x2bd   :  { %1576 = vmatprep.mubr.f32.mxu0 %v7485_v1  ;;  %v1622_v9 = vmul.f32 %v7485_v1, %v7485_v1  ;;  %v7493_v25 = vadd.f32 %v1421_v43, %v7291_v61  ;;  %v2211_v43 = vld [vmem:[%s7284_s4 + $0x288] sm:$0xff]  ;;  %5201 = vmatpush3.msra.mxu1 %v2168_v32  ;;  %v2192_v32 = vld [vmem:[%s7284_s4 + $0x1f0] sm:$0xff] }
 0x2be   :  { %v1423_v24 = vpop.f32.mrf.mxu1  ;;  %1577 = vmatmul.mubr.f32.gmra.mxu0 %v7479_v22  ;;  %5202 = vmatprep.subr.mxu1 %v2213_v49  ;;  %v2144_v49 = vld [vmem:[%s7284_s4 + $0x70] sm:$0xff] }
 0x2bf   :  { %v7499_v10 = vadd.f32 %v1423_v24, %v7294_v23  ;;  %1769 = vmatprep.mubr.f32.mxu1 %v1622_v9  ;;  %v1623_v34 = vmul.f32 %v7493_v25, %v7493_v25  ;;  %v2165_v9 = vld [vmem:[%s7284_s4 + $0x118] sm:$0xff]  ;;  %v2208_v24 = vld [vmem:[%s7284_s4 + $0x270] sm:$0xff] }
 0x2c0   :  { %v1427_v52 = vpop.f32.mrf.mxu1  ;;  %1770 = vmatmul.mubr.f32.gmra.mxu1 %v1621_v0  ;;  %v2162_v0 = vld [vmem:[%s7284_s4 + $0x100] sm:$0xff] }
 0x2c1   :  { %1582 = vmatprep.mubr.f32.mxu0 %v7499_v10  ;;  %v1624_v60 = vmul.f32 %v7499_v10, %v7499_v10  ;;  %v7505_v17 = vadd.f32 %v1427_v52, %v7291_v61  ;;  %5203 = vmatpush3.msra.mxu1 %v2165_v9  ;;  %v2206_v52 = vld [vmem:[%s7284_s4 + $0x260] sm:$0xff]  ;;  %v2189_v9 = vld [vmem:[%s7284_s4 + $0x1d8] sm:$0xff] }
 0x2c2   :  { %v1429_v39 = vpop.f32.mrf.mxu1  ;;  %1583 = vmatmul.mubr.f32.gmra.mxu0 %v7493_v25  ;;  %5204 = vmatprep.subr.mxu1 %v2210_v35  ;;  %v2141_v35 = vld [vmem:[%s7284_s4 + $0x58] sm:$0xff] }
 0x2c3   :  { %8820 = vst [vmem:[#allocation4_spill] sm:$0xff] %v7505_v17  ;;  %v7511_v3 = vadd.f32 %v1429_v39, %v7294_v23  ;;  %1775 = vmatprep.mubr.f32.mxu1 %v1624_v60  ;;  %v1625_v38 = vmul.f32 %v7505_v17, %v7505_v17  ;;  %v2224_v23 = vld [vmem:[%s7284_s4 + $0x2f0] sm:$0xff]  ;;  %5205 = vmatpush3.msra.mxu1 %v2162_v0  ;;  %v2207_v60 = vld [vmem:[%s7284_s4 + $0x268] sm:$0xff]  ;;  %v2205_v39 = vld [vmem:[%s7284_s4 + $0x258] sm:$0xff] }
 0x2c4   :  { %1776 = vmatmul.mubr.f32.gmra.mxu1 %v1623_v34  ;;  %2275 = vmatprep.subr.mxu0 %v2224_v23  ;;  %v2159_v34 = vld [vmem:[%s7284_s4 + $0xe8] sm:$0xff]  ;;  %v2202_v23 = vld [vmem:[%s7284_s4 + $0x240] sm:$0xff] }
 0x2c5   :  { %1588 = vmatprep.mubr.f32.mxu0 %v7511_v3  ;;  %v1626_v61 = vmul.f32 %v7511_v3, %v7511_v3  ;;  %2276 = vmatpush2.msra.mxu0 %v2223_v6  ;;  %v2200_v6 = vld [vmem:[%s7284_s4 + $0x230] sm:$0xff]  ;;  %v2186_v0 = vld [vmem:[%s7284_s4 + $0x1c0] sm:$0xff] }
 0x2c6   :  { %1589 = vmatmul.mubr.f32.gmra.mxu0 %v7505_v17  ;;  %2277 = vmatprep.subr.mxu0 %v2221_v47  ;;  %v2199_v47 = vld [vmem:[%s7284_s4 + $0x228] sm:$0xff] }
 0x2c7   :  { %1781 = vmatprep.mubr.f32.mxu1 %v1626_v61  ;;  %2278 = vmatpush2.msra.mxu0 %v2220_v51  ;;  %v2203_v61 = vld [vmem:[%s7284_s4 + $0x248] sm:$0xff]  ;;  %v2197_v51 = vld [vmem:[%s7284_s4 + $0x218] sm:$0xff] }
 0x2c8   :  { %1782 = vmatmul.mubr.f32.gmra.mxu1 %v1625_v38  ;;  %2279 = vmatprep.subr.mxu0 %v2218_v59  ;;  %v2204_v38 = vld [vmem:[%s7284_s4 + $0x250] sm:$0xff] }
 0x2c9   :  { %2280 = vmatpush2.msra.mxu0 %v2217_v63  ;;  %5206 = vmatprep.subr.mxu1 %v2207_v60  ;;  %v2196_v59 = vld [vmem:[%s7284_s4 + $0x210] sm:$0xff]  ;;  %v2194_v63 = vld [vmem:[%s7284_s4 + $0x200] sm:$0xff] }
 0x2ca   :  { %2281 = vmatprep.subr.mxu0 %v2215_v11  ;;  %5207 = vmatpush3.msra.mxu1 %v2159_v34  ;;  %v2193_v11 = vld [vmem:[%s7284_s4 + $0x1f8] sm:$0xff]  ;;  %v2138_v60 = vld [vmem:[%s7284_s4 + $0x40] sm:$0xff]  ;;  %v2183_v34 = vld [vmem:[%s7284_s4 + $0x1a8] sm:$0xff] }
 0x2cb   :  { %2282 = vmatpush2.msra.mxu0 %v2214_v21  ;;  %5208 = vmatprep.subr.mxu1 %v2204_v38  ;;  %v2191_v21 = vld [vmem:[%s7284_s4 + $0x1e8] sm:$0xff] }
 0x2cc   :  { %2283 = vmatprep.subr.mxu0 %v2212_v31  ;;  %5209 = vmatpush3.msra.mxu1 %v2156_v27  ;;  %v2190_v31 = vld [vmem:[%s7284_s4 + $0x1e0] sm:$0xff]  ;;  %v2135_v38 = vld [vmem:[%s7284_s4 + $0x28] sm:$0xff]  ;;  %v2180_v27 = vld [vmem:[%s7284_s4 + $0x190] sm:$0xff] }
 0x2cd   :  { %2284 = vmatpush2.msra.mxu0 %v2211_v43  ;;  %5210 = vmatprep.subr.mxu1 %v2201_v45  ;;  %v2188_v43 = vld [vmem:[%s7284_s4 + $0x1d0] sm:$0xff] }
 0x2ce   :  { %2285 = vmatprep.subr.mxu0 %v2209_v40  ;;  %5211 = vmatpush3.msra.mxu1 %v2153_v12  ;;  %v2187_v40 = vld [vmem:[%s7284_s4 + $0x1c8] sm:$0xff]  ;;  %v2132_v45 = vld [vmem:[%s7284_s4 + $0x10] sm:$0xff] }
 0x2cf   :  { %2286 = vmatpush2.msra.mxu0 %v2208_v24  ;;  %5212 = vmatprep.subr.mxu1 %v2198_v58  ;;  %v2185_v24 = vld [vmem:[%s7284_s4 + $0x1b8] sm:$0xff] }
 0x2d0   :  { %2287 = vmatprep.subr.mxu0 %v2206_v52  ;;  %5213 = vmatpush3.msra.mxu1 %v2150_v57  ;;  %v2184_v52 = vld [vmem:[%s7284_s4 + $0x1b0] sm:$0xff] }
 0x2d1   :  { %2288 = vmatpush2.msra.mxu0 %v2205_v39  ;;  %5214 = vmatprep.subr.mxu1 %v2195_v44  ;;  %v2182_v39 = vld [vmem:[%s7284_s4 + $0x1a0] sm:$0xff] }
 0x2d2   :  { %2289 = vmatprep.subr.mxu0 %v2203_v61  ;;  %5215 = vmatpush3.msra.mxu1 %v2147_v5  ;;  %v2181_v61 = vld [vmem:[%s7284_s4 + $0x198] sm:$0xff] }
 0x2d3   :  { %2290 = vmatpush2.msra.mxu0 %v2202_v23  ;;  %5216 = vmatprep.subr.mxu1 %v2192_v32  ;;  %v2179_v23 = vld [vmem:[%s7284_s4 + $0x188] sm:$0xff] }
 0x2d4   :  { %2291 = vmatprep.subr.mxu0 %v2200_v6  ;;  %5217 = vmatpush3.msra.mxu1 %v2144_v49  ;;  %v2178_v6 = vld [vmem:[%s7284_s4 + $0x180] sm:$0xff] }
 0x2d5   :  { %2292 = vmatpush2.msra.mxu0 %v2199_v47  ;;  %5218 = vmatprep.subr.mxu1 %v2189_v9  ;;  %v7589_v47 = vld [vmem:[%s7586_s11 + $0x8] sm:$0xff] }
 0x2d6   :  { %2293 = vmatprep.subr.mxu0 %v2197_v51  ;;  %5219 = vmatpush3.msra.mxu1 %v2141_v35 }
 0x2d7   :  { %2294 = vmatpush2.msra.mxu0 %v2196_v59  ;;  %5220 = vmatprep.subr.mxu1 %v2186_v0 }
 0x2d8   :  { %2295 = vmatprep.subr.mxu0 %v2194_v63  ;;  %5221 = vmatpush3.msra.mxu1 %v2138_v60 }
 0x2d9   :  { %2296 = vmatpush2.msra.mxu0 %v2193_v11  ;;  %5222 = vmatprep.subr.mxu1 %v2183_v34 }
 0x2da   :  { %2297 = vmatprep.subr.mxu0 %v2191_v21  ;;  %5223 = vmatpush3.msra.mxu1 %v2135_v38 }
 0x2db   :  { %2298 = vmatpush2.msra.mxu0 %v2190_v31  ;;  %5224 = vmatprep.subr.mxu1 %v2180_v27 }
 0x2dc   :  { %2299 = vmatprep.subr.mxu0 %v2188_v43  ;;  %5225 = vmatpush3.msra.mxu1 %v2132_v45 }
 0x2dd   :  { %2300 = vmatpush2.msra.mxu0 %v2187_v40 }
 0x2de   :  { %2301 = vmatprep.subr.mxu0 %v2185_v24 }
 0x2df   :  { %2302 = vmatpush2.msra.mxu0 %v2184_v52 }
 0x2e0   :  { %2303 = vmatprep.subr.mxu0 %v2182_v39 }
 0x2e1   :  { %2304 = vmatpush2.msra.mxu0 %v2181_v61 }
 0x2e2   :  { %2305 = vmatprep.subr.mxu0 %v2179_v23 }
 0x2e3   :  { %2306 = vmatpush2.msra.mxu0 %v2178_v6 }
 0x2e4   :  { %5502 = vmatprep.subr.mxu0 %v7589_v47 }
 0x338   :  { %v1500_v12 = vpop.f32.mrf.mxu0 }
 0x339   :  { %v1788_v51 = vmul.f32 %v1500_v12, %v1500_v12 }
 0x33a   :  { %v1502_v58 = vpop.f32.mrf.mxu0  ;;  %v1693_v59 = vpop.f32.mrf.mxu1 }
 0x33b   :  { %v1789_v57 = vmul.f32 %v1502_v58, %v1502_v58  ;;  %v1820_v63 = vsub.f32 %v1693_v59, %v1788_v51 }
 0x33c   :  { %v1695_v44 = vpop.f32.mrf.mxu1 }
 0x33d   :  { %v1852_v11 = vmax.f32 %v1820_v63, 0.0  ;;  %v1821_v5 = vsub.f32 %v1695_v44, %v1789_v57  ;;  %v1432_v57 = vld [vmem:[%s5042_s15] sm:$0x3]  ;;  %s6102_s15 = smov 4  }
 0x33e   :  { %s8148_s18 = sld [smem:[%s8655_s0 + %s6102_s15]]  }
 0x33f   :  { %v1916_v21 = vadd.f32 1e-05, %v1852_v11  ;;  %v7592_v32 = vpop.f32.mrf.mxu0  ;;  %v1853_v31 = vmax.f32 %v1821_v5, 0.0  ;;  %v1884_v11 = vsub.f32 %v7297_v56, %v1500_v12  ;;  %v1433_v5 = vld [vmem:[%s5043_s19] sm:$0x3]  ;;  %s6103_s19 = smov 8   ;;  %s5053_s15 = sld [smem:[%s8655_s0 + %s6117_s12]]  }
 0x340   :  { %v1790_v49 = vmul.f32 %v7592_v32, %v7592_v32  ;;  %s8156_s22 = sld [smem:[%s8655_s0 + %s6103_s19]]  }
 0x341   :  { %5927 = vrsqrt.f32 %v1916_v21  ;;  %v1917_v43 = vadd.f32 1e-05, %v1853_v31  ;;  %v7596_v9 = vpop.f32.mrf.mxu0  ;;  %v1699_v40 = vpop.f32.mrf.mxu1  ;;  %s5056_s19 = sld [smem:[%s8655_s0 + %s6118_s16]]  }
 0x342   :  { %v1791_v35 = vmul.f32 %v7596_v9, %v7596_v9  ;;  %v1822_v24 = vsub.f32 %v1699_v40, %v1790_v49  ;;  %v7618_v40 = vrot.slane %v1432_v57, %v8818_v55 }
 0x343   :  { %5929 = vrsqrt.f32 %v1917_v43  ;;  %v1701_v0 = vpop.f32.mrf.mxu1 }
 0x344   :  { %v1854_v52 = vmax.f32 %v1822_v24, 0.0  ;;  %v1823_v60 = vsub.f32 %v1701_v0, %v1791_v35  ;;  %v1885_v35 = vsub.f32 %v7300_v37, %v1502_v58 }
 0x346   :  { %v1918_v39 = vadd.f32 1e-05, %v1854_v52  ;;  %v1855_v34 = vmax.f32 %v1823_v60, 0.0  ;;  %v7624_v52 = vrot.slane %v1432_v57, %v8819_v41 }
 0x348   :  { %v7606_v61 = vpop.f32.mrf.mxu0  ;;  %5931 = vrsqrt.f32 %v1918_v39  ;;  %v1919_v23 = vadd.f32 1e-05, %v1855_v34  ;;  %v7629_v34 = vrot.slane %v1433_v5, %v8818_v55 }
 0x349   :  { %v1792_v38 = vmul.f32 %v7606_v61, %v7606_v61 }
 0x34a   :  { %v7610_v27 = vpop.f32.mrf.mxu0  ;;  %v1705_v6 = vpop.f32.mrf.mxu1  ;;  %5933 = vrsqrt.f32 %v1919_v23  ;;  %v7634_v23 = vrot.slane %v1433_v5, %v8819_v41  ;;  %v1886_v5 = vsub.f32 %v7314_v26, %v7592_v32 }
 0x34b   :  { %v1793_v45 = vmul.f32 %v7610_v27, %v7610_v27  ;;  %v1824_v51 = vsub.f32 %v1705_v6, %v1792_v38 }
 0x34c   :  { %v1707_v59 = vpop.f32.mrf.mxu1 }
 0x34d   :  { %v1856_v63 = vmax.f32 %v1824_v51, 0.0  ;;  %v1825_v44 = vsub.f32 %v1707_v59, %v1793_v45 }
 0x34e   :  { %v5928_v21 = vpop.eup %5927 }
 0x34f   :  { %v1920_v31 = vadd.f32 1e-05, %v1856_v63  ;;  %v1857_v43 = vmax.f32 %v1825_v44, 0.0  ;;  %v1980_v24 = vmul.f32 %v5928_v21, %v1884_v11 }
 0x350   :  { %v7615_v49 = vpop.f32.mrf.mxu0  ;;  %v5930_v60 = vpop.eup %5929 }
 0x351   :  { %v1794_v0 = vmul.f32 %v7615_v49, %v7615_v49  ;;  %5935 = vrsqrt.f32 %v1920_v31  ;;  %v1921_v56 = vadd.f32 1e-05, %v1857_v43  ;;  %v1981_v58 = vmul.f32 %v5930_v60, %v1885_v35 }
 0x352   :  { %v7626_v12 = vpop.f32.mrf.mxu0  ;;  %v1711_v39 = vpop.f32.mrf.mxu1  ;;  %v2023_v45 = vmul.f32 %v7618_v40, %v1980_v24  ;;  %v1887_v60 = vsub.f32 %v7318_v18, %v7596_v9 }
 0x353   :  { %v1795_v38 = vmul.f32 %v7626_v12, %v7626_v12  ;;  %v1826_v37 = vsub.f32 %v1711_v39, %v1794_v0  ;;  %5937 = vrsqrt.f32 %v1921_v56  ;;  %v2024_v63 = vmul.f32 %v7624_v52, %v1981_v58 }
 0x354   :  { %v1713_v6 = vpop.f32.mrf.mxu1  ;;  %v2066_v11 = vadd.f32 %v7629_v34, %v2023_v45 }
 0x355   :  { %v1858_v51 = vmax.f32 %v1826_v37, 0.0  ;;  %v7637_v59 = vpop.f32.mrf.mxu0  ;;  %v1827_v57 = vsub.f32 %v1713_v6, %v1795_v38  ;;  %v5932_v21 = vpop.eup %5931  ;;  %v2067_v0 = vadd.f32 %v7634_v23, %v2024_v63 }
 0x356   :  { %v1796_v44 = vmul.f32 %v7637_v59, %v7637_v59  ;;  %v1982_v32 = vmul.f32 %v5932_v21, %v1886_v5 }
 0x357   :  { %v1922_v31 = vadd.f32 1e-05, %v1858_v51  ;;  %v1859_v43 = vmax.f32 %v1827_v57, 0.0  ;;  %v7645_v35 = vpop.f32.mrf.mxu0  ;;  %v1717_v24 = vpop.f32.mrf.mxu1  ;;  %v2099_v26 = vmax.f32 %v2067_v0, 0.0  ;;  %v2098_v57 = vmax.f32 %v2066_v11, 0.0 }
 0x358   :  { %v1797_v56 = vmul.f32 %v7645_v35, %v7645_v35  ;;  %v1828_v39 = vsub.f32 %v1717_v24, %v1796_v44  ;;  %v5934_v38 = vpop.eup %5933  ;;  %v2025_v9 = vmul.f32 %v7618_v40, %v1982_v32  ;;  %v140_v44 = vld [vmem:[%s7586_s11] sm:$0xff] }
 0x359   :  { %5939 = vrsqrt.f32 %v1922_v31  ;;  %v1923_v37 = vadd.f32 1e-05, %v1859_v43  ;;  %v1719_v58 = vpop.f32.mrf.mxu1  ;;  %v1983_v63 = vmul.f32 %v5934_v38, %v1887_v60  ;;  %2307 = vmatprep.mubr.f32.mxu0 %v2099_v26  ;;  %2468 = vmatprep.mubr.f32.mxu1 %v2099_v26 }
 0x35a   :  { %v1860_v6 = vmax.f32 %v1828_v39, 0.0  ;;  %v1829_v51 = vsub.f32 %v1719_v58, %v1797_v56  ;;  %2308 = vmatmul.mubr.f32.vlgmr.msra.gmra.mxu0 %v2098_v57  ;;  %2469 = vmatmul.mubr.f32.vlgmr.msra.gmra.mxu1 %v2098_v57  ;;  %v2068_v0 = vadd.f32 %v7629_v34, %v2025_v9  ;;  %v1888_v58 = vsub.f32 %v7333_v33, %v7606_v61 }
 0x35b   :  { %v7652_v45 = vpop.f32.mrf.mxu0  ;;  %5941 = vrsqrt.f32 %v1923_v37  ;;  %v2026_v21 = vmul.f32 %v7624_v52, %v1983_v63  ;;  %5503 = vmatpush3.msra.mxu0 %v7589_v47 }
 0x35c   :  { %v1798_v18 = vmul.f32 %v7652_v45, %v7652_v45  ;;  %v1861_v31 = vmax.f32 %v1829_v51, 0.0  ;;  %v1924_v60 = vadd.f32 1e-05, %v1860_v6  ;;  %5504 = vmatprep.subr.mxu0 %v140_v44  ;;  %v1889_v51 = vsub.f32 %v7337_v14, %v7610_v27 }
 0x35d   :  { %v7658_v43 = vpop.f32.mrf.mxu0  ;;  %v1723_v24 = vpop.f32.mrf.mxu1  ;;  %v2069_v38 = vadd.f32 %v7634_v23, %v2026_v21  ;;  %5505 = vmatpush3.msra.mxu0 %v140_v44  ;;  %v1890_v21 = vsub.f32 %v7352_v29, %v7615_v49  ;;  %v1893_v29 = vsub.f32 %v7372_v16, %v7645_v35 }
 0x35e   :  { %v1799_v11 = vmul.f32 %v7658_v43, %v7658_v43  ;;  %v1830_v5 = vsub.f32 %v1723_v24, %v1798_v18  ;;  %v1925_v56 = vadd.f32 1e-05, %v1861_v31  ;;  %v5936_v37 = vpop.eup %5935  ;;  %v2100_v24 = vmax.f32 %v2068_v0, 0.0 }
 0x35f   :  { %v1725_v39 = vpop.f32.mrf.mxu1  ;;  %v2101_v57 = vmax.f32 %v2069_v38, 0.0  ;;  %v1984_v33 = vmul.f32 %v5936_v37, %v1888_v58 }
 0x360   :  { %v7668_v26 = vpop.f32.mrf.mxu0  ;;  %v1831_v32 = vsub.f32 %v1725_v39, %v1799_v11  ;;  %5943 = vrsqrt.f32 %v1925_v56  ;;  %v1862_v47 = vmax.f32 %v1830_v5, 0.0  ;;  %v5938_v6 = vpop.eup %5937  ;;  %v1891_v11 = vsub.f32 %v7356_v28, %v7626_v12 }
 0x361   :  { %v1800_v63 = vmul.f32 %v7668_v26, %v7668_v26  ;;  %5945 = vrsqrt.f32 %v1924_v60  ;;  %2313 = vmatprep.mubr.f32.mxu0 %v2101_v57  ;;  %2473 = vmatprep.mubr.f32.mxu1 %v2101_v57  ;;  %v1985_v27 = vmul.f32 %v5938_v6, %v1889_v51  ;;  %v2027_v44 = vmul.f32 %v7618_v40, %v1984_v33 }
 0x362   :  { %v1863_v18 = vmax.f32 %v1831_v32, 0.0  ;;  %v7674_v9 = vpop.f32.mrf.mxu0  ;;  %v1729_v31 = vpop.f32.mrf.mxu1  ;;  %2314 = vmatmul.mubr.f32.gmra.mxu0 %v2100_v24  ;;  %2474 = vmatmul.mubr.f32.gmra.mxu1 %v2100_v24  ;;  %v1926_v56 = vadd.f32 1e-05, %v1862_v47 }
 0x363   :  { %v1801_v61 = vmul.f32 %v7674_v9, %v7674_v9  ;;  %v1832_v39 = vsub.f32 %v1729_v31, %v1800_v63  ;;  %v2028_v37 = vmul.f32 %v7624_v52, %v1985_v27  ;;  %v2070_v63 = vadd.f32 %v7629_v34, %v2027_v44 }
 0x364   :  { %v1731_v14 = vpop.f32.mrf.mxu1  ;;  %v1927_v5 = vadd.f32 1e-05, %v1863_v18 }
 0x365   :  { %v7683_v0 = vpop.f32.mrf.mxu0  ;;  %v1833_v60 = vsub.f32 %v1731_v14, %v1801_v61  ;;  %v2071_v6 = vadd.f32 %v7634_v23, %v2028_v37  ;;  %v1864_v61 = vmax.f32 %v1832_v39, 0.0 }
 0x366   :  { %v1802_v38 = vmul.f32 %v7683_v0, %v7683_v0  ;;  %v5940_v58 = vpop.eup %5939  ;;  %5947 = vrsqrt.f32 %v1927_v5 }
 0x367   :  { %v1865_v49 = vmax.f32 %v1833_v60, 0.0  ;;  %v7694_v12 = vpop.f32.mrf.mxu0  ;;  %v1735_v51 = vpop.f32.mrf.mxu1  ;;  %v1986_v33 = vmul.f32 %v5940_v58, %v1890_v21  ;;  %5949 = vrsqrt.f32 %v1926_v56  ;;  %v2103_v37 = vmax.f32 %v2071_v6, 0.0 }
 0x368   :  { %v1803_v47 = vmul.f32 %v7694_v12, %v7694_v12  ;;  %v1834_v57 = vsub.f32 %v1735_v51, %v1802_v38  ;;  %v5942_v18 = vpop.eup %5941  ;;  %v2102_v56 = vmax.f32 %v2070_v63, 0.0 }
 0x369   :  { %v1737_v24 = vpop.f32.mrf.mxu1  ;;  %v1929_v60 = vadd.f32 1e-05, %v1865_v49  ;;  %v1987_v51 = vmul.f32 %v5942_v18, %v1891_v11  ;;  %v2029_v28 = vmul.f32 %v7618_v40, %v1986_v33  ;;  %2319 = vmatprep.mubr.f32.mxu0 %v2103_v37  ;;  %2478 = vmatprep.mubr.f32.mxu1 %v2103_v37  ;;  %v1928_v18 = vadd.f32 1e-05, %v1864_v61 }
 0x36a   :  { %v7704_v35 = vpop.f32.mrf.mxu0  ;;  %v1835_v27 = vsub.f32 %v1737_v24, %v1803_v47  ;;  %v1866_v16 = vmax.f32 %v1834_v57, 0.0  ;;  %2320 = vmatmul.mubr.f32.gmra.mxu0 %v2102_v56  ;;  %2479 = vmatmul.mubr.f32.gmra.mxu1 %v2102_v56 }
 0x36b   :  { %v1804_v14 = vmul.f32 %v7704_v35, %v7704_v35  ;;  %v2030_v47 = vmul.f32 %v7624_v52, %v1987_v51  ;;  %v2072_v11 = vadd.f32 %v7629_v34, %v2029_v28  ;;  %5951 = vrsqrt.f32 %v1929_v60 }
 0x36c   :  { %v7708_v44 = vpop.f32.mrf.mxu0  ;;  %v1741_v38 = vpop.f32.mrf.mxu1  ;;  %v1867_v39 = vmax.f32 %v1835_v27, 0.0  ;;  %v1930_v37 = vadd.f32 1e-05, %v1866_v16  ;;  %5953 = vrsqrt.f32 %v1928_v18 }
 0x36d   :  { %v1805_v21 = vmul.f32 %v7708_v44, %v7708_v44  ;;  %v1836_v58 = vsub.f32 %v1741_v38, %v1804_v14  ;;  %v5944_v6 = vpop.eup %5943  ;;  %v2073_v61 = vadd.f32 %v7634_v23, %v2030_v47  ;;  %v2104_v41 = vmax.f32 %v2072_v11, 0.0 }
 0x36e   :  { %v7715_v31 = vpop.f32.mrf.mxu0  ;;  %v1743_v49 = vpop.f32.mrf.mxu1  ;;  %v1931_v5 = vadd.f32 1e-05, %v1867_v39  ;;  %v1989_v33 = vmul.f32 %v5944_v6, %v1893_v29  ;;  %v8821_v29 = vsub.f32 %v7368_v13, %v7637_v59  ;;  %5955 = vrsqrt.f32 %v1930_v37 }
 0x36f   :  { %v1806_v63 = vmul.f32 %v7715_v31, %v7715_v31  ;;  %v1837_v14 = vsub.f32 %v1743_v49, %v1805_v21  ;;  %v5946_v38 = vpop.eup %5945  ;;  %v1868_v51 = vmax.f32 %v1836_v58, 0.0  ;;  %v2105_v56 = vmax.f32 %v2073_v61, 0.0 }
 0x370   :  { %v7727_v27 = vpop.f32.mrf.mxu0  ;;  %v1747_v28 = vpop.f32.mrf.mxu1  ;;  %v2032_v39 = vmul.f32 %v7624_v52, %v1989_v33  ;;  %v1988_v11 = vmul.f32 %v5946_v38, %v8821_v29  ;;  %5957 = vrsqrt.f32 %v1931_v5 }
 0x371   :  { %v1807_v57 = vmul.f32 %v7727_v27, %v7727_v27  ;;  %v1838_v24 = vsub.f32 %v1747_v28, %v1806_v63  ;;  %v1869_v21 = vmax.f32 %v1837_v14, 0.0  ;;  %2325 = vmatprep.mubr.f32.mxu0 %v2105_v56  ;;  %2483 = vmatprep.mubr.f32.mxu1 %v2105_v56  ;;  %v1932_v6 = vadd.f32 1e-05, %v1868_v51 }
 0x372   :  { %v7732_v32 = vpop.f32.mrf.mxu0  ;;  %v1749_v60 = vpop.f32.mrf.mxu1  ;;  %2326 = vmatmul.mubr.f32.gmra.mxu0 %v2104_v41  ;;  %2484 = vmatmul.mubr.f32.gmra.mxu1 %v2104_v41  ;;  %v2075_v33 = vadd.f32 %v7634_v23, %v2032_v39  ;;  %v2031_v13 = vmul.f32 %v7618_v40, %v1988_v11 }
 0x373   :  { %v1870_v49 = vmax.f32 %v1838_v24, 0.0  ;;  %v1808_v55 = vmul.f32 %v7732_v32, %v7732_v32  ;;  %v1839_v47 = vsub.f32 %v1749_v60, %v1807_v57  ;;  %v5948_v59 = vpop.eup %5947  ;;  %v1933_v38 = vadd.f32 1e-05, %v1869_v21 }
 0x374   :  { %v7738_v58 = vpop.f32.mrf.mxu0  ;;  %v1753_v63 = vpop.f32.mrf.mxu1  ;;  %v2074_v29 = vadd.f32 %v7629_v34, %v2031_v13  ;;  %5959 = vrsqrt.f32 %v1932_v6 }
 0x375   :  { %v1871_v24 = vmax.f32 %v1839_v47, 0.0  ;;  %v1809_v18 = vmul.f32 %v7738_v58, %v7738_v58  ;;  %v1840_v14 = vsub.f32 %v1753_v63, %v1808_v55  ;;  %v1934_v37 = vadd.f32 1e-05, %v1870_v49  ;;  %v5950_v60 = vpop.eup %5949 }
 0x376   :  { %v7748_v28 = vpop.f32.mrf.mxu0  ;;  %v1755_v61 = vpop.f32.mrf.mxu1  ;;  %v2107_v63 = vmax.f32 %v2075_v33, 0.0  ;;  %5961 = vrsqrt.f32 %v1933_v38 }
 0x377   :  { %v1810_v51 = vmul.f32 %v7748_v28, %v7748_v28  ;;  %v1872_v41 = vmax.f32 %v1840_v14, 0.0  ;;  %v1841_v56 = vsub.f32 %v1755_v61, %v1809_v18  ;;  %v1935_v39 = vadd.f32 1e-05, %v1871_v24 }
 0x378   :  { %v7754_v47 = vpop.f32.mrf.mxu0  ;;  %v1759_v55 = vpop.f32.mrf.mxu1  ;;  %2331 = vmatprep.mubr.f32.mxu0 %v2107_v63  ;;  %2488 = vmatprep.mubr.f32.mxu1 %v2107_v63  ;;  %v2106_v18 = vmax.f32 %v2074_v29, 0.0  ;;  %v8822_v14 = vsub.f32 %v7388_v50, %v7658_v43  ;;  %5963 = vrsqrt.f32 %v1934_v37 }
 0x379   :  { %v1811_v11 = vmul.f32 %v7754_v47, %v7754_v47  ;;  %v1842_v5 = vsub.f32 %v1759_v55, %v1810_v51  ;;  %v1936_v21 = vadd.f32 1e-05, %v1872_v41  ;;  %v1873_v49 = vmax.f32 %v1841_v56, 0.0  ;;  %v5952_v43 = vpop.eup %5951 }
 0x37a   :  { %v7759_v57 = vpop.f32.mrf.mxu0  ;;  %v1761_v16 = vpop.f32.mrf.mxu1  ;;  %v1991_v61 = vmul.f32 %v5948_v59, %v8822_v14  ;;  %2332 = vmatmul.mubr.f32.gmra.mxu0 %v2106_v18  ;;  %2489 = vmatmul.mubr.f32.gmra.mxu1 %v2106_v18  ;;  %v8823_v55 = vsub.f32 %v7384_v53, %v7652_v45  ;;  %5965 = vrsqrt.f32 %v1935_v39 }
 0x37b   :  { %v1874_v33 = vmax.f32 %v1842_v5, 0.0  ;;  %v1812_v6 = vmul.f32 %v7759_v57, %v7759_v57  ;;  %v1843_v24 = vsub.f32 %v1761_v16, %v1811_v11  ;;  %v1937_v13 = vadd.f32 1e-05, %v1873_v49 }
 0x37c   :  { %v7766_v51 = vpop.f32.mrf.mxu0  ;;  %v1765_v41 = vpop.f32.mrf.mxu1  ;;  %v2034_v56 = vmul.f32 %v7624_v52, %v1991_v61  ;;  %v1990_v50 = vmul.f32 %v5950_v60, %v8823_v55  ;;  %5967 = vrsqrt.f32 %v1936_v21 }
 0x37d   :  { %v1875_v38 = vmax.f32 %v1843_v24, 0.0  ;;  %v1844_v16 = vsub.f32 %v1765_v41, %v1812_v6  ;;  %v1813_v29 = vmul.f32 %v7766_v51, %v7766_v51  ;;  %v1938_v53 = vadd.f32 1e-05, %v1874_v33  ;;  %v5954_v6 = vpop.eup %5953 }
 0x37e   :  { %v7774_v37 = vpop.f32.mrf.mxu0  ;;  %v1767_v63 = vpop.f32.mrf.mxu1  ;;  %v2077_v11 = vadd.f32 %v7634_v23, %v2034_v56  ;;  %v2033_v5 = vmul.f32 %v7618_v40, %v1990_v50  ;;  %5969 = vrsqrt.f32 %v1937_v13 }
 0x37f   :  { %v1939_v45 = vadd.f32 1e-05, %v1875_v38  ;;  %v1876_v60 = vmax.f32 %v1844_v16, 0.0  ;;  %v1814_v49 = vmul.f32 %v7774_v37, %v7774_v37  ;;  %v1845_v39 = vsub.f32 %v1767_v63, %v1813_v29  ;;  %v5956_v56 = vpop.eup %5955 }
 0x380   :  { %v2109_v18 = vmax.f32 %v2077_v11, 0.0  ;;  %v7782_v21 = vpop.f32.mrf.mxu0  ;;  %v1771_v14 = vpop.f32.mrf.mxu1  ;;  %v2076_v61 = vadd.f32 %v7629_v34, %v2033_v5  ;;  %v8824_v63 = vsub.f32 %v7401_v7, %v7674_v9  ;;  %v8825_v7 = vsub.f32 %v7398_v42, %v7668_v26 }
 0x381   :  { %5971 = vrsqrt.f32 %v1939_v45  ;;  %v1846_v41 = vsub.f32 %v1771_v14, %v1814_v49  ;;  %v1877_v55 = vmax.f32 %v1845_v39, 0.0  ;;  %v1815_v16 = vmul.f32 %v7782_v21, %v7782_v21  ;;  %v5958_v49 = vpop.eup %5957 }
 0x382   :  { %2337 = vmatprep.mubr.f32.mxu0 %v2109_v18  ;;  %2493 = vmatprep.mubr.f32.mxu1 %v2109_v18  ;;  %v2108_v13 = vmax.f32 %v2076_v61, 0.0  ;;  %v7789_v50 = vpop.f32.mrf.mxu0  ;;  %v1773_v38 = vpop.f32.mrf.mxu1  ;;  %v1993_v29 = vmul.f32 %v5952_v43, %v8824_v63  ;;  %5973 = vrsqrt.f32 %v1938_v53  ;;  %v1940_v11 = vadd.f32 1e-05, %v1876_v60 }
 0x383   :  { %v1878_v5 = vmax.f32 %v1846_v41, 0.0  ;;  %v1816_v45 = vmul.f32 %v7789_v50, %v7789_v50  ;;  %v1941_v39 = vadd.f32 1e-05, %v1877_v55  ;;  %v1847_v18 = vsub.f32 %v1773_v38, %v1815_v16  ;;  %v5960_v55 = vpop.eup %5959 }
 0x384   :  { %2338 = vmatmul.mubr.f32.gmra.mxu0 %v2108_v13  ;;  %2494 = vmatmul.mubr.f32.gmra.mxu1 %v2108_v13  ;;  %v2036_v14 = vmul.f32 %v7624_v52, %v1993_v29  ;;  %v7799_v61 = vpop.f32.mrf.mxu0  ;;  %v1777_v24 = vpop.f32.mrf.mxu1  ;;  %v1992_v9 = vmul.f32 %v5954_v6, %v8825_v7 }
 0x385   :  { %v1942_v53 = vadd.f32 1e-05, %v1878_v5  ;;  %v1848_v60 = vsub.f32 %v1777_v24, %v1816_v45  ;;  %v1817_v41 = vmul.f32 %v7799_v61, %v7799_v61  ;;  %5975 = vrsqrt.f32 %v1941_v39  ;;  %v5962_v24 = vpop.eup %5961 }
 0x386   :  { %v1879_v13 = vmax.f32 %v1847_v18, 0.0  ;;  %v2079_v38 = vadd.f32 %v7634_v23, %v2036_v14  ;;  %v2035_v16 = vmul.f32 %v7618_v40, %v1992_v9  ;;  %v7810_v63 = vpop.f32.mrf.mxu0  ;;  %v1779_v29 = vpop.f32.mrf.mxu1  ;;  %5977 = vrsqrt.f32 %v1940_v11 }
 0x387   :  { %v1880_v26 = vmax.f32 %v1848_v60, 0.0  ;;  %v1818_v6 = vmul.f32 %v7810_v63, %v7810_v63  ;;  %v1849_v18 = vsub.f32 %v1779_v29, %v1817_v41  ;;  %v5964_v9 = vpop.eup %5963  ;;  %5979 = vrsqrt.f32 %v1942_v53 }
 0x388   :  { %v1943_v5 = vadd.f32 1e-05, %v1879_v13  ;;  %v2111_v45 = vmax.f32 %v2079_v38, 0.0  ;;  %v2078_v39 = vadd.f32 %v7629_v34, %v2035_v16  ;;  %v7817_v14 = vpop.f32.mrf.mxu0  ;;  %v1783_v7 = vpop.f32.mrf.mxu1  ;;  %v8826_v11 = vsub.f32 %v7413_v2, %v7694_v12 }
 0x389   :  { %v1850_v42 = vsub.f32 %v1783_v7, %v1818_v6  ;;  %v5966_v33 = vpop.eup %5965  ;;  %v1881_v38 = vmax.f32 %v1849_v18, 0.0  ;;  %v8827_v41 = vsub.f32 %v7410_v30, %v7683_v0  ;;  %v1944_v17 = vadd.f32 1e-05, %v1880_v26 }
 0x38a   :  { %v1995_v60 = vmul.f32 %v5958_v49, %v8826_v11  ;;  %5981 = vrsqrt.f32 %v1943_v5  ;;  %2343 = vmatprep.mubr.f32.mxu0 %v2111_v45  ;;  %2498 = vmatprep.mubr.f32.mxu1 %v2111_v45  ;;  %v2110_v13 = vmax.f32 %v2078_v39, 0.0  ;;  %v1785_v29 = vpop.f32.mrf.mxu1  ;;  %v5968_v59 = vpop.eup %5967  ;;  %v1819_v2 = vmul.f32 %v7817_v14, %v7817_v14 }
 0x38b   :  { %v1994_v16 = vmul.f32 %v5956_v56, %v8827_v41  ;;  %v1882_v43 = vmax.f32 %v1850_v42, 0.0  ;;  %v1945_v12 = vadd.f32 1e-05, %v1881_v38  ;;  %v8828_v6 = vsub.f32 %v7425_v46, %v7708_v44  ;;  %v5970_v56 = vpop.eup %5969 }
 0x38c   :  { %v2038_v53 = vmul.f32 %v7624_v52, %v1995_v60  ;;  %2344 = vmatmul.mubr.f32.gmra.mxu0 %v2110_v13  ;;  %2499 = vmatmul.mubr.f32.gmra.mxu1 %v2110_v13  ;;  %v8829_v30 = vsub.f32 %v7419_v4, %v7704_v35  ;;  %v1851_v45 = vsub.f32 %v1785_v29, %v1819_v2 }
 0x38d   :  { %v2037_v49 = vmul.f32 %v7618_v40, %v1994_v16  ;;  %v1997_v5 = vmul.f32 %v5962_v24, %v8828_v6  ;;  %v1946_v42 = vadd.f32 1e-05, %v1882_v43  ;;  %v8830_v39 = vsub.f32 %v7437_v15, %v7727_v27 }
 0x38e   :  { %v1996_v0 = vmul.f32 %v5960_v55, %v8829_v30  ;;  %v2081_v26 = vadd.f32 %v7634_v23, %v2038_v53  ;;  %v5972_v7 = vpop.eup %5971  ;;  %5983 = vrsqrt.f32 %v1945_v12  ;;  %v1883_v35 = vmax.f32 %v1851_v45, 0.0 }
 0x38f   :  { %v1999_v18 = vmul.f32 %v5966_v33, %v8830_v39  ;;  %v2080_v11 = vadd.f32 %v7629_v34, %v2037_v49  ;;  %v2040_v46 = vmul.f32 %v7624_v52, %v1997_v5  ;;  %5985 = vrsqrt.f32 %v1944_v17  ;;  %v5974_v24 = vpop.eup %5973 }
 0x390   :  { %v2039_v44 = vmul.f32 %v7618_v40, %v1996_v0  ;;  %v2113_v4 = vmax.f32 %v2081_v26, 0.0  ;;  %v8831_v27 = vsub.f32 %v7431_v54, %v7715_v31  ;;  %v1947_v13 = vadd.f32 1e-05, %v1883_v35 }
 0x391   :  { %v2042_v55 = vmul.f32 %v7624_v52, %v1999_v18  ;;  %v2112_v43 = vmax.f32 %v2080_v11, 0.0  ;;  %v2083_v60 = vadd.f32 %v7634_v23, %v2040_v46  ;;  %v8832_v17 = vsub.f32 %v7449_v62, %v7738_v58 }
 0x392   :  { %v2082_v15 = vadd.f32 %v7629_v34, %v2039_v44  ;;  %v1998_v33 = vmul.f32 %v5964_v9, %v8831_v27  ;;  %2349 = vmatprep.mubr.f32.mxu0 %v2113_v4  ;;  %2503 = vmatprep.mubr.f32.mxu1 %v2113_v4  ;;  %v8833_v16 = vsub.f32 %v7443_v20, %v7732_v32  ;;  %5987 = vrsqrt.f32 %v1946_v42  ;;  %v5976_v2 = vpop.eup %5975 }
 0x393   :  { %v2085_v38 = vadd.f32 %v7634_v23, %v2042_v55  ;;  %v2001_v41 = vmul.f32 %v5970_v56, %v8832_v17  ;;  %2350 = vmatmul.mubr.f32.gmra.mxu0 %v2112_v43  ;;  %2504 = vmatmul.mubr.f32.gmra.mxu1 %v2112_v43  ;;  %v2115_v53 = vmax.f32 %v2083_v60, 0.0  ;;  %v8834_v31 = vsub.f32 %v7461_v8, %v7754_v47  ;;  %v5978_v49 = vpop.eup %5977  ;;  %v8837_v17 = vld [vmem:[#allocation4_spill] sm:$0xff] }
 0x394   :  { %v2000_v29 = vmul.f32 %v5968_v59, %v8833_v16  ;;  %v2041_v54 = vmul.f32 %v7618_v40, %v1998_v33  ;;  %5989 = vrsqrt.f32 %v1947_v13  ;;  %v2114_v20 = vmax.f32 %v2082_v15, 0.0  ;;  %v5980_v0 = vpop.eup %5979 }
 0x395   :  { %v2003_v9 = vmul.f32 %v5972_v7, %v8834_v31  ;;  %v2117_v12 = vmax.f32 %v2085_v38, 0.0  ;;  %v2044_v62 = vmul.f32 %v7624_v52, %v2001_v41  ;;  %2355 = vmatprep.mubr.f32.mxu0 %v2115_v53  ;;  %2508 = vmatprep.mubr.f32.mxu1 %v2115_v53  ;;  %v8835_v6 = vsub.f32 %v7455_v48, %v7748_v28 }
 0x396   :  { %v2043_v58 = vmul.f32 %v7618_v40, %v2000_v29  ;;  %v2084_v32 = vadd.f32 %v7629_v34, %v2041_v54  ;;  %v8836_v5 = vsub.f32 %v7473_v19, %v7766_v51  ;;  %v1908_v56 = vsub.f32 %v7467_v36, %v7759_v57 }
 0x397   :  { %v2046_v59 = vmul.f32 %v7624_v52, %v2003_v9  ;;  %v2002_v8 = vmul.f32 %v5974_v24, %v8835_v6  ;;  %v2087_v47 = vadd.f32 %v7634_v23, %v2044_v62  ;;  %v1911_v26 = vsub.f32 %v7485_v1, %v7782_v21  ;;  %2356 = vmatmul.mubr.f32.gmra.mxu0 %v2114_v20  ;;  %v5982_v42 = vpop.eup %5981  ;;  %v179_v6 = vld [vmem:[%s7908_s23 + $0x28] sm:$0xff] }
 0x398   :  { %v2005_v30 = vmul.f32 %v5976_v2, %v8836_v5  ;;  %2509 = vmatmul.mubr.f32.gmra.mxu1 %v2114_v20  ;;  %2361 = vmatprep.mubr.f32.mxu0 %v2117_v12  ;;  %v2086_v28 = vadd.f32 %v7629_v34, %v2043_v58  ;;  %v2116_v51 = vmax.f32 %v2084_v32, 0.0  ;;  %v2004_v18 = vmul.f32 %v5978_v49, %v1908_v56  ;;  %v7912_v49 = vld [vmem:[%s7908_s23] sm:$0xff]  ;;  %v175_v20 = vld [vmem:[%s7908_s23 + $0x8] sm:$0xff]  ;;  %v177_v32 = vld [vmem:[%s7908_s23 + $0x18] sm:$0xff] }
 0x399   :  { %2513 = vmatprep.mubr.f32.mxu1 %v2117_v12  ;;  %v2119_v48 = vmax.f32 %v2087_v47, 0.0  ;;  %v2089_v45 = vadd.f32 %v7634_v23, %v2046_v59  ;;  %v2045_v39 = vmul.f32 %v7618_v40, %v2002_v8  ;;  %v2007_v36 = vmul.f32 %v5982_v42, %v1911_v26  ;;  %v178_v59 = vld [vmem:[%s7908_s23 + $0x20] sm:$0xff]  ;;  %v180_v8 = vld [vmem:[%s7908_s23 + $0x30] sm:$0xff]  ;;  %v181_v47 = vld [vmem:[%s7908_s23 + $0x38] sm:$0xff] }
 0x39a   :  { %v2048_v19 = vmul.f32 %v7624_v52, %v2005_v30  ;;  %v1910_v1 = vsub.f32 %v7479_v22, %v7774_v37  ;;  %v1913_v57 = vsub.f32 %v7499_v10, %v7799_v61  ;;  %v2118_v35 = vmax.f32 %v2086_v28, 0.0  ;;  %v182_v5 = vld [vmem:[%s7908_s23 + $0x40] sm:$0xff]  ;;  %v183_v30 = vld [vmem:[%s7908_s23 + $0x48] sm:$0xff]  ;;  %v185_v56 = vld [vmem:[%s7908_s23 + $0x58] sm:$0xff] }
 0x39b   :  { %2362 = vmatmul.mubr.f32.gmra.mxu0 %v2116_v51  ;;  %v5984_v21 = vpop.eup %5983  ;;  %v2121_v7 = vmax.f32 %v2089_v45, 0.0  ;;  %v2050_v46 = vmul.f32 %v7624_v52, %v2007_v36  ;;  %v2088_v55 = vadd.f32 %v7629_v34, %v2045_v39  ;;  %v2047_v22 = vmul.f32 %v7618_v40, %v2004_v18  ;;  %v186_v26 = vld [vmem:[%s7908_s23 + $0x60] sm:$0xff]  ;;  %v187_v42 = vld [vmem:[%s7908_s23 + $0x68] sm:$0xff]  ;;  %v189_v28 = vld [vmem:[%s7908_s23 + $0x78] sm:$0xff] }
 0x39c   :  { %2514 = vmatmul.mubr.f32.gmra.mxu1 %v2116_v51  ;;  %2367 = vmatprep.mubr.f32.mxu0 %v2119_v48  ;;  %v2091_v11 = vadd.f32 %v7634_v23, %v2048_v19  ;;  %v2006_v44 = vmul.f32 %v5980_v0, %v1910_v1  ;;  %v5986_v4 = vpop.eup %5985  ;;  %v2009_v37 = vmul.f32 %v5984_v21, %v1913_v57  ;;  %v184_v0 = vld [vmem:[%s7908_s23 + $0x50] sm:$0xff]  ;;  %v2743_v45 = vld [vmem:[%s5028_s27] sm:$0x3f]  ;;  %v2973_v19 = vld [vmem:[%s7954_s1 + $0x78] sm:$0xff]  ;;  %s6105_s27 = smov 9  }
 0x39d   :  { %2518 = vmatprep.mubr.f32.mxu1 %v2119_v48  ;;  %v1912_v10 = vsub.f32 %v7493_v25, %v7789_v50  ;;  %v1915_v24 = vsub.f32 %v7511_v3, %v7817_v14  ;;  %v2093_v60 = vadd.f32 %v7634_v23, %v2050_v46  ;;  %v2120_v33 = vmax.f32 %v2088_v55, 0.0  ;;  %v188_v48 = vld [vmem:[%s7908_s23 + $0x70] sm:$0xff]  ;;  %5530 = vmatprep.subr.msk.mxu0 %vm2793_vm3, %v2743_v45  ;;  %v2971_v36 = vld [vmem:[%s7954_s1 + $0x68] sm:$0xff]  ;;  %v2970_v21 = vld [vmem:[%s7954_s1 + $0x60] sm:$0xff]  ;;  %s5032_s30 = sld [smem:[%s8655_s0 + %s6105_s27]]  }
 0x39e   :  { %v2123_v43 = vmax.f32 %v2091_v11, 0.0  ;;  %v2052_v15 = vmul.f32 %v7624_v52, %v2009_v37  ;;  %v2090_v13 = vadd.f32 %v7629_v34, %v2047_v22  ;;  %v2049_v38 = vmul.f32 %v7618_v40, %v2006_v44  ;;  %v2972_v51 = vld [vmem:[%s7954_s1 + $0x70] sm:$0xff]  ;;  %5556 = vmatprep.subr.mxu1 %v2973_v19  ;;  %v2969_v11 = vld [vmem:[%s7954_s1 + $0x58] sm:$0xff]  ;;  %v2967_v55 = vld [vmem:[%s7954_s1 + $0x48] sm:$0xff] }
 0x39f   :  { %2368 = vmatmul.mubr.f32.gmra.mxu0 %v2118_v35  ;;  %v5988_v61 = vpop.eup %5987  ;;  %v2008_v25 = vmul.f32 %v5986_v4, %v1912_v10  ;;  %v1914_v41 = vsub.f32 %v8837_v17, %v7810_v63  ;;  %v2125_v3 = vmax.f32 %v2093_v60, 0.0  ;;  %5557 = vmatpush3.msra.mxu1 %v2973_v19  ;;  %v2968_v44 = vld [vmem:[%s7954_s1 + $0x50] sm:$0xff]  ;;  %v2966_v37 = vld [vmem:[%s7954_s1 + $0x40] sm:$0xff] }
 0x3a0   :  { %2519 = vmatmul.mubr.f32.gmra.mxu1 %v2118_v35  ;;  %2373 = vmatprep.mubr.f32.mxu0 %v2121_v7  ;;  %v2095_v14 = vadd.f32 %v7634_v23, %v2052_v15  ;;  %v2122_v29 = vmax.f32 %v2090_v13, 0.0  ;;  %v2092_v53 = vadd.f32 %v7629_v34, %v2049_v38  ;;  %v2963_v15 = vld [vmem:[%s7954_s1 + $0x28] sm:$0xff]  ;;  %v2962_v13 = vld [vmem:[%s7954_s1 + $0x20] sm:$0xff] }
 0x3a1   :  { %2523 = vmatprep.mubr.f32.mxu1 %v2121_v7  ;;  %v5990_v27 = vpop.eup %5989  ;;  %v2051_v54 = vmul.f32 %v7618_v40, %v2008_v25  ;;  %v2010_v31 = vmul.f32 %v5988_v61, %v1914_v41  ;;  %5558 = vmatprep.subr.mxu1 %v2972_v51  ;;  %v2965_v61 = vld [vmem:[%s7954_s1 + $0x38] sm:$0xff]  ;;  %v2960_v41 = vld [vmem:[%s7954_s1 + $0x10] sm:$0xff] }
 0x3a2   :  { %v2011_v50 = vmul.f32 %v5990_v27, %v1915_v24  ;;  %v2127_v63 = vmax.f32 %v2095_v14, 0.0  ;;  %v2124_v2 = vmax.f32 %v2092_v53, 0.0  ;;  %5559 = vmatpush3.msra.mxu1 %v2972_v51  ;;  %v2964_v24 = vld [vmem:[%s7954_s1 + $0x30] sm:$0xff]  ;;  %v2961_v25 = vld [vmem:[%s7954_s1 + $0x18] sm:$0xff]  ;;  %v2959_v14 = vld [vmem:[%s7954_s1 + $0x8] sm:$0xff] }
 0x3a3   :  { %2374 = vmatmul.mubr.f32.gmra.mxu0 %v2120_v33  ;;  %v2094_v12 = vadd.f32 %v7629_v34, %v2051_v54  ;;  %v2053_v62 = vmul.f32 %v7618_v40, %v2010_v31  ;;  %5560 = vmatprep.subr.mxu1 %v2971_v36 }
 0x3a4   :  { %2524 = vmatmul.mubr.f32.gmra.mxu1 %v2120_v33  ;;  %2379 = vmatprep.mubr.f32.mxu0 %v2123_v43  ;;  %v2054_v16 = vmul.f32 %v7624_v52, %v2011_v50 }
 0x3a5   :  { %2528 = vmatprep.mubr.f32.mxu1 %v2123_v43  ;;  %v2096_v58 = vadd.f32 %v7629_v34, %v2053_v62  ;;  %v176_v34 = vld [vmem:[%s7908_s23 + $0x10] sm:$0xff]  ;;  %5561 = vmatpush3.msra.mxu1 %v2971_v36 }
 0x3a6   :  { %v2097_v9 = vadd.f32 %v7634_v23, %v2054_v16  ;;  %v2126_v23 = vmax.f32 %v2094_v12, 0.0  ;;  %5562 = vmatprep.subr.mxu1 %v2970_v21 }
 0x3a7   :  { %2380 = vmatmul.mubr.f32.gmra.mxu0 %v2122_v29  ;;  %v2128_v40 = vmax.f32 %v2096_v58, 0.0  ;;  %5563 = vmatpush3.msra.mxu1 %v2970_v21 }
 0x3a8   :  { %2529 = vmatmul.mubr.f32.gmra.mxu1 %v2122_v29  ;;  %2385 = vmatprep.mubr.f32.mxu0 %v2125_v3  ;;  %v2129_v52 = vmax.f32 %v2097_v9, 0.0 }
 0x3a9   :  { %2533 = vmatprep.mubr.f32.mxu1 %v2125_v3  ;;  %5564 = vmatprep.subr.mxu1 %v2969_v11 }
 0x3aa   :  { %5565 = vmatpush3.msra.mxu1 %v2969_v11 }
 0x3ab   :  { %2386 = vmatmul.mubr.f32.gmra.mxu0 %v2124_v2  ;;  %5566 = vmatprep.subr.mxu1 %v2968_v44 }
 0x3ac   :  { %2534 = vmatmul.mubr.f32.gmra.mxu1 %v2124_v2  ;;  %2391 = vmatprep.mubr.f32.mxu0 %v2127_v63 }
 0x3ad   :  { %2538 = vmatprep.mubr.f32.mxu1 %v2127_v63  ;;  %5567 = vmatpush3.msra.mxu1 %v2968_v44 }
 0x3ae   :  { %5568 = vmatprep.subr.mxu1 %v2967_v55 }
 0x3af   :  { %2392 = vmatmul.mubr.f32.gmra.mxu0 %v2126_v23  ;;  %5569 = vmatpush3.msra.mxu1 %v2967_v55 }
 0x3b0   :  { %2539 = vmatmul.mubr.f32.gmra.mxu1 %v2126_v23  ;;  %2397 = vmatprep.mubr.f32.mxu0 %v2129_v52 }
 0x3b1   :  { %2543 = vmatprep.mubr.f32.mxu1 %v2129_v52  ;;  %5570 = vmatprep.subr.mxu1 %v2966_v37 }
 0x3b2   :  { %5571 = vmatpush3.msra.mxu1 %v2966_v37 }
 0x3b3   :  { %2398 = vmatmul.mubr.f32.gmra.mxu0 %v2128_v40  ;;  %5572 = vmatprep.subr.mxu1 %v2965_v61 }
 0x3b4   :  { %2544 = vmatmul.mubr.f32.gmra.mxu1 %v2128_v40  ;;  %5506 = vmatprep.mubr.msk.f32.mxu0 %vm2549_vm2, %v7912_v49 }
 0x3b5   :  { %5573 = vmatpush3.msra.mxu1 %v2965_v61 }
 0x3b6   :  { %5574 = vmatprep.subr.mxu1 %v2964_v24 }
 0x3b7   :  { %5507 = vmatmul.mubr.msk.f32.vlgmr.msra.gmra.mxu0 %vm2549_vm2, %v175_v20  ;;  %5575 = vmatpush3.msra.mxu1 %v2964_v24 }
 0x3b8   :  { %5509 = vmatprep.mubr.msk.f32.mxu0 %vm2549_vm2, %v176_v34  ;;  %5531 = vmatpush3.msk.msra.mxu0 %vm2793_vm3, %v2743_v45 }
 0x3b9   :  { %5576 = vmatprep.subr.mxu1 %v2963_v15 }
 0x3ba   :  { %5577 = vmatpush3.msra.mxu1 %v2963_v15 }
 0x3bb   :  { %5510 = vmatmul.mubr.msk.f32.gmra.mxu0 %vm2549_vm2, %v177_v32  ;;  %5578 = vmatprep.subr.mxu1 %v2962_v13 }
 0x3bc   :  { %5512 = vmatprep.mubr.msk.f32.mxu0 %vm2549_vm2, %v178_v59  ;;  %5579 = vmatpush3.msra.mxu1 %v2962_v13 }
 0x3bd   :  { %5580 = vmatprep.subr.mxu1 %v2961_v25 }
 0x3be   :  { %5581 = vmatpush3.msra.mxu1 %v2961_v25 }
 0x3bf   :  { %5513 = vmatmul.mubr.msk.f32.gmra.mxu0 %vm2549_vm2, %v179_v6  ;;  %5582 = vmatprep.subr.mxu1 %v2960_v41 }
 0x3c0   :  { %5515 = vmatprep.mubr.msk.f32.mxu0 %vm2549_vm2, %v180_v8  ;;  %5583 = vmatpush3.msra.mxu1 %v2960_v41 }
 0x3c1   :  { %5584 = vmatprep.subr.mxu1 %v2959_v14 }
 0x3c2   :  { %5585 = vmatpush3.msra.mxu1 %v2959_v14 }
 0x3c3   :  { %5516 = vmatmul.mubr.msk.f32.gmra.mxu0 %vm2549_vm2, %v181_v47 }
 0x3c4   :  { %5518 = vmatprep.mubr.msk.f32.mxu0 %vm2549_vm2, %v182_v5 }
 0x3c7   :  { %5519 = vmatmul.mubr.msk.f32.gmra.mxu0 %vm2549_vm2, %v183_v30 }
 0x3c8   :  { %5521 = vmatprep.mubr.msk.f32.mxu0 %vm2549_vm2, %v184_v0 }
 0x3cb   :  { %5522 = vmatmul.mubr.msk.f32.gmra.mxu0 %vm2549_vm2, %v185_v56 }
 0x3cc   :  { %5524 = vmatprep.mubr.msk.f32.mxu0 %vm2549_vm2, %v186_v26 }
 0x3cf   :  { %5525 = vmatmul.mubr.msk.f32.gmra.mxu0 %vm2549_vm2, %v187_v42 }
 0x3d0   :  { %5527 = vmatprep.mubr.msk.f32.mxu0 %vm2549_vm2, %v188_v48 }
 0x3d3   :  { %5528 = vmatmul.mubr.msk.f32.gmra.mxu0 %vm2549_vm2, %v189_v28 }
 0x41a   :  { %v5226_v39 = vpop.f32.mrf.mxu1  ;;  %v7958_v18 = vpop.f32.mrf.mxu0 }
 0x41c   :  { %v5227_v1 = vpop.f32.mrf.mxu1  ;;  %v7964_v7 = vpop.f32.mrf.mxu0 }
 0x41d   :  { %v7961_v57 = vadd.f32 %v5227_v1, %v5226_v39  ;;  %8838 = vst [vmem:[#allocation5_spill] sm:$0xff] %v7964_v7 }
 0x422   :  { %v5229_v46 = vpop.f32.mrf.mxu1  ;;  %v7968_v4 = vpop.f32.mrf.mxu0 }
 0x424   :  { %v5230_v35 = vpop.f32.mrf.mxu1  ;;  %v7974_v10 = vpop.f32.mrf.mxu0 }
 0x425   :  { %v7971_v22 = vadd.f32 %v5230_v35, %v5229_v46  ;;  %8839 = vst [vmem:[#allocation6_spill] sm:$0xff] %v7974_v10 }
 0x42a   :  { %v7978_v43 = vpop.f32.mrf.mxu0  ;;  %v5232_v60 = vpop.f32.mrf.mxu1 }
 0x42c   :  { %v7981_v27 = vpop.f32.mrf.mxu0  ;;  %v5233_v33 = vpop.f32.mrf.mxu1 }
 0x42d   :  { %v7984_v38 = vadd.f32 %v5233_v33, %v5232_v60 }
 0x432   :  { %v7987_v50 = vpop.f32.mrf.mxu0  ;;  %v5235_v17 = vpop.f32.mrf.mxu1 }
 0x434   :  { %v5236_v3 = vpop.f32.mrf.mxu1  ;;  %v7991_v16 = vpop.f32.mrf.mxu0 }
 0x435   :  { %v7993_v29 = vadd.f32 %v5236_v3, %v5235_v17 }
 0x43a   :  { %v7995_v53 = vpop.f32.mrf.mxu0  ;;  %v5238_v54 = vpop.f32.mrf.mxu1 }
 0x43c   :  { %v5239_v31 = vpop.f32.mrf.mxu1  ;;  %v7999_v9 = vpop.f32.mrf.mxu0 }
 0x43d   :  { %v7997_v63 = vadd.f32 %v5239_v31, %v5238_v54 }
 0x444   :  { %v8001_v2 = vpop.f32.mrf.mxu0  ;;  %v5241_v12 = vpop.f32.mrf.mxu1 }
 0x446   :  { %v5242_v62 = vpop.f32.mrf.mxu1  ;;  %v8005_v23 = vpop.f32.mrf.mxu0 }
 0x447   :  { %v8003_v52 = vadd.f32 %v5242_v62, %v5241_v12  ;;  %8841 = vst [vmem:[#allocation8_spill] sm:$0xff] %v8005_v23 }
 0x449   :  { %8840 = vst [vmem:[#allocation7_spill] sm:$0xff] %v8003_v52 }
 0x44c   :  { %v8007_v58 = vpop.f32.mrf.mxu0  ;;  %v5244_v40 = vpop.f32.mrf.mxu1 }
 0x44e   :  { %v8009_v20 = vpop.f32.mrf.mxu0  ;;  %v5245_v34 = vpop.f32.mrf.mxu1 }
 0x44f   :  { %8842 = vst [vmem:[#allocation9_spill] sm:$0xff] %v8009_v20  ;;  %v8011_v32 = vadd.f32 %v5245_v34, %v5244_v40 }
 0x451   :  { %8843 = vst [vmem:[#allocation10_spill] sm:$0xff] %v8011_v32 }
 0x453   :  { %v8013_v59 = vpop.f32.mrf.mxu0  ;;  %v5247_v6 = vpop.f32.mrf.mxu1 }
 0x455   :  { %v8015_v8 = vpop.f32.mrf.mxu0  ;;  %v5248_v47 = vpop.f32.mrf.mxu1 }
 0x456   :  { %8844 = vst [vmem:[#allocation11_spill] sm:$0xff] %v8015_v8  ;;  %v8017_v5 = vadd.f32 %v5248_v47, %v5247_v6 }
 0x457   :  { %v8019_v30 = vpop.f32.mrf.mxu0 }
 0x458   :  { %8845 = vst [vmem:[#allocation12_spill] sm:$0xff] %v8017_v5  ;;  %v5250_v0 = vpop.f32.mrf.mxu1 }
 0x459   :  { %v8021_v56 = vpop.f32.mrf.mxu0 }
 0x45a   :  { %8846 = vst [vmem:[#allocation13_spill] sm:$0xff] %v8021_v56  ;;  %v5251_v26 = vpop.f32.mrf.mxu1 }
 0x45b   :  { %v8023_v42 = vadd.f32 %v5251_v26, %v5250_v0  ;;  %v8025_v48 = vpop.f32.mrf.mxu0 }
 0x45c   :  { %v5253_v28 = vpop.f32.mrf.mxu1 }
 0x45d   :  { %8847 = vst [vmem:[#allocation14_spill] sm:$0xff] %v8023_v42  ;;  %v8027_v45 = vpop.f32.mrf.mxu0 }
 0x45e   :  { %8848 = vst [vmem:[#allocation15_spill] sm:$0xff] %v8027_v45  ;;  %v5254_v19 = vpop.f32.mrf.mxu1 }
 0x45f   :  { %v8029_v51 = vadd.f32 %v5254_v19, %v5253_v28  ;;  %v8031_v39 = vpop.f32.mrf.mxu0 }
 0x460   :  { %v5256_v36 = vpop.f32.mrf.mxu1 }
 0x461   :  { %8849 = vst [vmem:[#allocation16_spill] sm:$0xff] %v8029_v51  ;;  %v8033_v1 = vpop.f32.mrf.mxu0 }
 0x462   :  { %8850 = vst [vmem:[#allocation17_spill] sm:$0xff] %v8033_v1  ;;  %v5257_v21 = vpop.f32.mrf.mxu1 }
 0x463   :  { %v8035_v11 = vadd.f32 %v5257_v21, %v5256_v36  ;;  %v8037_v46 = vpop.f32.mrf.mxu0 }
 0x464   :  { %v5259_v44 = vpop.f32.mrf.mxu1 }
 0x465   :  { %8851 = vst [vmem:[#allocation21_spill] sm:$0xff] %v8035_v11  ;;  %v8039_v35 = vpop.f32.mrf.mxu0 }
 0x466   :  { %8852 = vst [vmem:[#allocation22_spill] sm:$0xff] %v8039_v35  ;;  %v5260_v55 = vpop.f32.mrf.mxu1 }
 0x467   :  { %v8041_v37 = vadd.f32 %v5260_v55, %v5259_v44  ;;  %v8043_v61 = vpop.f32.mrf.mxu0 }
 0x468   :  { %v5262_v24 = vpop.f32.mrf.mxu1 }
 0x469   :  { %8853 = vst [vmem:[#allocation23_spill] sm:$0xff] %v8041_v37  ;;  %v8045_v60 = vpop.f32.mrf.mxu0 }
 0x46a   :  { %v5263_v15 = vpop.f32.mrf.mxu1 }
 0x46b   :  { %v8047_v33 = vadd.f32 %v5263_v15, %v5262_v24  ;;  %v8049_v13 = vpop.f32.mrf.mxu0 }
 0x46c   :  { %v5265_v25 = vpop.f32.mrf.mxu1 }
 0x46d   :  { %v8051_v17 = vpop.f32.mrf.mxu0 }
 0x46e   :  { %v5266_v41 = vpop.f32.mrf.mxu1 }
 0x46f   :  { %v8053_v3 = vadd.f32 %v5266_v41, %v5265_v25  ;;  %v8055_v14 = vpop.f32.mrf.mxu0 }
 0x470   :  { %v5268_v54 = vpop.f32.mrf.mxu1 }
 0x471   :  { %v8057_v31 = vpop.f32.mrf.mxu0 }
 0x472   :  { %v5269_v12 = vpop.f32.mrf.mxu1 }
 0x473   :  { %v8059_v62 = vadd.f32 %v5269_v12, %v5268_v54  ;;  %v8061_v40 = vpop.f32.mrf.mxu0 }
 0x475   :  { %v8063_v34 = vpop.f32.mrf.mxu0 }
 0x477   :  { %v5508_v6 = vpop.f32.mrf.mxu0 }
 0x479   :  { %v2664_v47 = vpop.f32.mrf.mxu0 }
 0x47a   :  { %5532 = vmatprep.mubr.msk.f32.mxu0 %vm2744_vm4, %v2664_v47  ;;  %v8085_v47 = vld [vmem:[%s5030_s5 + $0x8] sm:$0xff] }
 0x47b   :  { %v5511_v0 = vpop.f32.mrf.mxu0  ;;  %5533 = vmatmul.mubr.msk.f32.vlgmr.msra.gmra.mxu0 %vm2744_vm4, %v5508_v6  ;;  %v2958_v6 = vld [vmem:[%s7954_s1] sm:$0xff]  ;;  %5612 = vmatprep.subr.mxu0 %v8085_v47  ;;  %s6106_s1 = smov 27  }
 0x47c   :  { %5586 = vmatprep.subr.mxu1 %v2958_v6  ;;  %5613 = vmatpush3.msra.mxu0 %v8085_v47  ;;  %s5050_s4 = sld [smem:[%s8655_s0 + %s6106_s1]]  }
 0x47d   :  { %v2674_v26 = vpop.f32.mrf.mxu0  ;;  %5587 = vmatpush3.msra.mxu1 %v2958_v6 }
 0x47e   :  { %5535 = vmatprep.mubr.msk.f32.mxu0 %vm2744_vm4, %v2674_v26  ;;  %v8096_v26 = vld [vmem:[%s5045_s9] sm:$0x7]  ;;  %s6108_s9 = smov 26  }
 0x47f   :  { %v5514_v28 = vpop.f32.mrf.mxu0  ;;  %5536 = vmatmul.mubr.msk.f32.gmra.mxu0 %vm2744_vm4, %v5511_v0  ;;  %v8087_v0 = vld [vmem:[%s5030_s5] sm:$0xff]  ;;  %s6107_s5 = smov 25   ;;  %s5049_s13 = sld [smem:[%s8655_s0 + %s6108_s9]]  }
 0x480   :  { %5614 = vmatprep.subr.mxu0 %v8087_v0  ;;  %s5048_s8 = sld [smem:[%s8655_s0 + %s6107_s5]]  }
 0x481   :  { %v2684_v19 = vpop.f32.mrf.mxu0  ;;  %5615 = vmatpush3.msra.mxu0 %v8087_v0 }
 0x482   :  { %5538 = vmatprep.mubr.msk.f32.mxu0 %vm2744_vm4, %v2684_v19 }
 0x483   :  { %v5517_v36 = vpop.f32.mrf.mxu0  ;;  %5539 = vmatmul.mubr.msk.f32.gmra.mxu0 %vm2744_vm4, %v5514_v28  ;;  %v8854_v28 = vld [vmem:[#allocation19_spill] sm:$0xff] }
 0x484   :  { %v2231_v19 = vrot.slane %v8096_v26, %v8854_v28 }
 0x485   :  { %v2694_v21 = vpop.f32.mrf.mxu0 }
 0x486   :  { %5541 = vmatprep.mubr.msk.f32.mxu0 %vm2744_vm4, %v2694_v21  ;;  %v2310_v21 = vadd.f32 %v7958_v18, %v2231_v19  ;;  %v2334_v28 = vadd.f32 %v7995_v53, %v2231_v19  ;;  %v2340_v18 = vadd.f32 %v8001_v2, %v2231_v19  ;;  %v2358_v53 = vadd.f32 %v8019_v30, %v2231_v19 }
 0x487   :  { %v5520_v44 = vpop.f32.mrf.mxu0  ;;  %5542 = vmatmul.mubr.msk.f32.gmra.mxu0 %vm2744_vm4, %v5517_v36  ;;  %v2364_v2 = vadd.f32 %v8025_v48, %v2231_v19  ;;  %v2382_v30 = vadd.f32 %v8043_v61, %v2231_v19  ;;  %v2388_v48 = vadd.f32 %v8049_v13, %v2231_v19  ;;  %v6067_v61 = vld [vmem:[%s7586_s11] sm:$0xff]  ;;  %v8118_v13 = vpop.f32.mrf.mxu1 }
 0x489   :  { %v2704_v55 = vpop.f32.mrf.mxu0 }
 0x48a   :  { %5544 = vmatprep.mubr.msk.f32.mxu0 %vm2744_vm4, %v2704_v55 }
 0x48b   :  { %v5523_v24 = vpop.f32.mrf.mxu0  ;;  %5545 = vmatmul.mubr.msk.f32.gmra.mxu0 %vm2744_vm4, %v5520_v44  ;;  %v2316_v44 = vadd.f32 %v7968_v4, %v2231_v19 }
 0x48d   :  { %v2714_v15 = vpop.f32.mrf.mxu0 }
 0x48e   :  { %5547 = vmatprep.mubr.msk.f32.mxu0 %vm2744_vm4, %v2714_v15 }
 0x48f   :  { %v5526_v25 = vpop.f32.mrf.mxu0  ;;  %5548 = vmatmul.mubr.msk.f32.gmra.mxu0 %vm2744_vm4, %v5523_v24 }
 0x491   :  { %v2724_v41 = vpop.f32.mrf.mxu0 }
 0x492   :  { %5550 = vmatprep.mubr.msk.f32.mxu0 %vm2744_vm4, %v2724_v41  ;;  %v2322_v41 = vadd.f32 %v7978_v43, %v2231_v19  ;;  %v2346_v43 = vadd.f32 %v8007_v58, %v2231_v19  ;;  %v2370_v58 = vadd.f32 %v8031_v39, %v2231_v19  ;;  %v2394_v39 = vadd.f32 %v8055_v14, %v2231_v19 }
 0x493   :  { %v5529_v54 = vpop.f32.mrf.mxu0  ;;  %5551 = vmatmul.mubr.msk.f32.gmra.mxu0 %vm2744_vm4, %v5526_v25 }
 0x495   :  { %v2734_v12 = vpop.f32.mrf.mxu0 }
 0x496   :  { %5553 = vmatprep.mubr.msk.f32.mxu0 %vm2744_vm4, %v2734_v12 }
 0x497   :  { %5554 = vmatmul.mubr.msk.f32.gmra.mxu0 %vm2744_vm4, %v5529_v54  ;;  %v2328_v54 = vadd.f32 %v7987_v50, %v2231_v19  ;;  %v2352_v50 = vadd.f32 %v8013_v59, %v2231_v19  ;;  %v2376_v59 = vadd.f32 %v8037_v46, %v2231_v19  ;;  %v2400_v46 = vadd.f32 %v8061_v40, %v2231_v19 }
 0x53b   :  { %v5534_v36 = vpop.f32.mrf.mxu0 }
 0x53c   :  { %v2943_v15 = vmul.f32 %v5534_v36, %v2316_v44 }
 0x53d   :  { %v2863_v55 = vpop.f32.mrf.mxu0 }
 0x53e   :  { %v2942_v24 = vmul.f32 %v2863_v55, %v2310_v21 }
 0x53f   :  { %v5537_v25 = vpop.f32.mrf.mxu0 }
 0x540   :  { %5588 = vmatprep.mubr.f32.mxu1 %v2942_v24  ;;  %v2945_v7 = vmul.f32 %v5537_v25, %v2328_v54 }
 0x541   :  { %v2873_v12 = vpop.f32.mrf.mxu0  ;;  %5589 = vmatmul.mubr.f32.vlgmr.msra.gmra.mxu1 %v2943_v15 }
 0x542   :  { %v2944_v6 = vmul.f32 %v2873_v12, %v2322_v41 }
 0x543   :  { %v5540_v10 = vpop.f32.mrf.mxu0 }
 0x544   :  { %5591 = vmatprep.mubr.f32.mxu1 %v2944_v6  ;;  %v2947_v36 = vmul.f32 %v5540_v10, %v2340_v18 }
 0x545   :  { %v2883_v4 = vpop.f32.mrf.mxu0  ;;  %5592 = vmatmul.mubr.f32.gmra.mxu1 %v2945_v7 }
 0x546   :  { %v2946_v21 = vmul.f32 %v2883_v4, %v2334_v28 }
 0x547   :  { %v5543_v44 = vpop.f32.mrf.mxu0 }
 0x548   :  { %5594 = vmatprep.mubr.f32.mxu1 %v2946_v21  ;;  %v2949_v15 = vmul.f32 %v5543_v44, %v2352_v50 }
 0x549   :  { %v2893_v55 = vpop.f32.mrf.mxu0  ;;  %5595 = vmatmul.mubr.f32.gmra.mxu1 %v2947_v36 }
 0x54a   :  { %v2948_v24 = vmul.f32 %v2893_v55, %v2346_v43 }
 0x54b   :  { %v5546_v25 = vpop.f32.mrf.mxu0 }
 0x54c   :  { %5597 = vmatprep.mubr.f32.mxu1 %v2948_v24  ;;  %v2951_v10 = vmul.f32 %v5546_v25, %v2364_v2  ;;  %v8120_v24 = vpop.f32.mrf.mxu1 }
 0x54d   :  { %v2903_v41 = vpop.f32.mrf.mxu0  ;;  %5598 = vmatmul.mubr.f32.gmra.mxu1 %v2949_v15 }
 0x54e   :  { %v2950_v7 = vmul.f32 %v2903_v41, %v2358_v53 }
 0x54f   :  { %v5549_v54 = vpop.f32.mrf.mxu0 }
 0x550   :  { %5600 = vmatprep.mubr.f32.mxu1 %v2950_v7  ;;  %v2953_v28 = vmul.f32 %v5549_v54, %v2376_v59 }
 0x551   :  { %v2913_v12 = vpop.f32.mrf.mxu0  ;;  %5601 = vmatmul.mubr.f32.gmra.mxu1 %v2951_v10 }
 0x552   :  { %v2952_v6 = vmul.f32 %v2913_v12, %v2370_v58 }
 0x553   :  { %v5552_v18 = vpop.f32.mrf.mxu0 }
 0x554   :  { %5603 = vmatprep.mubr.f32.mxu1 %v2952_v6  ;;  %v2955_v36 = vmul.f32 %v5552_v18, %v2388_v48  ;;  %v3328_v18 = vld [vmem:[%s5046_s14] sm:$0x3f]  ;;  %s6109_s14 = smov 28  }
 0x555   :  { %v2923_v4 = vpop.f32.mrf.mxu0  ;;  %5604 = vmatmul.mubr.f32.gmra.mxu1 %v2953_v28  ;;  %5640 = vmatprep.subr.msk.mxu1 %vm2793_vm3, %v3328_v18  ;;  %v8151_v48 = vld [vmem:[%s8148_s18] sm:$0xff]  ;;  %s5051_s17 = sld [smem:[%s8655_s0 + %s6109_s14]]  }
 0x556   :  { %v2954_v21 = vmul.f32 %v2923_v4, %v2382_v30  ;;  %5641 = vmatpush3.msk.msra.mxu1 %vm2793_vm3, %v3328_v18  ;;  %v6068_v30 = vld [vmem:[%s7586_s11 + $0x8] sm:$0xff]  ;;  %8855 = vst [vmem:[#allocation24_spill] sm:$0xff] %v8151_v48  ;;  %v8160_v4 = vld [vmem:[%s8156_s22 + $0x38] sm:$0xff]  ;;  %s6104_s11 = smov 2  }
 0x557   :  { %v5555_v44 = vpop.f32.mrf.mxu0  ;;  %5680 = vmatprep.subr.mxu1 %v8160_v4  ;;  %s8190_s26 = sld [smem:[%s8655_s0 + %s6104_s11]]  }
 0x558   :  { %5606 = vmatprep.mubr.f32.mxu1 %v2954_v21  ;;  %v2957_v55 = vmul.f32 %v5555_v44, %v2400_v46  ;;  %v8163_v21 = vld [vmem:[%s8156_s22 + $0x30] sm:$0xff]  ;;  %v8175_v44 = vld [vmem:[%s8156_s22 + $0x20] sm:$0xff] }
 0x559   :  { %v2933_v43 = vpop.f32.mrf.mxu0  ;;  %5607 = vmatmul.mubr.f32.gmra.mxu1 %v2955_v36  ;;  %v8168_v36 = vld [vmem:[%s8156_s22 + $0x28] sm:$0xff] }
 0x55a   :  { %v2956_v50 = vmul.f32 %v2933_v43, %v2394_v39 }
 0x55c   :  { %5609 = vmatprep.mubr.f32.mxu1 %v2956_v50 }
 0x55d   :  { %5610 = vmatmul.mubr.f32.gmra.mxu1 %v2957_v55  ;;  %v8216_v23 = vld [vmem:[%s8190_s26 + $0x48] sm:$0xff] }
 0x55e   :  { %5642 = vmatprep.mubr.msk.f32.mxu1 %vm2744_vm4, %v6067_v61 }
 0x561   :  { %5643 = vmatmul.mubr.msk.f32.vlgmr.msra.gmra.mxu1 %vm2744_vm4, %v6068_v30  ;;  %v8208_v30 = vld [vmem:[%s8190_s26 + $0x58] sm:$0xff] }
 0x562   :  { %5681 = vmatpush3.msra.mxu1 %v8160_v4 }
 0x563   :  { %5682 = vmatprep.subr.mxu1 %v8163_v21 }
 0x564   :  { %5683 = vmatpush3.msra.mxu1 %v8163_v21 }
 0x565   :  { %5684 = vmatprep.subr.mxu1 %v8168_v36 }
 0x566   :  { %5685 = vmatpush3.msra.mxu1 %v8168_v36 }
 0x567   :  { %5686 = vmatprep.subr.mxu1 %v8175_v44 }
 0x568   :  { %5687 = vmatpush3.msra.mxu1 %v8175_v44 }
 0x601   :  { %v5590_v15 = vpop.f32.mrf.mxu1 }
 0x603   :  { %v3040_v25 = vpop.f32.mrf.mxu1 }
 0x604   :  { %5616 = vmatprep.mubr.msk.f32.mxu0 %vm2549_vm2, %v3040_v25 }
 0x605   :  { %v5593_v14 = vpop.f32.mrf.mxu1  ;;  %5617 = vmatmul.mubr.msk.f32.vlgmr.msra.gmra.mxu0 %vm2549_vm2, %v5590_v15 }
 0x607   :  { %v3050_v40 = vpop.f32.mrf.mxu1 }
 0x608   :  { %5619 = vmatprep.mubr.msk.f32.mxu0 %vm2549_vm2, %v3050_v40 }
 0x609   :  { %v5596_v19 = vpop.f32.mrf.mxu1  ;;  %5620 = vmatmul.mubr.msk.f32.gmra.mxu0 %vm2549_vm2, %v5593_v14 }
 0x60b   :  { %v3060_v53 = vpop.f32.mrf.mxu1 }
 0x60c   :  { %5622 = vmatprep.mubr.msk.f32.mxu0 %vm2549_vm2, %v3060_v53 }
 0x60d   :  { %v5599_v2 = vpop.f32.mrf.mxu1  ;;  %5623 = vmatmul.mubr.msk.f32.gmra.mxu0 %vm2549_vm2, %v5596_v19 }
 0x60f   :  { %v3070_v41 = vpop.f32.mrf.mxu1 }
 0x610   :  { %5625 = vmatprep.mubr.msk.f32.mxu0 %vm2549_vm2, %v3070_v41 }
 0x611   :  { %v5602_v7 = vpop.f32.mrf.mxu1  ;;  %5626 = vmatmul.mubr.msk.f32.gmra.mxu0 %vm2549_vm2, %v5599_v2 }
 0x613   :  { %v3080_v10 = vpop.f32.mrf.mxu1 }
 0x614   :  { %5628 = vmatprep.mubr.msk.f32.mxu0 %vm2549_vm2, %v3080_v10 }
 0x615   :  { %v5605_v54 = vpop.f32.mrf.mxu1  ;;  %5629 = vmatmul.mubr.msk.f32.gmra.mxu0 %vm2549_vm2, %v5602_v7  ;;  %v8193_v7 = vld [vmem:[%s8190_s26 + $0x78] sm:$0xff] }
 0x617   :  { %v3090_v58 = vpop.f32.mrf.mxu1 }
 0x618   :  { %5631 = vmatprep.mubr.msk.f32.mxu0 %vm2549_vm2, %v3090_v58 }
 0x619   :  { %v5608_v59 = vpop.f32.mrf.mxu1  ;;  %5632 = vmatmul.mubr.msk.f32.gmra.mxu0 %vm2549_vm2, %v5605_v54  ;;  %v8196_v54 = vld [vmem:[%s8190_s26 + $0x70] sm:$0xff] }
 0x61b   :  { %v3100_v12 = vpop.f32.mrf.mxu1 }
 0x61c   :  { %5634 = vmatprep.mubr.msk.f32.mxu0 %vm2549_vm2, %v3100_v12 }
 0x61d   :  { %v5611_v6 = vpop.f32.mrf.mxu1  ;;  %5635 = vmatmul.mubr.msk.f32.gmra.mxu0 %vm2549_vm2, %v5608_v59  ;;  %v8200_v59 = vld [vmem:[%s8190_s26 + $0x68] sm:$0xff] }
 0x61f   :  { %v3110_v28 = vpop.f32.mrf.mxu1 }
 0x620   :  { %5637 = vmatprep.mubr.msk.f32.mxu0 %vm2549_vm2, %v3110_v28  ;;  %v8204_v28 = vld [vmem:[%s8190_s26 + $0x60] sm:$0xff] }
 0x621   :  { %5638 = vmatmul.mubr.msk.f32.gmra.mxu0 %vm2549_vm2, %v5611_v6 }
 0x622   :  { %5677 = vmatprep.mubr.f32.mxu0 %v8151_v48  ;;  %v8212_v48 = vld [vmem:[%s8190_s26 + $0x50] sm:$0xff] }
 0x6c5   :  { %v8179_v39 = vpop.f32.mrf.mxu0 }
 0x6c7   :  { %v8181_v46 = vpop.f32.mrf.mxu0 }
 0x6c9   :  { %v8183_v43 = vpop.f32.mrf.mxu0 }
 0x6cb   :  { %v8185_v50 = vpop.f32.mrf.mxu0 }
 0x6cd   :  { %v5624_v55 = vpop.f32.mrf.mxu0 }
 0x6cf   :  { %v3253_v61 = vpop.f32.mrf.mxu0 }
 0x6d1   :  { %v5627_v15 = vpop.f32.mrf.mxu0 }
 0x6d3   :  { %v3263_v25 = vpop.f32.mrf.mxu0 }
 0x6d5   :  { %v5630_v14 = vpop.f32.mrf.mxu0 }
 0x6d7   :  { %v3273_v40 = vpop.f32.mrf.mxu0 }
 0x6d9   :  { %v5633_v19 = vpop.f32.mrf.mxu0 }
 0x6db   :  { %v3283_v53 = vpop.f32.mrf.mxu0 }
 0x6dd   :  { %v5636_v2 = vpop.f32.mrf.mxu0 }
 0x6de   :  { %v3325_v18 = vmul.f32 %v5636_v2, %v8200_v59  ;;  %v3322_v2 = vmul.f32 %v3283_v53, %v8212_v48 }
 0x6df   :  { %v3293_v41 = vpop.f32.mrf.mxu0 }
 0x6e1   :  { %v5639_v10 = vpop.f32.mrf.mxu0 }
 0x6e2   :  { %v3327_v58 = vmul.f32 %v5639_v10, %v8193_v7  ;;  %v3324_v10 = vmul.f32 %v3293_v41, %v8204_v28  ;;  %v3321_v41 = vmul.f32 %v5630_v14, %v8216_v23 }
 0x6e3   :  { %v3303_v12 = vpop.f32.mrf.mxu0 }
 0x6e4   :  { %v3326_v6 = vmul.f32 %v3303_v12, %v8196_v54  ;;  %5645 = vmatprep.subr.mxu0 %v3327_v58  ;;  %v3323_v12 = vmul.f32 %v5633_v19, %v8208_v30 }
 0x6e5   :  { %5646 = vmatpush3.msra.mxu0 %v3327_v58  ;;  %v8220_v58 = vld [vmem:[%s8190_s26 + $0x40] sm:$0xff] }
 0x6e6   :  { %5647 = vmatprep.subr.mxu0 %v3326_v6  ;;  %v3320_v19 = vmul.f32 %v3273_v40, %v8220_v58 }
 0x6e7   :  { %5648 = vmatpush3.msra.mxu0 %v3326_v6  ;;  %v8224_v6 = vld [vmem:[%s8190_s26 + $0x38] sm:$0xff] }
 0x6e8   :  { %5649 = vmatprep.subr.mxu0 %v3325_v18  ;;  %v3319_v53 = vmul.f32 %v5627_v15, %v8224_v6 }
 0x6e9   :  { %5650 = vmatpush3.msra.mxu0 %v3325_v18  ;;  %v8228_v18 = vld [vmem:[%s8190_s26 + $0x30] sm:$0xff] }
 0x6ea   :  { %5651 = vmatprep.subr.mxu0 %v3324_v10  ;;  %v3318_v14 = vmul.f32 %v3263_v25, %v8228_v18 }
 0x6eb   :  { %5652 = vmatpush3.msra.mxu0 %v3324_v10  ;;  %v8232_v10 = vld [vmem:[%s8190_s26 + $0x28] sm:$0xff] }
 0x6ec   :  { %5653 = vmatprep.subr.mxu0 %v3323_v12  ;;  %v3317_v40 = vmul.f32 %v5624_v55, %v8232_v10 }
 0x6ed   :  { %5654 = vmatpush3.msra.mxu0 %v3323_v12  ;;  %v8236_v12 = vld [vmem:[%s8190_s26 + $0x20] sm:$0xff] }
 0x6ee   :  { %5655 = vmatprep.subr.mxu0 %v3322_v2  ;;  %v3316_v15 = vmul.f32 %v3253_v61, %v8236_v12 }
 0x6ef   :  { %5656 = vmatpush3.msra.mxu0 %v3322_v2  ;;  %v8240_v2 = vld [vmem:[%s8190_s26 + $0x18] sm:$0xff] }
 0x6f0   :  { %5657 = vmatprep.subr.mxu0 %v3321_v41  ;;  %v3315_v25 = vmul.f32 %v8183_v43, %v8240_v2 }
 0x6f1   :  { %5658 = vmatpush3.msra.mxu0 %v3321_v41  ;;  %v8244_v41 = vld [vmem:[%s8190_s26 + $0x10] sm:$0xff] }
 0x6f2   :  { %5659 = vmatprep.subr.mxu0 %v3320_v19  ;;  %v3314_v55 = vmul.f32 %v8185_v50, %v8244_v41  ;;  %v8265_v50 = vld [vmem:[%s8156_s22 + $0x18] sm:$0xff] }
 0x6f3   :  { %5660 = vmatpush3.msra.mxu0 %v3320_v19  ;;  %v8249_v19 = vld [vmem:[%s8190_s26 + $0x8] sm:$0xff]  ;;  %5688 = vmatprep.subr.mxu1 %v8265_v50 }
 0x6f4   :  { %5661 = vmatprep.subr.mxu0 %v3319_v53  ;;  %v3313_v61 = vmul.f32 %v8179_v39, %v8249_v19  ;;  %5689 = vmatpush3.msra.mxu1 %v8265_v50  ;;  %v8270_v39 = vld [vmem:[%s8156_s22 + $0x10] sm:$0xff] }
 0x6f5   :  { %5662 = vmatpush3.msra.mxu0 %v3319_v53  ;;  %v8254_v53 = vld [vmem:[%s8190_s26] sm:$0xff]  ;;  %5690 = vmatprep.subr.mxu1 %v8270_v39 }
 0x6f6   :  { %5663 = vmatprep.subr.mxu0 %v3318_v14  ;;  %v3312_v43 = vmul.f32 %v8181_v46, %v8254_v53  ;;  %5691 = vmatpush3.msra.mxu1 %v8270_v39  ;;  %v8278_v46 = vld [vmem:[%s8156_s22] sm:$0xff] }
 0x6f7   :  { %5664 = vmatpush3.msra.mxu0 %v3318_v14  ;;  %v8261_v14 = vld [vmem:[%s8148_s18 + $0x8] sm:$0xff]  ;;  %s6110_s18 = smov 10  }
 0x6f8   :  { %5665 = vmatprep.subr.mxu0 %v3317_v40  ;;  %8856 = vst [vmem:[#allocation25_spill] sm:$0xff] %v8261_v14  ;;  %s5033_s21 = sld [smem:[%s8655_s0 + %s6110_s18]]  }
 0x6f9   :  { %5666 = vmatpush3.msra.mxu0 %v3317_v40  ;;  %v8274_v40 = vld [vmem:[%s8156_s22 + $0x8] sm:$0xff] }
 0x6fa   :  { %5667 = vmatprep.subr.mxu0 %v3316_v15  ;;  %5692 = vmatprep.subr.mxu1 %v8274_v40 }
 0x6fb   :  { %5668 = vmatpush3.msra.mxu0 %v3316_v15  ;;  %5693 = vmatpush3.msra.mxu1 %v8274_v40  ;;  %v5644_v15 = vpop.f32.mrf.mxu1 }
 0x6fc   :  { %5669 = vmatprep.subr.mxu0 %v3315_v25  ;;  %5694 = vmatprep.subr.mxu1 %v8278_v46 }
 0x6fd   :  { %5670 = vmatpush3.msra.mxu0 %v3315_v25  ;;  %5695 = vmatpush3.msra.mxu1 %v8278_v46 }
 0x6fe   :  { %5671 = vmatprep.subr.mxu0 %v3314_v55 }
 0x6ff   :  { %5672 = vmatpush3.msra.mxu0 %v3314_v55  ;;  %v3404_v55 = vpop.f32.mrf.mxu1 }
 0x700   :  { %5673 = vmatprep.subr.mxu0 %v3313_v61 }
 0x701   :  { %5674 = vmatpush3.msra.mxu0 %v3313_v61 }
 0x702   :  { %5675 = vmatprep.subr.mxu0 %v3312_v43 }
 0x703   :  { %5676 = vmatpush3.msra.mxu0 %v3312_v43 }
 0x704   :  { %5678 = vmatmul.mubr.f32.vlgmr.msra.gmra.mxu0 %v8261_v14 }
 0x7c4   :  { %v5679_v25 = vpop.f32.mrf.mxu0 }
 0x7c5   :  { %v8284_v61 = vadd.f32 %v5679_v25, %v5644_v15  ;;  %v3589_v15 = vld [vmem:[%s5032_s30 + $0x8] sm:$0xff]  ;;  %v3588_v25 = vld [vmem:[%s5032_s30] sm:$0xff] }
 0x7c6   :  { %v3479_v43 = vpop.f32.mrf.mxu0  ;;  %5699 = vmatprep.subr.mxu0 %v3589_v15 }
 0x7c7   :  { %v8286_v14 = vadd.f32 %v3479_v43, %v3404_v55  ;;  %v3489_v20 = vmul.f32 %v8284_v61, %v8284_v61  ;;  %5700 = vmatpush3.msra.mxu0 %v3589_v15 }
 0x7c8   :  { %5701 = vmatprep.subr.mxu0 %v3588_v25 }
 0x7c9   :  { %v3488_v52 = vmul.f32 %v8286_v14, %v8286_v14  ;;  %5702 = vmatpush3.msra.mxu0 %v3588_v25 }
 0x7ca   :  { %5706 = vmatprep.subr.mxu0 %v3589_v15 }
 0x7cb   :  { %5696 = vmatprep.mubr.msk.f32.mxu1 %vm3490_vm5, %v3488_v52 }
 0x7cc   :  { %5697 = vmatmul.mubr.msk.f32.vlgmr.msra.gmra.mxu1 %vm3490_vm5, %v3489_v20 }
 0x7cd   :  { %5731 = vmatprep.mubr.msk.f32.mxu1 %vm2549_vm2, %v7912_v49 }
 0x88c   :  { %v5698_v55 = vpop.f32.mrf.mxu1 }
 0x88d   :  { %5991 = vrsqrt.f32 %v5698_v55  ;;  %vm3581_vm6 = vcmp.eq.f32.partialorder %v5698_v55, inf  ;;  %v3584_v8 = vand.u32 2147483648, %v5698_v55  ;;  %vm3583_vm7 = vcmp.eq.f32.partialorder %v5698_v55, 0.0 }
 0x88e   :  { %v3563_v52 = vpop.f32.mrf.mxu1 }
 0x88f   :  { %5993 = vrsqrt.f32 %v3563_v52  ;;  %vm3574_vm8 = vcmp.eq.f32.partialorder %v3563_v52, inf  ;;  %v3577_v56 = vand.u32 2147483648, %v3563_v52  ;;  %vm3576_vm9 = vcmp.eq.f32.partialorder %v3563_v52, 0.0 }
 0x89a   :  { %v5992_v20 = vpop.eup %5991 }
 0x89b   :  { %v3580_v43 = vmul.f32 %v5992_v20, %v5698_v55 }
 0x89c   :  { %v5994_v32 = vpop.eup %5993 }
 0x89d   :  { %v3582_v49 = vsel %vm3581_vm6, %v5698_v55, %v3580_v43  ;;  %v3573_v5 = vmul.f32 %v5994_v32, %v3563_v52  ;;  %v3789_v32 = vld [vmem:[%s5050_s4 + $0x8] sm:$0xff] }
 0x89e   :  { %v3585_v42 = vsel %vm3583_vm7, %v3584_v8, %v3582_v49  ;;  %v3788_v8 = vld [vmem:[%s5050_s4] sm:$0xff] }
 0x89f   :  { %v3575_v45 = vsel %vm3574_vm8, %v3563_v52, %v3573_v5  ;;  %v3587_v11 = vmax.f32 %v3585_v42, 1e-12 }
 0x8a0   :  { %v3578_v51 = vsel %vm3576_vm9, %v3577_v56, %v3575_v45 }
 0x8a1   :  { %v3586_v1 = vmax.f32 %v3578_v51, 1e-12  ;;  %v3674_v20 = vmul.f32 %v3587_v11, %v3587_v11 }
 0x8a3   :  { %5703 = vmatprep.mubr.msk.f32.mxu0 %vm2549_vm2, %v3586_v1  ;;  %v3673_v35 = vmul.f32 %v3586_v1, %v3586_v1 }
 0x8a4   :  { %5704 = vmatmul.mubr.msk.f32.vlgmr.msra.gmra.mxu0 %vm2549_vm2, %v3587_v11 }
 0x8a5   :  { %5707 = vmatpush3.msra.mxu0 %v3589_v15  ;;  %5710 = vmatprep.mubr.msk.f32.mxu0 %vm2549_vm2, %v3673_v35 }
 0x8a6   :  { %5708 = vmatprep.subr.mxu0 %v3588_v25 }
 0x8a7   :  { %5709 = vmatpush3.msra.mxu0 %v3588_v25 }
 0x8a8   :  { %5711 = vmatmul.mubr.msk.f32.vlgmr.msra.gmra.mxu0 %vm2549_vm2, %v3674_v20  ;;  %5713 = vmatprep.subr.mxu0 %v3789_v32 }
 0x8a9   :  { %5714 = vmatpush3.msra.mxu0 %v3789_v32 }
 0x8aa   :  { %5715 = vmatprep.subr.mxu0 %v3788_v8 }
 0x8ab   :  { %5716 = vmatpush3.msra.mxu0 %v3788_v8  ;;  %v5133_v8 = vld [vmem:[%s5048_s8] ss:$0 sm:$0xff] }
 0x8ac   :  { %5720 = vmatprep.subr.mxu0 %v8085_v47 }
 0x964   :  { %v5705_v5 = vpop.f32.mrf.mxu0 }
 0x965   :  { %v3757_v42 = vmul.f32 %v5705_v5, %v5705_v5  ;;  %v3763_v20 = vsub.f32 %v3587_v11, %v5705_v5  ;;  %v5135_v5 = vld [vmem:[%s5051_s17] ss:$0 sm:$0xff] }
 0x966   :  { %v3664_v56 = vpop.f32.mrf.mxu0 }
 0x967   :  { %v3756_v51 = vmul.f32 %v3664_v56, %v3664_v56 }
 0x968   :  { %v5712_v45 = vpop.f32.mrf.mxu0 }
 0x969   :  { %v3759_v35 = vsub.f32 %v5712_v45, %v3757_v42  ;;  %v3762_v42 = vsub.f32 %v3586_v1, %v3664_v56 }
 0x96a   :  { %v3747_v15 = vpop.f32.mrf.mxu0 }
 0x96b   :  { %v3761_v25 = vmax.f32 %v3759_v35, 0.0  ;;  %v3758_v55 = vsub.f32 %v3747_v15, %v3756_v51  ;;  %v5134_v35 = vld [vmem:[%s5049_s13] ss:$0 sm:$0xff] }
 0x96d   :  { %v3765_v52 = vadd.f32 1e-05, %v3761_v25  ;;  %v3760_v43 = vmax.f32 %v3758_v55, 0.0 }
 0x96f   :  { %5995 = vrsqrt.f32 %v3765_v52  ;;  %v3764_v49 = vadd.f32 1e-05, %v3760_v43 }
 0x971   :  { %5997 = vrsqrt.f32 %v3764_v49 }
 0x972   :  { %5999 = vrcp.f32 %v3586_v1 }
 0x973   :  { %6001 = vrcp.f32 %v3587_v11 }
 0x97c   :  { %v5996_v32 = vpop.eup %5995 }
 0x97d   :  { %v3769_v45 = vmul.f32 %v5996_v32, %v3763_v20 }
 0x97e   :  { %v5998_v51 = vpop.eup %5997 }
 0x97f   :  { %v3768_v15 = vmul.f32 %v5998_v51, %v3762_v42  ;;  %v3777_v25 = vmul.f32 %v5133_v8, %v3769_v45  ;;  %v6078_v51 = vld [vmem:[%s7908_s23 + $0x50] sm:$0xff] }
 0x981   :  { %v3776_v55 = vmul.f32 %v5133_v8, %v3768_v15  ;;  %v3785_v52 = vadd.f32 %v5134_v35, %v3777_v25  ;;  %v6000_v8 = vpop.eup %5999  ;;  %v6080_v15 = vld [vmem:[%s7908_s23 + $0x60] sm:$0xff]  ;;  %v6081_v25 = vld [vmem:[%s7908_s23 + $0x68] sm:$0xff] }
 0x983   :  { %v3784_v43 = vadd.f32 %v5134_v35, %v3776_v55  ;;  %v3787_v37 = vmax.f32 %v3785_v52, 0.0  ;;  %v6079_v35 = vld [vmem:[%s7908_s23 + $0x58] sm:$0xff]  ;;  %v6082_v55 = vld [vmem:[%s7908_s23 + $0x70] sm:$0xff] }
 0x984   :  { %v6083_v52 = vld [vmem:[%s7908_s23 + $0x78] sm:$0xff] }
 0x985   :  { %v3786_v49 = vmax.f32 %v3784_v43, 0.0  ;;  %v8857_v43 = vmov 0.0  }
 0x987   :  { %5717 = vmatprep.mubr.msk.f32.mxu0 %vm2549_vm2, %v3786_v49  ;;  %v4322_v49 = vld [vmem:[%s5033_s21 + $0x18] sm:$0xff] }
 0x988   :  { %5718 = vmatmul.mubr.msk.f32.vlgmr.msra.gmra.mxu0 %vm2549_vm2, %v3787_v37 }
 0x989   :  { %5721 = vmatpush3.msra.mxu0 %v8085_v47  ;;  %v6002_v47 = vpop.eup %6001 }
 0x98a   :  { %5722 = vmatprep.subr.mxu0 %v8087_v0 }
 0x98b   :  { %5723 = vmatpush3.msra.mxu0 %v8087_v0 }
 0x98c   :  { %5755 = vmatprep.subr.mxu0 %v8160_v4 }
 0xa48   :  { %v5719_v56 = vpop.f32.mrf.mxu0 }
 0xa49   :  { %v3875_v20 = vadd.f32 %v5719_v56, %v5135_v5  ;;  %v4320_v56 = vld [vmem:[%s5033_s21 + $0x8] sm:$0xff] }
 0xa4a   :  { %v3869_v32 = vpop.f32.mrf.mxu0 }
 0xa4b   :  { %v3870_v37 = vadd.f32 %v5135_v5, %v3869_v32  ;;  %v3881_v45 = vmul.f32 %v6002_v47, %v3875_v20  ;;  %v4321_v5 = vld [vmem:[%s5033_s21 + $0x10] sm:$0xff]  ;;  %v4319_v20 = vld [vmem:[%s5033_s21] sm:$0xff] }
 0xa4d   :  { %v3879_v42 = vmul.f32 %v6000_v8, %v3870_v37 }
 0xa4f   :  { %5724 = vmatprep.mubr.msk.f32.mxu0 %vm2549_vm2, %v3879_v42 }
 0xa50   :  { %5725 = vmatmul.mubr.msk.f32.vlgmr.msra.gmra.mxu0 %vm2549_vm2, %v3881_v45 }
 0xa51   :  { %5756 = vmatpush3.msra.mxu0 %v8160_v4 }
 0xa52   :  { %5757 = vmatprep.subr.mxu0 %v8163_v21 }
 0xa53   :  { %5758 = vmatpush3.msra.mxu0 %v8163_v21  ;;  %v6069_v21 = vld [vmem:[%s7908_s23 + $0x8] sm:$0xff] }
 0xa54   :  { %5759 = vmatprep.subr.mxu0 %v8168_v36 }
 0xa55   :  { %5760 = vmatpush3.msra.mxu0 %v8168_v36  ;;  %v6070_v36 = vld [vmem:[%s7908_s23 + $0x10] sm:$0xff] }
 0xa56   :  { %5761 = vmatprep.subr.mxu0 %v8175_v44 }
 0xa57   :  { %5762 = vmatpush3.msra.mxu0 %v8175_v44  ;;  %v6071_v44 = vld [vmem:[%s7908_s23 + $0x18] sm:$0xff] }
 0xa58   :  { %5763 = vmatprep.subr.mxu0 %v8265_v50 }
 0xa59   :  { %5764 = vmatpush3.msra.mxu0 %v8265_v50  ;;  %v6073_v50 = vld [vmem:[%s7908_s23 + $0x28] sm:$0xff] }
 0xa5a   :  { %5765 = vmatprep.subr.mxu0 %v8270_v39 }
 0xa5b   :  { %5766 = vmatpush3.msra.mxu0 %v8270_v39  ;;  %v6074_v39 = vld [vmem:[%s7908_s23 + $0x30] sm:$0xff] }
 0xa5c   :  { %5767 = vmatprep.subr.mxu0 %v8274_v40 }
 0xa5d   :  { %5768 = vmatpush3.msra.mxu0 %v8274_v40  ;;  %v6075_v40 = vld [vmem:[%s7908_s23 + $0x38] sm:$0xff] }
 0xa5e   :  { %5769 = vmatprep.subr.mxu0 %v8278_v46 }
 0xa5f   :  { %5770 = vmatpush3.msra.mxu0 %v8278_v46  ;;  %v6076_v46 = vld [vmem:[%s7908_s23 + $0x40] sm:$0xff] }
 0xb10   :  { %v5726_v1 = vpop.f32.mrf.mxu0 }
 0xb11   :  { %v8340_v11 = vmul.f32 %v5726_v1, %v8284_v61  ;;  %v6077_v61 = vld [vmem:[%s7908_s23 + $0x48] sm:$0xff] }
 0xb12   :  { %v3954_v0 = vpop.f32.mrf.mxu0 }
 0xb13   :  { %v8343_v4 = vmul.f32 %v3954_v0, %v8286_v14  ;;  %5727 = vmatprep.subr.mxu1 %v8340_v11  ;;  %v6072_v14 = vld [vmem:[%s7908_s23 + $0x20] sm:$0xff]  ;;  %s6111_s23 = smov 24  }
 0xb14   :  { %5728 = vmatpush3.msra.mxu1 %v8340_v11  ;;  %s8561_s24 = sld [smem:[%s8655_s0 + %s6111_s23]]  }
 0xb15   :  { %5729 = vmatprep.subr.mxu1 %v8343_v4 }
 0xb16   :  { %5730 = vmatpush3.msra.mxu1 %v8343_v4 }
 0xb17   :  { %5732 = vmatmul.mubr.msk.f32.vlgmr.msra.gmra.mxu1 %vm2549_vm2, %v6069_v21  ;;  %4399 = vmatprep.subr.mxu1 %v4322_v49 }
 0xb18   :  { %5734 = vmatprep.mubr.msk.f32.mxu1 %vm2549_vm2, %v6070_v36  ;;  %4400 = vmatpush1.msra.mxu1 %v4321_v5 }
 0xb19   :  { %4401 = vmatprep.subr.mxu1 %v4320_v56 }
 0xb1a   :  { %4402 = vmatpush1.msra.mxu1 %v4319_v20 }
 0xb1b   :  { %5735 = vmatmul.mubr.msk.f32.gmra.mxu1 %vm2549_vm2, %v6071_v44  ;;  %5814 = vmatprep.subr.mxu1 %v8857_v43 }
 0xb1c   :  { %5737 = vmatprep.mubr.msk.f32.mxu1 %vm2549_vm2, %v6072_v14 }
 0xb1f   :  { %5738 = vmatmul.mubr.msk.f32.gmra.mxu1 %vm2549_vm2, %v6073_v50 }
 0xb20   :  { %5740 = vmatprep.mubr.msk.f32.mxu1 %vm2549_vm2, %v6074_v39 }
 0xb23   :  { %5741 = vmatmul.mubr.msk.f32.gmra.mxu1 %vm2549_vm2, %v6075_v40 }
 0xb24   :  { %5743 = vmatprep.mubr.msk.f32.mxu1 %vm2549_vm2, %v6076_v46 }
 0xb27   :  { %5744 = vmatmul.mubr.msk.f32.gmra.mxu1 %vm2549_vm2, %v6077_v61 }
 0xb28   :  { %5746 = vmatprep.mubr.msk.f32.mxu1 %vm2549_vm2, %v6078_v51 }
 0xb2b   :  { %5747 = vmatmul.mubr.msk.f32.gmra.mxu1 %vm2549_vm2, %v6079_v35 }
 0xb2c   :  { %5749 = vmatprep.mubr.msk.f32.mxu1 %vm2549_vm2, %v6080_v15 }
 0xb2f   :  { %5750 = vmatmul.mubr.msk.f32.gmra.mxu1 %vm2549_vm2, %v6081_v25 }
 0xb30   :  { %5752 = vmatprep.mubr.msk.f32.mxu1 %vm2549_vm2, %v6082_v55 }
 0xb33   :  { %5753 = vmatmul.mubr.msk.f32.gmra.mxu1 %vm2549_vm2, %v6083_v52 }
 0xb34   :  { %4435 = vmatprep.mubr.f32.mxu1 %v8857_v43 }
 0xbd7   :  { %v5733_v32 = vpop.f32.mrf.mxu1 }
 0xbd8   :  { %v4111_v47 = vmul.f32 %v5733_v32, %v8249_v19 }
 0xbd9   :  { %v4031_v37 = vpop.f32.mrf.mxu1 }
 0xbda   :  { %v4110_v8 = vmul.f32 %v4031_v37, %v8254_v53 }
 0xbdb   :  { %v5736_v42 = vpop.f32.mrf.mxu1 }
 0xbdc   :  { %5771 = vmatprep.mubr.msk.f32.mxu0 %vm3490_vm5, %v4110_v8  ;;  %v4113_v45 = vmul.f32 %v5736_v42, %v8240_v2 }
 0xbdd   :  { %v4041_v1 = vpop.f32.mrf.mxu1  ;;  %5772 = vmatmul.mubr.msk.f32.vlgmr.msra.gmra.mxu0 %vm3490_vm5, %v4111_v47 }
 0xbde   :  { %v4112_v0 = vmul.f32 %v4041_v1, %v8244_v41 }
 0xbdf   :  { %v5739_v21 = vpop.f32.mrf.mxu1 }
 0xbe0   :  { %5774 = vmatprep.mubr.msk.f32.mxu0 %vm3490_vm5, %v4112_v0  ;;  %v4115_v36 = vmul.f32 %v5739_v21, %v8232_v10 }
 0xbe1   :  { %5775 = vmatmul.mubr.msk.f32.gmra.mxu0 %vm3490_vm5, %v4113_v45  ;;  %v4051_v53 = vpop.f32.mrf.mxu1  ;;  %v8858_v45 = vld [vmem:[#allocation18_spill] sm:$0xff] }
 0xbe2   :  { %v4114_v19 = vmul.f32 %v4051_v53, %v8236_v12  ;;  %v2238_v1 = vsub.s32 2, %v8858_v45 }
 0xbe3   :  { %v5742_v44 = vpop.f32.mrf.mxu1 }
 0xbe4   :  { %5777 = vmatprep.mubr.msk.f32.mxu0 %vm3490_vm5, %v4114_v19  ;;  %v4117_v2 = vmul.f32 %v5742_v44, %v8224_v6  ;;  %v8450_v0 = vrot.slane %v8096_v26, %v2238_v1 }
 0xbe5   :  { %5778 = vmatmul.mubr.msk.f32.gmra.mxu0 %vm3490_vm5, %v4115_v36  ;;  %v4061_v14 = vpop.f32.mrf.mxu1 }
 0xbe6   :  { %v4116_v41 = vmul.f32 %v4061_v14, %v8228_v18  ;;  %v2471_v36 = vadd.f32 %v7961_v57, %v8450_v0 }
 0xbe7   :  { %v5745_v50 = vpop.f32.mrf.mxu1 }
 0xbe8   :  { %5780 = vmatprep.mubr.msk.f32.mxu0 %vm3490_vm5, %v4116_v41  ;;  %v4119_v10 = vmul.f32 %v5745_v50, %v8216_v23  ;;  %v2476_v41 = vadd.f32 %v7971_v22, %v8450_v0 }
 0xbe9   :  { %5781 = vmatmul.mubr.msk.f32.gmra.mxu0 %vm3490_vm5, %v4117_v2  ;;  %v4071_v39 = vpop.f32.mrf.mxu1  ;;  %v8859_v2 = vld [vmem:[#allocation20_spill] sm:$0xff] }
 0xbea   :  { %v4118_v12 = vmul.f32 %v4071_v39, %v8220_v58  ;;  %v8462_v14 = vrot.slane %v8096_v26, %v8859_v2  ;;  %v2541_v2 = vadd.f32 %v8059_v62, %v8450_v0 }
 0xbeb   :  { %v5748_v40 = vpop.f32.mrf.mxu1 }
 0xbec   :  { %5783 = vmatprep.mubr.msk.f32.mxu0 %vm3490_vm5, %v4118_v12  ;;  %v4121_v6 = vmul.f32 %v5748_v40, %v8208_v30  ;;  %v2481_v40 = vadd.f32 %v7984_v38, %v8450_v0  ;;  %v2330_v26 = vadd.f32 %v7991_v16, %v8462_v14  ;;  %v2491_v16 = vadd.f32 %v7997_v63, %v8450_v0 }
 0xbed   :  { %5784 = vmatmul.mubr.msk.f32.gmra.mxu0 %vm3490_vm5, %v4119_v10  ;;  %v4081_v46 = vpop.f32.mrf.mxu1  ;;  %v2324_v10 = vadd.f32 %v7981_v27, %v8462_v14  ;;  %v2486_v27 = vadd.f32 %v7993_v29, %v8450_v0  ;;  %v2384_v62 = vadd.f32 %v8045_v60, %v8462_v14 }
 0xbee   :  { %v4120_v18 = vmul.f32 %v4081_v46, %v8212_v48 }
 0xbef   :  { %v5751_v61 = vpop.f32.mrf.mxu1 }
 0xbf0   :  { %5786 = vmatprep.mubr.msk.f32.mxu0 %vm3490_vm5, %v4120_v18  ;;  %v4123_v23 = vmul.f32 %v5751_v61, %v8200_v59 }
 0xbf1   :  { %5787 = vmatmul.mubr.msk.f32.gmra.mxu0 %vm3490_vm5, %v4121_v6  ;;  %v4091_v51 = vpop.f32.mrf.mxu1 }
 0xbf2   :  { %v4122_v58 = vmul.f32 %v4091_v51, %v8204_v28 }
 0xbf3   :  { %v5754_v35 = vpop.f32.mrf.mxu1 }
 0xbf4   :  { %5789 = vmatprep.mubr.msk.f32.mxu0 %vm3490_vm5, %v4122_v58  ;;  %v4125_v30 = vmul.f32 %v5754_v35, %v8193_v7 }
 0xbf5   :  { %5790 = vmatmul.mubr.msk.f32.gmra.mxu0 %vm3490_vm5, %v4123_v23  ;;  %v4101_v15 = vpop.f32.mrf.mxu1  ;;  %v2336_v23 = vadd.f32 %v7999_v9, %v8462_v14 }
 0xbf6   :  { %v4124_v48 = vmul.f32 %v4101_v15, %v8196_v54 }
 0xbf8   :  { %5792 = vmatprep.mubr.msk.f32.mxu0 %vm3490_vm5, %v4124_v48 }
 0xbf9   :  { %5793 = vmatmul.mubr.msk.f32.gmra.mxu0 %vm3490_vm5, %v4125_v30 }
 0xbfa   :  { %4628 = vmatprep.mubr.f32.mxu0 %v8857_v43 }
 0xc9d   :  { %v5773_v59 = vpop.f32.mrf.mxu0 }
 0xc9f   :  { %v4240_v25 = vpop.f32.mrf.mxu0 }
 0xca0   :  { %5172 = vmatmul.mubr.msk.f32.vlgmr.msra.gmra.mxu1 %vm2549_vm2, %v4240_v25 }
 0xca1   :  { %4441 = vmatprep.mubr.f32.mxu1 %v8857_v43  ;;  %v5776_v28 = vpop.f32.mrf.mxu0 }
 0xca3   :  { %v4250_v7 = vpop.f32.mrf.mxu0 }
 0xca4   :  { %5173 = vmatmul.mubr.msk.f32.gmra.mxu1 %vm2549_vm2, %v5773_v59 }
 0xca5   :  { %4447 = vmatprep.mubr.f32.mxu1 %v8857_v43  ;;  %v5779_v54 = vpop.f32.mrf.mxu0 }
 0xca7   :  { %v4260_v55 = vpop.f32.mrf.mxu0 }
 0xca8   :  { %5174 = vmatmul.mubr.msk.f32.gmra.mxu1 %vm2549_vm2, %v4250_v7 }
 0xca9   :  { %4453 = vmatprep.mubr.f32.mxu1 %v8857_v43  ;;  %v5782_v52 = vpop.f32.mrf.mxu0 }
 0xcab   :  { %v4270_v49 = vpop.f32.mrf.mxu0 }
 0xcac   :  { %5175 = vmatmul.mubr.msk.f32.gmra.mxu1 %vm2549_vm2, %v5776_v28 }
 0xcad   :  { %4459 = vmatprep.mubr.f32.mxu1 %v8857_v43  ;;  %v5785_v5 = vpop.f32.mrf.mxu0 }
 0xcaf   :  { %v4280_v56 = vpop.f32.mrf.mxu0 }
 0xcb0   :  { %5176 = vmatmul.mubr.msk.f32.gmra.mxu1 %vm2549_vm2, %v4260_v55 }
 0xcb1   :  { %4465 = vmatprep.mubr.f32.mxu1 %v8857_v43  ;;  %v5788_v20 = vpop.f32.mrf.mxu0 }
 0xcb3   :  { %v4290_v32 = vpop.f32.mrf.mxu0 }
 0xcb4   :  { %5177 = vmatmul.mubr.msk.f32.gmra.mxu1 %vm2549_vm2, %v5779_v54 }
 0xcb5   :  { %4471 = vmatprep.mubr.f32.mxu1 %v8857_v43  ;;  %v5791_v37 = vpop.f32.mrf.mxu0 }
 0xcb7   :  { %v4300_v8 = vpop.f32.mrf.mxu0 }
 0xcb8   :  { %5178 = vmatmul.mubr.msk.f32.gmra.mxu1 %vm2549_vm2, %v4270_v49 }
 0xcb9   :  { %4477 = vmatprep.mubr.f32.mxu1 %v8857_v43  ;;  %v5794_v47 = vpop.f32.mrf.mxu0 }
 0xcbb   :  { %v4310_v42 = vpop.f32.mrf.mxu0 }
 0xcbc   :  { %5179 = vmatmul.mubr.msk.f32.gmra.mxu1 %vm2549_vm2, %v5782_v52 }
 0xcbd   :  { %4483 = vmatprep.mubr.f32.mxu1 %v8857_v43 }
 0xcc0   :  { %5180 = vmatmul.mubr.msk.f32.gmra.mxu1 %vm2549_vm2, %v4280_v56 }
 0xcc1   :  { %4489 = vmatprep.mubr.f32.mxu1 %v8857_v43 }
 0xcc4   :  { %5181 = vmatmul.mubr.msk.f32.gmra.mxu1 %vm2549_vm2, %v5785_v5 }
 0xcc5   :  { %4495 = vmatprep.mubr.f32.mxu1 %v8857_v43 }
 0xcc8   :  { %5182 = vmatmul.mubr.msk.f32.gmra.mxu1 %vm2549_vm2, %v4290_v32 }
 0xcc9   :  { %4501 = vmatprep.mubr.f32.mxu1 %v8857_v43 }
 0xccc   :  { %5183 = vmatmul.mubr.msk.f32.gmra.mxu1 %vm2549_vm2, %v5788_v20 }
 0xccd   :  { %4507 = vmatprep.mubr.f32.mxu1 %v8857_v43 }
 0xcd0   :  { %5184 = vmatmul.mubr.msk.f32.gmra.mxu1 %vm2549_vm2, %v4300_v8 }
 0xcd1   :  { %4513 = vmatprep.mubr.f32.mxu1 %v8857_v43 }
 0xcd4   :  { %5185 = vmatmul.mubr.msk.f32.gmra.mxu1 %vm2549_vm2, %v5791_v37 }
 0xcd5   :  { %4519 = vmatprep.mubr.f32.mxu1 %v8857_v43 }
 0xcd8   :  { %5186 = vmatmul.mubr.msk.f32.gmra.mxu1 %vm2549_vm2, %v4310_v42 }
 0xcd9   :  { %4525 = vmatprep.mubr.f32.mxu1 %v8857_v43 }
 0xcdc   :  { %5187 = vmatmul.mubr.msk.f32.gmra.mxu1 %vm2549_vm2, %v5794_v47  ;;  %v5273_v47 = vadd.f32 %v8120_v24, %v8118_v13  ;;  %v2390_v24 = vadd.f32 %v8051_v17, %v8462_v14 }
 0xcdd   :  { %5818 = vmatprep.mubr.msk.f32.mxu1 %vm6114_vm10, %v8857_v43 }
 0xcde   :  { %v2546_v1 = vadd.f32 %v5273_v47, %v8450_v0 }
 0xd60   :  { %v8452_v21 = vpop.f32.mrf.mxu1 }
 0xd62   :  { %v4439_v53 = vpop.f32.mrf.mxu1 }
 0xd63   :  { %v8456_v19 = vmul.f32 %v4439_v53, %v2471_v36  ;;  %v2402_v36 = vadd.f32 %v8063_v34, %v8462_v14  ;;  %v2531_v34 = vadd.f32 %v8047_v33, %v8450_v0 }
 0xd64   :  { %v8458_v44 = vpop.f32.mrf.mxu1 }
 0xd66   :  { %v4445_v50 = vpop.f32.mrf.mxu1 }
 0xd67   :  { %v8468_v39 = vmul.f32 %v4445_v50, %v2476_v41  ;;  %v2396_v50 = vadd.f32 %v8057_v31, %v8462_v14 }
 0xd68   :  { %v4449_v12 = vpop.f32.mrf.mxu1 }
 0xd69   :  { %v8470_v57 = vmul.f32 %v4449_v12, %v2324_v10  ;;  %v2536_v12 = vadd.f32 %v8053_v3, %v8450_v0 }
 0xd6a   :  { %v4451_v6 = vpop.f32.mrf.mxu1 }
 0xd6b   :  { %v8476_v46 = vmul.f32 %v4451_v6, %v2481_v40 }
 0xd6c   :  { %v4455_v18 = vpop.f32.mrf.mxu1 }
 0xd6d   :  { %v8478_v22 = vmul.f32 %v4455_v18, %v2330_v26  ;;  %v8860_v26 = vld [vmem:[#allocation23_spill] sm:$0xff] }
 0xd6e   :  { %v4457_v61 = vpop.f32.mrf.mxu1  ;;  %v2526_v3 = vadd.f32 %v8860_v26, %v8450_v0  ;;  %v4671_v26 = vld [vmem:[%s8590_s28 + $0xf0] sm:$0xff] }
 0xd6f   :  { %v8484_v51 = vmul.f32 %v4457_v61, %v2486_v27  ;;  %v8861_v27 = vld [vmem:[#allocation22_spill] sm:$0xff] }
 0xd70   :  { %v4461_v58 = vpop.f32.mrf.mxu1  ;;  %v2378_v17 = vadd.f32 %v8861_v27, %v8462_v14  ;;  %v4654_v27 = vld [vmem:[%s8590_s28 + $0x68] sm:$0xff] }
 0xd71   :  { %v8486_v38 = vmul.f32 %v4461_v58, %v2336_v23  ;;  %v8862_v23 = vld [vmem:[#allocation21_spill] sm:$0xff] }
 0xd72   :  { %v4463_v35 = vpop.f32.mrf.mxu1  ;;  %v2521_v33 = vadd.f32 %v8862_v23, %v8450_v0  ;;  %v4668_v23 = vld [vmem:[%s8590_s28 + $0xd8] sm:$0xff] }
 0xd73   :  { %v8490_v30 = vmul.f32 %v4463_v35, %v2491_v16  ;;  %v8863_v16 = vld [vmem:[#allocation17_spill] sm:$0xff] }
 0xd74   :  { %v8492_v15 = vpop.f32.mrf.mxu1  ;;  %v2372_v60 = vadd.f32 %v8863_v16, %v8462_v14  ;;  %v4666_v16 = vld [vmem:[%s8590_s28 + $0xc8] sm:$0xff] }
 0xd76   :  { %v8494_v48 = vpop.f32.mrf.mxu1 }
 0xd78   :  { %v8496_v29 = vpop.f32.mrf.mxu1 }
 0xd7a   :  { %v8498_v59 = vpop.f32.mrf.mxu1 }
 0xd7c   :  { %v8500_v9 = vpop.f32.mrf.mxu1 }
 0xd7e   :  { %v8502_v25 = vpop.f32.mrf.mxu1 }
 0xd80   :  { %v8504_v28 = vpop.f32.mrf.mxu1 }
 0xd82   :  { %v4487_v7 = vpop.f32.mrf.mxu1 }
 0xd84   :  { %v4491_v54 = vpop.f32.mrf.mxu1 }
 0xd86   :  { %v4493_v63 = vpop.f32.mrf.mxu1 }
 0xd88   :  { %v4497_v55 = vpop.f32.mrf.mxu1 }
 0xd8a   :  { %v4499_v52 = vpop.f32.mrf.mxu1 }
 0xd8c   :  { %v4503_v49 = vpop.f32.mrf.mxu1 }
 0xd8d   :  { %v4554_v35 = vmul.f32 %v4503_v49, %v2378_v17  ;;  %v4669_v17 = vld [vmem:[%s8590_s28 + $0xe0] sm:$0xff] }
 0xd8e   :  { %v4505_v5 = vpop.f32.mrf.mxu1 }
 0xd8f   :  { %v4555_v58 = vmul.f32 %v4505_v5, %v2526_v3  ;;  %v4655_v3 = vld [vmem:[%s8590_s28 + $0x70] sm:$0xff] }
 0xd90   :  { %v4509_v56 = vpop.f32.mrf.mxu1 }
 0xd91   :  { %v4556_v61 = vmul.f32 %v4509_v56, %v2384_v62  ;;  %v4552_v56 = vmul.f32 %v4497_v55, %v2372_v60  ;;  %v4650_v60 = vld [vmem:[%s8590_s28 + $0x48] sm:$0xff] }
 0xd92   :  { %v4511_v20 = vpop.f32.mrf.mxu1 }
 0xd93   :  { %v4557_v18 = vmul.f32 %v4511_v20, %v2531_v34  ;;  %v4553_v20 = vmul.f32 %v4499_v52, %v2521_v33  ;;  %v4667_v33 = vld [vmem:[%s8590_s28 + $0xd0] sm:$0xff] }
 0xd94   :  { %v4515_v32 = vpop.f32.mrf.mxu1 }
 0xd95   :  { %v4558_v31 = vmul.f32 %v4515_v32, %v2390_v24  ;;  %v8864_v32 = vld [vmem:[#allocation16_spill] sm:$0xff] }
 0xd96   :  { %v4517_v37 = vpop.f32.mrf.mxu1 }
 0xd97   :  { %v4559_v6 = vmul.f32 %v4517_v37, %v2536_v12  ;;  %v2516_v37 = vadd.f32 %v8864_v32, %v8450_v0  ;;  %v4649_v32 = vld [vmem:[%s8590_s28 + $0x40] sm:$0xff] }
 0xd98   :  { %v4521_v8 = vpop.f32.mrf.mxu1 }
 0xd99   :  { %v4560_v40 = vmul.f32 %v4521_v8, %v2396_v50  ;;  %v8865_v8 = vld [vmem:[#allocation15_spill] sm:$0xff]  ;;  %v4551_v5 = vmul.f32 %v4493_v63, %v2516_v37  ;;  %v4664_v37 = vld [vmem:[%s8590_s28 + $0xb8] sm:$0xff] }
 0xd9a   :  { %v4523_v42 = vpop.f32.mrf.mxu1  ;;  %v2366_v47 = vadd.f32 %v8865_v8, %v8462_v14  ;;  %v4663_v8 = vld [vmem:[%s8590_s28 + $0xb0] sm:$0xff] }
 0xd9b   :  { %v4561_v13 = vmul.f32 %v4523_v42, %v2541_v2  ;;  %v8866_v42 = vld [vmem:[#allocation14_spill] sm:$0xff] }
 0xd9c   :  { %v4527_v45 = vpop.f32.mrf.mxu1  ;;  %v4550_v49 = vmul.f32 %v4491_v54, %v2366_v47  ;;  %v8871_v54 = vld [vmem:[#allocation9_spill] sm:$0xff] }
 0xd9d   :  { %v4562_v10 = vmul.f32 %v4527_v45, %v2402_v36  ;;  %v2511_v45 = vadd.f32 %v8866_v42, %v8450_v0  ;;  %v4647_v47 = vld [vmem:[%s8590_s28 + $0x30] sm:$0xff]  ;;  %v4646_v42 = vld [vmem:[%s8590_s28 + $0x28] sm:$0xff] }
 0xd9e   :  { %v4529_v53 = vpop.f32.mrf.mxu1 }
 0xd9f   :  { %v4563_v41 = vmul.f32 %v4529_v53, %v2546_v1  ;;  %v8867_v1 = vld [vmem:[#allocation13_spill] sm:$0xff]  ;;  %v8868_v53 = vld [vmem:[#allocation12_spill] sm:$0xff]  ;;  %v4549_v52 = vmul.f32 %v4487_v7, %v2511_v45  ;;  %v8872_v7 = vld [vmem:[#allocation7_spill] sm:$0xff] }
 0xda0   :  { %v2360_v36 = vadd.f32 %v8867_v1, %v8462_v14  ;;  %v2506_v2 = vadd.f32 %v8868_v53, %v8450_v0  ;;  %v4661_v45 = vld [vmem:[%s8590_s28 + $0xa0] sm:$0xff]  ;;  %v4660_v1 = vld [vmem:[%s8590_s28 + $0x98] sm:$0xff]  ;;  %v4643_v53 = vld [vmem:[%s8590_s28 + $0x10] sm:$0xff] }
 0xda1   :  { %4564 = vmatprep.subr.mxu0 %v4563_v41  ;;  %v8869_v41 = vld [vmem:[#allocation11_spill] sm:$0xff] }
 0xda2   :  { %4565 = vmatpush1.msra.mxu0 %v4562_v10  ;;  %v2354_v50 = vadd.f32 %v8869_v41, %v8462_v14  ;;  %v4548_v55 = vmul.f32 %v8504_v28, %v2360_v36  ;;  %v8870_v10 = vld [vmem:[#allocation10_spill] sm:$0xff]  ;;  %v4547_v12 = vmul.f32 %v8502_v25, %v2506_v2  ;;  %v8873_v28 = vld [vmem:[#allocation8_spill] sm:$0xff] }
 0xda3   :  { %4566 = vmatprep.subr.mxu0 %v4561_v13  ;;  %v2501_v63 = vadd.f32 %v8870_v10, %v8450_v0  ;;  %v2348_v13 = vadd.f32 %v8871_v54, %v8462_v14  ;;  %v4644_v36 = vld [vmem:[%s8590_s28 + $0x18] sm:$0xff]  ;;  %v4658_v2 = vld [vmem:[%s8590_s28 + $0x88] sm:$0xff]  ;;  %v4657_v41 = vld [vmem:[%s8590_s28 + $0x80] sm:$0xff] }
 0xda4   :  { %4567 = vmatpush1.msra.mxu0 %v4560_v40  ;;  %v4546_v24 = vmul.f32 %v8500_v9, %v2354_v50  ;;  %v2496_v40 = vadd.f32 %v8872_v7, %v8450_v0  ;;  %v8874_v0 = vld [vmem:[#allocation6_spill] sm:$0xff] }
 0xda5   :  { %4568 = vmatprep.subr.mxu0 %v4559_v6  ;;  %v4545_v34 = vmul.f32 %v8498_v59, %v2501_v63  ;;  %v2342_v6 = vadd.f32 %v8873_v28, %v8462_v14  ;;  %v4544_v62 = vmul.f32 %v8496_v29, %v2348_v13  ;;  %v4656_v9 = vld [vmem:[%s8590_s28 + $0x78] sm:$0xff]  ;;  %v4641_v50 = vld [vmem:[%s8590_s28] sm:$0xff] }
 0xda6   :  { %4569 = vmatpush1.msra.mxu0 %v4558_v31  ;;  %v4543_v25 = vmul.f32 %v8494_v48, %v2496_v40  ;;  %v8875_v48 = vld [vmem:[#allocation5_spill] sm:$0xff]  ;;  %v4853_v10 = vld [vmem:[%s5052_s2] sm:$0xff] }
 0xda7   :  { %4570 = vmatprep.subr.mxu0 %v4557_v18  ;;  %v4542_v31 = vmul.f32 %v8492_v15, %v2342_v6  ;;  %v2318_v15 = vadd.f32 %v8874_v0, %v8462_v14  ;;  %v2312_v29 = vadd.f32 %v8875_v48, %v8462_v14  ;;  %v4677_v14 = vld [vmem:[%s8561_s24 + $0x20] sm:$0xff]  ;;  %v4670_v18 = vld [vmem:[%s8590_s28 + $0xe8] sm:$0xff] }
 0xda8   :  { %4571 = vmatpush1.msra.mxu0 %v4556_v61  ;;  %v4653_v61 = vld [vmem:[%s8590_s28 + $0x60] sm:$0xff] }
 0xda9   :  { %4572 = vmatprep.subr.mxu0 %v4555_v58  ;;  %v4534_v59 = vmul.f32 %v8458_v44, %v2318_v15  ;;  %v4678_v44 = vld [vmem:[%s8561_s24 + $0x28] sm:$0xff]  ;;  %v4651_v58 = vld [vmem:[%s8590_s28 + $0x50] sm:$0xff] }
 0xdaa   :  { %4573 = vmatpush1.msra.mxu0 %v4554_v35  ;;  %v4665_v35 = vld [vmem:[%s8590_s28 + $0xc0] sm:$0xff] }
 0xdab   :  { %4574 = vmatprep.subr.mxu0 %v4553_v20  ;;  %v4648_v20 = vld [vmem:[%s8590_s28 + $0x38] sm:$0xff] }
 0xdac   :  { %4575 = vmatpush1.msra.mxu0 %v4552_v56  ;;  %v4662_v56 = vld [vmem:[%s8590_s28 + $0xa8] sm:$0xff] }
 0xdad   :  { %4576 = vmatprep.subr.mxu0 %v4551_v5  ;;  %v4645_v5 = vld [vmem:[%s8590_s28 + $0x20] sm:$0xff] }
 0xdae   :  { %4577 = vmatpush1.msra.mxu0 %v4550_v49  ;;  %v4659_v49 = vld [vmem:[%s8590_s28 + $0x90] sm:$0xff] }
 0xdaf   :  { %4578 = vmatprep.subr.mxu0 %v4549_v52  ;;  %v4642_v52 = vld [vmem:[%s8590_s28 + $0x8] sm:$0xff] }
 0xdb0   :  { %4579 = vmatpush1.msra.mxu0 %v4548_v55  ;;  %v4854_v55 = vld [vmem:[%s5052_s2 + $0x8] sm:$0xff] }
 0xdb1   :  { %4580 = vmatprep.subr.mxu0 %v4547_v12  ;;  %5815 = vmatpush3.msra.mxu1 %v4854_v55 }
 0xdb2   :  { %4581 = vmatpush1.msra.mxu0 %v4546_v24  ;;  %5816 = vmatprep.subr.mxu1 %v8857_v43 }
 0xdb3   :  { %4582 = vmatprep.subr.mxu0 %v4545_v34  ;;  %5817 = vmatpush3.msra.mxu1 %v4853_v10 }
 0xdb4   :  { %4583 = vmatpush1.msra.mxu0 %v4544_v62  ;;  %5821 = vmatprep.subr.mxu1 %v8857_v43 }
 0xdb5   :  { %4584 = vmatprep.subr.mxu0 %v4543_v25 }
 0xdb6   :  { %4585 = vmatpush1.msra.mxu0 %v4542_v31 }
 0xdb7   :  { %4586 = vmatprep.subr.mxu0 %v8490_v30  ;;  %v4672_v30 = vld [vmem:[%s8590_s28 + $0xf8] sm:$0xff] }
 0xdb8   :  { %4587 = vmatpush1.msra.mxu0 %v8486_v38  ;;  %v4680_v38 = vld [vmem:[%s8561_s24 + $0x38] sm:$0xff] }
 0xdb9   :  { %4588 = vmatprep.subr.mxu0 %v8484_v51  ;;  %v4532_v51 = vmul.f32 %v8452_v21, %v2312_v29  ;;  %v8877_v21 = vld [vmem:[#allocation25_spill] sm:$0xff] }
 0xdba   :  { %4589 = vmatpush1.msra.mxu0 %v8478_v22  ;;  %v4679_v22 = vld [vmem:[%s8561_s24 + $0x30] sm:$0xff] }
 0xdbb   :  { %4590 = vmatprep.subr.mxu0 %v8476_v46  ;;  %v8876_v46 = vld [vmem:[#allocation24_spill] sm:$0xff] }
 0xdbc   :  { %4591 = vmatpush1.msra.mxu0 %v8470_v57  ;;  %v4674_v57 = vld [vmem:[%s8561_s24 + $0x8] sm:$0xff] }
 0xdbd   :  { %4592 = vmatprep.subr.mxu0 %v8468_v39  ;;  %v4675_v39 = vld [vmem:[%s8561_s24 + $0x10] sm:$0xff] }
 0xdbe   :  { %4593 = vmatpush1.msra.mxu0 %v4534_v59 }
 0xdbf   :  { %4594 = vmatprep.subr.mxu0 %v8456_v19  ;;  %v4676_v19 = vld [vmem:[%s8561_s24 + $0x18] sm:$0xff] }
 0xdc0   :  { %4595 = vmatpush1.msra.mxu0 %v4532_v51 }
 0xdc1   :  { %4629 = vmatmul.mubr.f32.vlgmr.msra.gmra.mxu0 %v8876_v46  ;;  %5795 = vmatprep.subr.mxu0 %v4680_v38 }
 0xdc2   :  { %5796 = vmatpush3.msra.mxu0 %v4680_v38  ;;  %4634 = vmatprep.mubr.f32.mxu0 %v8857_v43 }
 0xdc3   :  { %5797 = vmatprep.subr.mxu0 %v4679_v22 }
 0xdc4   :  { %5798 = vmatpush3.msra.mxu0 %v4679_v22 }
 0xdc5   :  { %4635 = vmatmul.mubr.f32.gmra.mxu0 %v8877_v21  ;;  %5799 = vmatprep.subr.mxu0 %v4678_v44 }
 0xdc6   :  { %5800 = vmatpush3.msra.mxu0 %v4678_v44  ;;  %5811 = vmatprep.mubr.msk.f32.mxu0 %vm3490_vm5, %v8343_v4  ;;  %v4673_v4 = vld [vmem:[%s8561_s24] sm:$0xff] }
 0xdc7   :  { %5801 = vmatprep.subr.mxu0 %v4677_v14 }
 0xdc8   :  { %5802 = vmatpush3.msra.mxu0 %v4677_v14 }
 0xdc9   :  { %5803 = vmatprep.subr.mxu0 %v4676_v19 }
 0xdca   :  { %5804 = vmatpush3.msra.mxu0 %v4676_v19 }
 0xdcb   :  { %5805 = vmatprep.subr.mxu0 %v4675_v39 }
 0xdcc   :  { %5806 = vmatpush3.msra.mxu0 %v4675_v39 }
 0xdcd   :  { %5807 = vmatprep.subr.mxu0 %v4674_v57 }
 0xdce   :  { %5808 = vmatpush3.msra.mxu0 %v4674_v57 }
 0xdcf   :  { %5809 = vmatprep.subr.mxu0 %v4673_v4 }
 0xdd0   :  { %5810 = vmatpush3.msra.mxu0 %v4673_v4 }
 0xdd1   :  { %5812 = vmatmul.mubr.msk.f32.vlgmr.msra.gmra.mxu0 %vm3490_vm5, %v8340_v11  ;;  %5458 = vmatprep.subr.mxu0 %v4672_v30  ;;  %v4652_v11 = vld [vmem:[%s8590_s28 + $0x58] sm:$0xff]  ;;  %v4937_v30 = vld [vmem:[%s5054_s6 + $0x8] sm:$0xff] }
 0xdd2   :  { %5459 = vmatpush3.msra.mxu0 %v4656_v9  ;;  %v4936_v9 = vld [vmem:[%s5054_s6] sm:$0xff] }
 0xdd3   :  { %5460 = vmatprep.subr.mxu0 %v4671_v26  ;;  %v72_v26 = vstv %s5055_s10 }
 0xdd4   :  { %5461 = vmatpush3.msra.mxu0 %v4655_v3  ;;  %73 = vst [vmem:[#allocation2] sm:$0x1] %v72_v26  ;;  %v5190_v3 = vld [vmem:[%s5053_s15] ss:$0 sm:$0xff] }
 0xdd5   :  { %5462 = vmatprep.subr.mxu0 %v4670_v18 }
 0xdd6   :  { %5463 = vmatpush3.msra.mxu0 %v4654_v27 }
 0xdd7   :  { %5464 = vmatprep.subr.mxu0 %v4669_v17 }
 0xdd8   :  { %5465 = vmatpush3.msra.mxu0 %v4653_v61 }
 0xdd9   :  { %5466 = vmatprep.subr.mxu0 %v4668_v23 }
 0xdda   :  { %5467 = vmatpush3.msra.mxu0 %v4652_v11 }
 0xddb   :  { %5468 = vmatprep.subr.mxu0 %v4667_v33 }
 0xddc   :  { %5469 = vmatpush3.msra.mxu0 %v4651_v58 }
 0xddd   :  { %5470 = vmatprep.subr.mxu0 %v4666_v16 }
 0xdde   :  { %5471 = vmatpush3.msra.mxu0 %v4650_v60 }
 0xddf   :  { %5472 = vmatprep.subr.mxu0 %v4665_v35 }
 0xde0   :  { %5473 = vmatpush3.msra.mxu0 %v4649_v32 }
 0xde1   :  { %5474 = vmatprep.subr.mxu0 %v4664_v37 }
 0xde2   :  { %5475 = vmatpush3.msra.mxu0 %v4648_v20 }
 0xde3   :  { %5476 = vmatprep.subr.mxu0 %v4663_v8 }
 0xde4   :  { %5477 = vmatpush3.msra.mxu0 %v4647_v47 }
 0xde5   :  { %5478 = vmatprep.subr.mxu0 %v4662_v56 }
 0xde6   :  { %5479 = vmatpush3.msra.mxu0 %v4646_v42 }
 0xde7   :  { %5480 = vmatprep.subr.mxu0 %v4661_v45 }
 0xde8   :  { %5481 = vmatpush3.msra.mxu0 %v4645_v5 }
 0xde9   :  { %5482 = vmatprep.subr.mxu0 %v4660_v1 }
 0xdea   :  { %5483 = vmatpush3.msra.mxu0 %v4644_v36 }
 0xdeb   :  { %5484 = vmatprep.subr.mxu0 %v4659_v49 }
 0xdec   :  { %5485 = vmatpush3.msra.mxu0 %v4643_v53 }
 0xded   :  { %5486 = vmatprep.subr.mxu0 %v4658_v2 }
 0xdee   :  { %5487 = vmatpush3.msra.mxu0 %v4642_v52 }
 0xdef   :  { %5488 = vmatprep.subr.mxu0 %v4657_v41 }
 0xdf0   :  { %5489 = vmatpush3.msra.mxu0 %v4641_v50 }
 0xe81   :  { %v4630_v63 = vpop.f32.mrf.mxu0 }
 0xe83   :  { %v4632_v12 = vpop.f32.mrf.mxu0 }
 0xe84   :  { %4826 = vmatprep.mubr.f32.mxu0 %v4632_v12 }
 0xe85   :  { %v4636_v54 = vpop.f32.mrf.mxu0  ;;  %4827 = vmatmul.mubr.f32.vlgmr.msra.gmra.mxu0 %v4630_v63 }
 0xe87   :  { %v4638_v13 = vpop.f32.mrf.mxu0 }
 0xe88   :  { %4831 = vmatprep.mubr.f32.mxu0 %v4638_v13 }
 0xe89   :  { %4832 = vmatmul.mubr.f32.gmra.mxu0 %v4636_v54 }
 0xe91   :  { %v5813_v24 = vpop.f32.mrf.mxu0 }
 0xe93   :  { %v4753_v7 = vpop.f32.mrf.mxu0 }
 0xf45   :  { %v5490_v40 = vpop.f32.mrf.mxu0 }
 0xf47   :  { %v5491_v34 = vpop.f32.mrf.mxu0 }
 0xf48   :  { %v5492_v28 = vadd.f32 %v5491_v34, %v5490_v40 }
 0xf49   :  { %v5493_v6 = vpop.f32.mrf.mxu0 }
 0xf4a   :  { %v4829_v62 = vadd.f32 %v5492_v28, %v4753_v7 }
 0xf4b   :  { %v5494_v25 = vpop.f32.mrf.mxu0 }
 0xf4c   :  { %v4837_v31 = vsel %vm2549_vm2, %v4829_v62, -inf  ;;  %v5495_v0 = vadd.f32 %v5494_v25, %v5493_v6 }
 0xf4d   :  { %v4838_v15 = vrot.slane %v4837_v31, 4 }
 0xf4e   :  { %v4834_v48 = vadd.f32 %v5813_v24, %v5495_v0 }
 0xf4f   :  { %v4839_v29 = vmax.f32 %v4837_v31, %v4838_v15 }
 0xf50   :  { %v4844_v59 = vsel %vm2549_vm2, %v4834_v48, -inf }
 0xf51   :  { %v4840_v51 = vrot.slane %v4839_v29, 2  ;;  %v4845_v38 = vrot.slane %v4844_v59, 4 }
 0xf53   :  { %v4841_v22 = vmax.f32 %v4839_v29, %v4840_v51  ;;  %v4846_v46 = vmax.f32 %v4844_v59, %v4845_v38 }
 0xf55   :  { %v4847_v44 = vrot.slane %v4846_v46, 2  ;;  %v4842_v14 = vrot.slane %v4841_v22, 1 }
 0xf57   :  { %v4848_v21 = vmax.f32 %v4846_v46, %v4847_v44  ;;  %v4843_v39 = vmax.f32 %v4841_v22, %v4842_v14 }
 0xf59   :  { %v4849_v19 = vrot.slane %v4848_v21, 1 }
 0xf5b   :  { %v4850_v57 = vmax.f32 %v4848_v21, %v4849_v19 }
 0xf5d   :  { %v4852_v4 = vsel %vm4851_vm11, %v4843_v39, %v4850_v57 }
 0xf5e   :  { %5819 = vmatmul.mubr.msk.f32.vlgmr.msra.gmra.mxu1 %vm2549_vm2, %v4852_v4 }
 0xf5f   :  { %5825 = vmatprep.mubr.msk.f32.mxu1 %vm6114_vm10, %v8857_v43  ;;  %5822 = vmatpush3.msra.mxu1 %v4937_v30 }
 0xf60   :  { %5823 = vmatprep.subr.mxu1 %v8857_v43  ;;  %v5192_v43 = vld [vmem:[#allocation2] ss:$0 sm:$0xff] }
 0xf61   :  { %5824 = vmatpush3.msra.mxu1 %v4936_v9 }
0x101e   :  { %v4931_v18 = vpop.f32.mrf.mxu1 }
0x101f   :  { %v4932_v27 = vadd.f32 %v5190_v3, %v4931_v18 }
0x1020   :  { %v5820_v17 = vpop.f32.mrf.mxu1 }
0x1021   :  { %v4935_v61 = vmax.f32 %v4932_v27, 0.0 }
0x1023   :  { %5826 = vmatmul.mubr.msk.f32.vlgmr.msra.gmra.mxu1 %vm2549_vm2, %v4935_v61 }
0x10e3   :  { %v5014_v23 = vpop.f32.mrf.mxu1 }
0x10e4   :  { %v5015_v11 = vadd.f32 %v5192_v43, %v5014_v23 }
0x10e5   :  { %v5827_v33 = vpop.f32.mrf.mxu1 }
0x10e6   :  { %5019 = vst.msk [vmem:[%s5056_s19] sm:$0x3] %vm5018_vm12, %v5015_v11 }

</bundles_post_ra>
